<compile_context>
chip_gen: v7x
topology: tpu7x:2x2x1
jax: 0.10.0
libtpu: 0.0.40
codegen_flags: <defaults>
</compile_context>

<pallas_src>
import math
import jax
import jax.numpy as jnp
from jax import lax
from jax.experimental import pallas as pl
from jax.experimental.pallas import tpu as pltpu


def make_kernel(bt, n_pad, c, hidden, h_tile, num_heads, head_dim, eps=1e-5):
    scale = 1.0 / math.sqrt(head_dim)
    inv_sqrt2 = 1.0 / math.sqrt(2.0)
    m = bt * n_pad

    def kernel(x_ref,
               ln1w_ref, ln1b_ref,
               wqkv_ref, bqkv_ref,
               wot_ref, bo_ref,
               ln2w_ref, ln2b_ref,
               w1t_ref, b1_ref, w2t_ref, b2_ref,
               out_ref):
        cdt = wqkv_ref.dtype                      # matmul-operand dtype (bf16 default / f32)
        x = x_ref[...].reshape(m, c)              # (Bt*N_pad, C) fp32 token slab

        # ---- LayerNorm 1: single-pass fp32 statistics (var = E[x^2] - mu^2) ----
        mu = jnp.mean(x, axis=-1, keepdims=True)
        var = jnp.mean(x * x, axis=-1, keepdims=True) - mu * mu
        xn = (x - mu) * lax.rsqrt(var + eps) * ln1w_ref[...] + ln1b_ref[...]

        # ---- fused QKV projection: one (M, C) @ (C, 3C) MXU push, fp32 accumulation ----
        qkv = jnp.dot(xn.astype(cdt), wqkv_ref[...],
                      preferred_element_type=jnp.float32) + bqkv_ref[...]

        # ---- multi-head self-attention ----
        # Head outputs are folded straight into the output projection (per-head
        # (M, hd) @ (hd, C) fp32 accumulation): no masked 32-lane stores, no scratch slab,
        # no concatenate.  Padded sequence rows participate as keys/values unmasked,
        # exactly like the reference module (F.pad followed by unmasked MultiheadAttention).
        # TODO(synk): fold the per-head loop into a single (bt*num_heads)-batched dot_general
        # once the in-kernel (bt, N_pad, nh, hd)<->(bt, nh, N_pad, hd) relayout is verified to
        # lower cheaply, and consider padding the key axis to 128 lanes with an additive -inf
        # mask for large windows.
        attn_acc = jnp.zeros((m, c), dtype=jnp.float32)
        for h in range(num_heads):
            s0 = h * head_dim
            qh = (qkv[:, s0:s0 + head_dim] * scale).astype(cdt).reshape(bt, n_pad, head_dim)
            kh = qkv[:, c + s0:c + s0 + head_dim].astype(cdt).reshape(bt, n_pad, head_dim)
            vh = qkv[:, 2 * c + s0:2 * c + s0 + head_dim].astype(cdt).reshape(bt, n_pad, head_dim)
            s = jnp.einsum('bqd,bkd->bqk', qh, kh,
                           preferred_element_type=jnp.float32)      # (Bt, N_pad, N_pad) fp32
            s = s - jnp.max(s, axis=-1, keepdims=True)
            p = jnp.exp(s)
            p = p * pl.reciprocal(jnp.sum(p, axis=-1, keepdims=True), approx=True)
            oh = jnp.einsum('bqk,bkd->bqd', p.astype(cdt), vh,
                            preferred_element_type=jnp.float32)     # (Bt, N_pad, hd) fp32
            attn_acc = attn_acc + jnp.dot(
                oh.reshape(m, head_dim).astype(cdt),
                wot_ref[s0:s0 + head_dim, :],
                preferred_element_type=jnp.float32)
        x1 = x + attn_acc + bo_ref[...]           # residual 1 (+ out-proj bias)

        # ---- LayerNorm 2 ----
        mu2 = jnp.mean(x1, axis=-1, keepdims=True)
        var2 = jnp.mean(x1 * x1, axis=-1, keepdims=True) - mu2 * mu2
        xn2 = ((x1 - mu2) * lax.rsqrt(var2 + eps) * ln2w_ref[...] + ln2b_ref[...]).astype(cdt)

        # ---- MLP: Linear -> GELU(exact erf) -> Linear, tiled over the hidden dim ----
        # (dropout at p=0 / eval is the identity)
        out_acc = x1 + b2_ref[...]                # residual 2 + final bias
        for t0 in range(0, hidden, h_tile):
            t1 = min(t0 + h_tile, hidden)
            h1 = jnp.dot(xn2, w1t_ref[:, t0:t1],
                         preferred_element_type=jnp.float32) + b1_ref[:, t0:t1]
            h1 = 0.5 * h1 * (1.0 + lax.erf(h1 * inv_sqrt2))
            out_acc = out_acc + jnp.dot(h1.astype(cdt), w2t_ref[t0:t1, :],
                                        preferred_element_type=jnp.float32)

        out_ref[...] = out_acc.reshape(bt, n_pad, c)   # lane-dense (C-wide) store

    return kernel


def _vmem_capacity_bytes():
    """Physical VMEM per TensorCore; conservative 64 MiB (v7x) if the query is unavailable."""
    try:
        return int(pltpu.get_tpu_info().vmem_capacity_bytes)
    except Exception:
        return 64 * 1024 * 1024


def swim_transformer_block(x, params, num_heads, matmul_dtype=jnp.bfloat16):
    """x: (B, N, C) float32. Returns (B, N, C) float32.

    Matmul operands are cast to `matmul_dtype` (bf16 default: single-pass MXU execution and
    half the weight DMA/VMEM on all TPU generations); LN/softmax statistics and all matmul
    accumulation stay fp32.  Pass matmul_dtype=jnp.float32 for tight reference agreement.
    """
    B, N, C = x.shape
    assert C % num_heads == 0
    head_dim = C // num_heads

    (ln1w, ln1b, in_w, in_b, out_w, out_b,
     ln2w, ln2b, w1, b1, w2, b2) = params
    H = w1.shape[0]

    # Replicate F.pad(x, (0,0,0,pad_len)): padded tokens attend / are attended unmasked.
    pad_len = (num_heads - N % num_heads) % num_heads
    N_pad = N + pad_len

    vmem_cap = _vmem_capacity_bytes()
    small_vmem = vmem_cap <= 64 * 1024 * 1024          # v7x-like: 64 MiB per TensorCore

    # ---- per-step batch tile: target M = bt*N_pad of ~1024 rows, bounded by VMEM ----
    h_tile = H if H <= 512 else 512
    TARGET_M = 1024
    bt = max(1, min(TARGET_M // max(N_pad, 1), B))

    itm = jnp.dtype(matmul_dtype).itemsize
    w_bytes = ((3 * C * C + C * C + 2 * C * H) * itm          # matmul weights (cast dtype)
               + (3 * C + C + H + C + 4 * C) * 4)             # fp32 biases + LN params

    def step_bytes(bt_, n_weight_bufs):
        m_ = bt_ * N_pad
        io_blk = m_ * C * 4                                    # one (bt, N_pad, C) fp32 block
        act = 4 * m_ * (9 * C + h_tile) + 12 * bt_ * N_pad * N_pad
        return n_weight_bufs * w_bytes + 4 * io_blk + act      # in/out double-buffered

    budget = int(0.45 * vmem_cap)
    while bt > 1 and step_bytes(bt, 2) > budget:
        bt = max(1, bt // 2)

    # Only on dual-TensorCore (v7x-like) parts keep >= 2 grid steps so both cores get work;
    # on single-TC v5e/v6e this would just shrink M for nothing.
    if small_vmem and B >= 2:
        bt = min(bt, (B + 1) // 2)

    B_pad = ((B + bt - 1) // bt) * bt
    grid = (B_pad // bt,)
    x_p = jnp.pad(x, ((0, B_pad - B), (0, pad_len), (0, 0)))

    cdt = matmul_dtype
    # Fused QKV weight: qkv = x @ in_w.T  ->  columns [Wq^T | Wk^T | Wv^T].
    wqkv_t = in_w.T.astype(cdt)                   # (C, 3C)
    bqkv = in_b.reshape(1, 3 * C).astype(jnp.float32)
    wot = out_w.T.astype(cdt)                     # (C, C)
    bo = out_b.reshape(1, C).astype(jnp.float32)
    w1t = w1.T.astype(cdt)                        # (C, H)
    b1r = b1.reshape(1, H).astype(jnp.float32)
    w2t = w2.T.astype(cdt)                        # (H, C)
    b2r = b2.reshape(1, C).astype(jnp.float32)
    ln1w_r = ln1w.reshape(1, C).astype(jnp.float32)
    ln1b_r = ln1b.reshape(1, C).astype(jnp.float32)
    ln2w_r = ln2w.reshape(1, C).astype(jnp.float32)
    ln2b_r = ln2b.reshape(1, C).astype(jnp.float32)

    kernel = make_kernel(bt, N_pad, C, H, h_tile, num_heads, head_dim)

    # Advisory cost estimate for XLA scheduling around the custom call.
    M = B_pad * N_pad
    flops = (2 * M * C * (3 * C)                                   # fused QKV
             + 2 * B_pad * num_heads * N_pad * N_pad * head_dim * 2  # QK^T + PV
             + 2 * M * C * C                                       # out projection
             + 2 * M * C * H * 2)                                  # MLP
    transcend = (B_pad * num_heads * N_pad * N_pad                 # exp
                 + M * H                                           # erf
                 + 2 * M                                           # rsqrt (LN1, LN2)
                 + B_pad * num_heads * N_pad)                      # softmax reciprocal
    bytes_accessed = 2 * M * C * 4 + w_bytes
    cost = pl.CostEstimate(flops=int(flops), transcendentals=int(transcend),
                           bytes_accessed=int(bytes_accessed))

    args = (x_p, ln1w_r, ln1b_r, wqkv_t, bqkv, wot, bo,
            ln2w_r, ln2b_r, w1t, b1r, w2t, b2r)

    def run(single_buffer_weights):
        wkw = {"pipeline_mode": pl.Buffered(1)} if single_buffer_weights else {}

        def wspec(shape):
            # Constant index_map: the block never changes across grid steps, so a single
            # VMEM buffer suffices (the second buffer would never be used).
            return pl.BlockSpec(shape, lambda i: (0, 0), **wkw)

        n_bufs = 1 if single_buffer_weights else 2
        ceiling = 56 * 1024 * 1024 if small_vmem else 100 * 1024 * 1024
        vmem_limit = int(min(ceiling,
                             max(32 * 1024 * 1024, int(1.5 * step_bytes(bt, n_bufs)))))

        return pl.pallas_call(
            kernel,
            out_shape=jax.ShapeDtypeStruct((B_pad, N_pad, C), jnp.float32),
            grid=grid,
            in_specs=[
                pl.BlockSpec((bt, N_pad, C), lambda i: (i, 0, 0)),   # x tile
                wspec((1, C)), wspec((1, C)),                        # ln1 w/b
                wspec((C, 3 * C)), wspec((1, 3 * C)),                # Wqkv^T, bqkv
                wspec((C, C)), wspec((1, C)),                        # Wo^T, bo
                wspec((1, C)), wspec((1, C)),                        # ln2 w/b
                wspec((C, H)), wspec((1, H)),                        # W1^T, b1
                wspec((H, C)), wspec((1, C)),                        # W2^T, b2
            ],
            out_specs=pl.BlockSpec((bt, N_pad, C), lambda i: (i, 0, 0)),
            compiler_params=pltpu.CompilerParams(
                dimension_semantics=("parallel",),
                vmem_limit_bytes=vmem_limit),
            cost_estimate=cost,
        )(*args)

    try:
        out = run(True)     # single-buffered resident weights
    except Exception:
        # pipeline_mode=pl.Buffered(1) unsupported on this jax/Mosaic build: fall back to
        # default double-buffered weight specs (identical semantics, slightly more VMEM).
        out = run(False)

    # Drop padded batch windows and padded sequence rows.
    return out[:B, :N, :]


def reference_block(x, params, num_heads):
    """Pure-JAX reference mirroring the PyTorch forward, for correctness checking."""
    (ln1w, ln1b, in_w, in_b, out_w, out_b,
     ln2w, ln2b, w1, b1, w2, b2) = params
    B, N, C = x.shape
    dh = C // num_heads
    eps = 1e-5
    pad_len = (num_heads - N % num_heads) % num_heads
    if pad_len > 0:
        x = jnp.pad(x, ((0, 0), (0, pad_len), (0, 0)))

    def ln(z, w, b):
        mu = jnp.mean(z, -1, keepdims=True)
        var = jnp.mean((z - mu) ** 2, -1, keepdims=True)
        return (z - mu) / jnp.sqrt(var + eps) * w + b

    xn = ln(x, ln1w, ln1b)
    qkv = jnp.einsum('bnc,dc->bnd', xn, in_w) + in_b
    q, k, v = jnp.split(qkv, 3, axis=-1)

    def split_heads(t):
        return t.reshape(t.shape[0], t.shape[1], num_heads, dh).transpose(0, 2, 1, 3)

    qh, kh, vh = split_heads(q), split_heads(k), split_heads(v)
    s = jnp.einsum('bhqd,bhkd->bhqk', qh, kh) / math.sqrt(dh)
    p = jax.nn.softmax(s, axis=-1)
    o = jnp.einsum('bhqk,bhkd->bhqd', p, vh).transpose(0, 2, 1, 3).reshape(x.shape)
    o = jnp.einsum('bnc,dc->bnd', o, out_w) + out_b
    x = x + o
    if pad_len > 0:
        x = x[:, :N, :]
    xn2 = ln(x, ln2w, ln2b)
    h1 = jnp.einsum('bnc,hc->bnh', xn2, w1) + b1
    h1 = 0.5 * h1 * (1.0 + lax.erf(h1 / math.sqrt(2.0)))
    y = jnp.einsum('bnh,ch->bnc', h1, w2) + b2
    return x + y


if __name__ == "__main__":
    B, N, C = 4, 6, 128          # N=6 with 4 heads exercises the sequence-padding path
    num_heads = 4
    mlp_ratio = 4.0
    H = int(C * mlp_ratio)

    keys = jax.random.split(jax.random.PRNGKey(0), 13)

    # Deterministic synthetic parameters (shapes follow nn.LayerNorm / nn.MultiheadAttention
    # with default bias / nn.Linear). Dropout at p=0 / eval is the identity; not modeled.
    ln1w = 1.0 + 0.05 * jax.random.normal(keys[0], (C,), jnp.float32)
    ln1b = 0.05 * jax.random.normal(keys[1], (C,), jnp.float32)
    in_w = 0.05 * jax.random.normal(keys[2], (3 * C, C), jnp.float32)   # in_proj_weight
    in_b = 0.05 * jax.random.normal(keys[3], (3 * C,), jnp.float32)     # in_proj_bias
    out_w = 0.05 * jax.random.normal(keys[4], (C, C), jnp.float32)      # out_proj.weight
    out_b = 0.05 * jax.random.normal(keys[5], (C,), jnp.float32)        # out_proj.bias
    ln2w = 1.0 + 0.05 * jax.random.normal(keys[6], (C,), jnp.float32)
    ln2b = 0.05 * jax.random.normal(keys[7], (C,), jnp.float32)
    w1 = 0.05 * jax.random.normal(keys[8], (H, C), jnp.float32)
    b1 = 0.05 * jax.random.normal(keys[9], (H,), jnp.float32)
    w2 = 0.05 * jax.random.normal(keys[10], (C, H), jnp.float32)
    b2 = 0.05 * jax.random.normal(keys[11], (C,), jnp.float32)

    params = (ln1w, ln1b, in_w, in_b, out_w, out_b, ln2w, ln2b, w1, b1, w2, b2)
    x = jax.random.normal(keys[12], (B, N, C), jnp.float32)

    ref = jax.block_until_ready(reference_block(x, params, num_heads))

    # fp32-operand path: tight agreement (only the approx EUP softmax reciprocal differs).
    out_f32 = jax.block_until_ready(
        swim_transformer_block(x, params, num_heads, matmul_dtype=jnp.float32))
    assert out_f32.shape == (B, N, C)
    assert jnp.allclose(out_f32, ref, atol=2e-3, rtol=2e-3), "fp32 path mismatch vs reference"

    # Default bf16-operand path (fp32 statistics + fp32 accumulation): looser tolerance
    # documents the bf16 operand rounding; values/weights here keep errors << 4e-2.
    out = jax.block_until_ready(swim_transformer_block(x, params, num_heads))
    assert out.shape == (B, N, C)
    assert jnp.allclose(out, ref, atol=4e-2, rtol=4e-2), "bf16 path mismatch vs reference"

    print("KERNEL_OK")
</pallas_src>

<mosaic_0001>
module attributes {stable_mosaic.version = 11 : i64} {
  func.func @kernel(%arg0: i32, %arg1: memref<2x8x128xf32, #tpu.memory_space<vmem>>, %arg2: memref<1x128xf32, #tpu.memory_space<vmem>>, %arg3: memref<1x128xf32, #tpu.memory_space<vmem>>, %arg4: memref<128x384xf32, #tpu.memory_space<vmem>>, %arg5: memref<1x384xf32, #tpu.memory_space<vmem>>, %arg6: memref<128x128xf32, #tpu.memory_space<vmem>>, %arg7: memref<1x128xf32, #tpu.memory_space<vmem>>, %arg8: memref<1x128xf32, #tpu.memory_space<vmem>>, %arg9: memref<1x128xf32, #tpu.memory_space<vmem>>, %arg10: memref<128x512xf32, #tpu.memory_space<vmem>>, %arg11: memref<1x512xf32, #tpu.memory_space<vmem>>, %arg12: memref<512x128xf32, #tpu.memory_space<vmem>>, %arg13: memref<1x128xf32, #tpu.memory_space<vmem>>, %arg14: memref<2x8x128xf32, #tpu.memory_space<vmem>>) attributes {dimension_semantics = [#tpu.dimension_semantics<parallel>], iteration_bounds = array<i64: 2>, scalar_prefetch = 0 : i64, scratch_operands = 0 : i64, tpu.core_type = #tpu.core_type<tc>, window_params = [{transform_indices = @transform_0, window_bounds = array<i64: 2, 8, 128>}, {pipeline_mode = #tpu.pipeline_mode<synchronous>, transform_indices = @transform_1, window_bounds = array<i64: 1, 128>}, {pipeline_mode = #tpu.pipeline_mode<synchronous>, transform_indices = @transform_2, window_bounds = array<i64: 1, 128>}, {pipeline_mode = #tpu.pipeline_mode<synchronous>, transform_indices = @transform_3, window_bounds = array<i64: 128, 384>}, {pipeline_mode = #tpu.pipeline_mode<synchronous>, transform_indices = @transform_4, window_bounds = array<i64: 1, 384>}, {pipeline_mode = #tpu.pipeline_mode<synchronous>, transform_indices = @transform_5, window_bounds = array<i64: 128, 128>}, {pipeline_mode = #tpu.pipeline_mode<synchronous>, transform_indices = @transform_6, window_bounds = array<i64: 1, 128>}, {pipeline_mode = #tpu.pipeline_mode<synchronous>, transform_indices = @transform_7, window_bounds = array<i64: 1, 128>}, {pipeline_mode = #tpu.pipeline_mode<synchronous>, transform_indices = @transform_8, window_bounds = array<i64: 1, 128>}, {pipeline_mode = #tpu.pipeline_mode<synchronous>, transform_indices = @transform_9, window_bounds = array<i64: 128, 512>}, {pipeline_mode = #tpu.pipeline_mode<synchronous>, transform_indices = @transform_10, window_bounds = array<i64: 1, 512>}, {pipeline_mode = #tpu.pipeline_mode<synchronous>, transform_indices = @transform_11, window_bounds = array<i64: 512, 128>}, {pipeline_mode = #tpu.pipeline_mode<synchronous>, transform_indices = @transform_12, window_bounds = array<i64: 1, 128>}, {transform_indices = @transform_13, window_bounds = array<i64: 2, 8, 128>}]} {
    %c0 = arith.constant 0 : index
    %c0_0 = arith.constant 0 : index
    %c0_1 = arith.constant 0 : index
    %0 = vector.load %arg1[%c0, %c0_0, %c0_1] : memref<2x8x128xf32, #tpu.memory_space<vmem>>, vector<2x8x128xf32>
    %1 = vector.shape_cast %0 : vector<2x8x128xf32> to vector<16x128xf32>
    %cst = arith.constant dense<0.000000e+00> : vector<16xf32>
    %2 = vector.multi_reduction <add>, %1, %cst [1] : vector<16x128xf32> to vector<16xf32>
    %3 = vector.shape_cast %2 : vector<16xf32> to vector<16x1xf32>
    %cst_2 = arith.constant 1.280000e+02 : f32
    %4 = vector.broadcast %cst_2 : f32 to vector<16x1xf32>
    %5 = arith.divf %3, %4 : vector<16x1xf32>
    %6 = arith.mulf %1, %1 : vector<16x128xf32>
    %cst_3 = arith.constant dense<0.000000e+00> : vector<16xf32>
    %7 = vector.multi_reduction <add>, %6, %cst_3 [1] : vector<16x128xf32> to vector<16xf32>
    %8 = vector.shape_cast %7 : vector<16xf32> to vector<16x1xf32>
    %cst_4 = arith.constant 1.280000e+02 : f32
    %9 = vector.broadcast %cst_4 : f32 to vector<16x1xf32>
    %10 = arith.divf %8, %9 : vector<16x1xf32>
    %11 = arith.mulf %5, %5 : vector<16x1xf32>
    %12 = arith.subf %10, %11 : vector<16x1xf32>
    %13 = vector.broadcast %5 : vector<16x1xf32> to vector<16x128xf32>
    %14 = arith.subf %1, %13 : vector<16x128xf32>
    %cst_5 = arith.constant 9.99999974E-6 : f32
    %15 = vector.broadcast %cst_5 : f32 to vector<16x1xf32>
    %16 = arith.addf %12, %15 : vector<16x1xf32>
    %17 = math.rsqrt %16 : vector<16x1xf32>
    %18 = vector.broadcast %17 : vector<16x1xf32> to vector<16x128xf32>
    %19 = arith.mulf %14, %18 : vector<16x128xf32>
    %c0_6 = arith.constant 0 : index
    %c0_7 = arith.constant 0 : index
    %20 = vector.load %arg2[%c0_6, %c0_7] : memref<1x128xf32, #tpu.memory_space<vmem>>, vector<1x128xf32>
    %21 = vector.broadcast %20 : vector<1x128xf32> to vector<16x128xf32>
    %22 = arith.mulf %19, %21 : vector<16x128xf32>
    %c0_8 = arith.constant 0 : index
    %c0_9 = arith.constant 0 : index
    %23 = vector.load %arg3[%c0_8, %c0_9] : memref<1x128xf32, #tpu.memory_space<vmem>>, vector<1x128xf32>
    %24 = vector.broadcast %23 : vector<1x128xf32> to vector<16x128xf32>
    %25 = arith.addf %22, %24 : vector<16x128xf32>
    %c0_10 = arith.constant 0 : index
    %c0_11 = arith.constant 0 : index
    %26 = vector.load %arg4[%c0_10, %c0_11] : memref<128x384xf32, #tpu.memory_space<vmem>>, vector<128x384xf32>
    %cst_12 = arith.constant dense<0.000000e+00> : vector<16x384xf32>
    %27 = tpu.matmul %25, %26, %cst_12 {dimension_numbers = #tpu.dot_dimension_numbers<[1], [0], [0], [1], [0, 0, 1, 1], [], []>} : vector<16x128xf32>, vector<128x384xf32>, vector<16x384xf32> -> vector<16x384xf32>
    %c0_13 = arith.constant 0 : index
    %c0_14 = arith.constant 0 : index
    %28 = vector.load %arg5[%c0_13, %c0_14] : memref<1x384xf32, #tpu.memory_space<vmem>>, vector<1x384xf32>
    %29 = vector.broadcast %28 : vector<1x384xf32> to vector<16x384xf32>
    %30 = arith.addf %27, %29 : vector<16x384xf32>
    %cst_15 = arith.constant 0.000000e+00 : f32
    %31 = vector.broadcast %cst_15 : f32 to vector<16x128xf32>
    %32 = vector.extract_strided_slice %30 {offsets = [0, 0], sizes = [16, 32], strides = [1, 1]} : vector<16x384xf32> to vector<16x32xf32>
    %cst_16 = arith.constant 0.176776692 : f32
    %33 = vector.broadcast %cst_16 : f32 to vector<16x32xf32>
    %34 = arith.mulf %32, %33 : vector<16x32xf32>
    %35 = vector.shape_cast %34 : vector<16x32xf32> to vector<2x8x32xf32>
    %36 = vector.extract_strided_slice %30 {offsets = [0, 128], sizes = [16, 32], strides = [1, 1]} : vector<16x384xf32> to vector<16x32xf32>
    %37 = vector.shape_cast %36 : vector<16x32xf32> to vector<2x8x32xf32>
    %38 = vector.extract_strided_slice %30 {offsets = [0, 256], sizes = [16, 32], strides = [1, 1]} : vector<16x384xf32> to vector<16x32xf32>
    %39 = vector.shape_cast %38 : vector<16x32xf32> to vector<2x8x32xf32>
    "tpu.trace_start"() <{level = 10 : i32, message = "bqd,bkd->bqk"}> : () -> ()
    %cst_17 = arith.constant dense<0.000000e+00> : vector<2x8x8xf32>
    %40 = tpu.matmul %35, %37, %cst_17 {dimension_numbers = #tpu.dot_dimension_numbers<[2], [2], [1], [1], [0, 0, 0, 1, 1, 1], [0], [0]>} : vector<2x8x32xf32>, vector<2x8x32xf32>, vector<2x8x8xf32> -> vector<2x8x8xf32>
    "tpu.trace_stop"() : () -> ()
    %cst_18 = arith.constant dense<0xFF800000> : vector<2x8xf32>
    %41 = vector.multi_reduction <maximumf>, %40, %cst_18 [2] : vector<2x8x8xf32> to vector<2x8xf32>
    %42 = vector.shape_cast %41 : vector<2x8xf32> to vector<2x8x1xf32>
    %43 = vector.broadcast %42 : vector<2x8x1xf32> to vector<2x8x8xf32>
    %44 = arith.subf %40, %43 : vector<2x8x8xf32>
    %45 = math.exp %44 : vector<2x8x8xf32>
    %cst_19 = arith.constant dense<0.000000e+00> : vector<2x8xf32>
    %46 = vector.multi_reduction <add>, %45, %cst_19 [2] : vector<2x8x8xf32> to vector<2x8xf32>
    %47 = vector.shape_cast %46 : vector<2x8xf32> to vector<2x8x1xf32>
    %48 = tpu.reciprocal %47 {approx = true} : vector<2x8x1xf32> -> vector<2x8x1xf32>
    %49 = vector.broadcast %48 : vector<2x8x1xf32> to vector<2x8x8xf32>
    %50 = arith.mulf %45, %49 : vector<2x8x8xf32>
    "tpu.trace_start"() <{level = 10 : i32, message = "bqk,bkd->bqd"}> : () -> ()
    %cst_20 = arith.constant dense<0.000000e+00> : vector<2x8x32xf32>
    %51 = tpu.matmul %50, %39, %cst_20 {dimension_numbers = #tpu.dot_dimension_numbers<[2], [1], [1], [2], [0, 0, 0, 1, 1, 2], [0], [0]>} : vector<2x8x8xf32>, vector<2x8x32xf32>, vector<2x8x32xf32> -> vector<2x8x32xf32>
    "tpu.trace_stop"() : () -> ()
    %52 = vector.shape_cast %51 : vector<2x8x32xf32> to vector<16x32xf32>
    %c0_21 = arith.constant 0 : index
    %c0_22 = arith.constant 0 : index
    %53 = vector.load %arg6[%c0_21, %c0_22] : memref<128x128xf32, #tpu.memory_space<vmem>>, vector<32x128xf32>
    %cst_23 = arith.constant dense<0.000000e+00> : vector<16x128xf32>
    %54 = tpu.matmul %52, %53, %cst_23 {dimension_numbers = #tpu.dot_dimension_numbers<[1], [0], [0], [1], [0, 0, 1, 1], [], []>} : vector<16x32xf32>, vector<32x128xf32>, vector<16x128xf32> -> vector<16x128xf32>
    %55 = arith.addf %31, %54 : vector<16x128xf32>
    %56 = vector.extract_strided_slice %30 {offsets = [0, 32], sizes = [16, 32], strides = [1, 1]} : vector<16x384xf32> to vector<16x32xf32>
    %cst_24 = arith.constant 0.176776692 : f32
    %57 = vector.broadcast %cst_24 : f32 to vector<16x32xf32>
    %58 = arith.mulf %56, %57 : vector<16x32xf32>
    %59 = vector.shape_cast %58 : vector<16x32xf32> to vector<2x8x32xf32>
    %60 = vector.extract_strided_slice %30 {offsets = [0, 160], sizes = [16, 32], strides = [1, 1]} : vector<16x384xf32> to vector<16x32xf32>
    %61 = vector.shape_cast %60 : vector<16x32xf32> to vector<2x8x32xf32>
    %62 = vector.extract_strided_slice %30 {offsets = [0, 288], sizes = [16, 32], strides = [1, 1]} : vector<16x384xf32> to vector<16x32xf32>
    %63 = vector.shape_cast %62 : vector<16x32xf32> to vector<2x8x32xf32>
    "tpu.trace_start"() <{level = 10 : i32, message = "bqd,bkd->bqk"}> : () -> ()
    %cst_25 = arith.constant dense<0.000000e+00> : vector<2x8x8xf32>
    %64 = tpu.matmul %59, %61, %cst_25 {dimension_numbers = #tpu.dot_dimension_numbers<[2], [2], [1], [1], [0, 0, 0, 1, 1, 1], [0], [0]>} : vector<2x8x32xf32>, vector<2x8x32xf32>, vector<2x8x8xf32> -> vector<2x8x8xf32>
    "tpu.trace_stop"() : () -> ()
    %cst_26 = arith.constant dense<0xFF800000> : vector<2x8xf32>
    %65 = vector.multi_reduction <maximumf>, %64, %cst_26 [2] : vector<2x8x8xf32> to vector<2x8xf32>
    %66 = vector.shape_cast %65 : vector<2x8xf32> to vector<2x8x1xf32>
    %67 = vector.broadcast %66 : vector<2x8x1xf32> to vector<2x8x8xf32>
    %68 = arith.subf %64, %67 : vector<2x8x8xf32>
    %69 = math.exp %68 : vector<2x8x8xf32>
    %cst_27 = arith.constant dense<0.000000e+00> : vector<2x8xf32>
    %70 = vector.multi_reduction <add>, %69, %cst_27 [2] : vector<2x8x8xf32> to vector<2x8xf32>
    %71 = vector.shape_cast %70 : vector<2x8xf32> to vector<2x8x1xf32>
    %72 = tpu.reciprocal %71 {approx = true} : vector<2x8x1xf32> -> vector<2x8x1xf32>
    %73 = vector.broadcast %72 : vector<2x8x1xf32> to vector<2x8x8xf32>
    %74 = arith.mulf %69, %73 : vector<2x8x8xf32>
    "tpu.trace_start"() <{level = 10 : i32, message = "bqk,bkd->bqd"}> : () -> ()
    %cst_28 = arith.constant dense<0.000000e+00> : vector<2x8x32xf32>
    %75 = tpu.matmul %74, %63, %cst_28 {dimension_numbers = #tpu.dot_dimension_numbers<[2], [1], [1], [2], [0, 0, 0, 1, 1, 2], [0], [0]>} : vector<2x8x8xf32>, vector<2x8x32xf32>, vector<2x8x32xf32> -> vector<2x8x32xf32>
    "tpu.trace_stop"() : () -> ()
    %76 = vector.shape_cast %75 : vector<2x8x32xf32> to vector<16x32xf32>
    %c32 = arith.constant 32 : index
    %c0_29 = arith.constant 0 : index
    %77 = vector.load %arg6[%c32, %c0_29] : memref<128x128xf32, #tpu.memory_space<vmem>>, vector<32x128xf32>
    %cst_30 = arith.constant dense<0.000000e+00> : vector<16x128xf32>
    %78 = tpu.matmul %76, %77, %cst_30 {dimension_numbers = #tpu.dot_dimension_numbers<[1], [0], [0], [1], [0, 0, 1, 1], [], []>} : vector<16x32xf32>, vector<32x128xf32>, vector<16x128xf32> -> vector<16x128xf32>
    %79 = arith.addf %55, %78 : vector<16x128xf32>
    %80 = vector.extract_strided_slice %30 {offsets = [0, 64], sizes = [16, 32], strides = [1, 1]} : vector<16x384xf32> to vector<16x32xf32>
    %cst_31 = arith.constant 0.176776692 : f32
    %81 = vector.broadcast %cst_31 : f32 to vector<16x32xf32>
    %82 = arith.mulf %80, %81 : vector<16x32xf32>
    %83 = vector.shape_cast %82 : vector<16x32xf32> to vector<2x8x32xf32>
    %84 = vector.extract_strided_slice %30 {offsets = [0, 192], sizes = [16, 32], strides = [1, 1]} : vector<16x384xf32> to vector<16x32xf32>
    %85 = vector.shape_cast %84 : vector<16x32xf32> to vector<2x8x32xf32>
    %86 = vector.extract_strided_slice %30 {offsets = [0, 320], sizes = [16, 32], strides = [1, 1]} : vector<16x384xf32> to vector<16x32xf32>
    %87 = vector.shape_cast %86 : vector<16x32xf32> to vector<2x8x32xf32>
    "tpu.trace_start"() <{level = 10 : i32, message = "bqd,bkd->bqk"}> : () -> ()
    %cst_32 = arith.constant dense<0.000000e+00> : vector<2x8x8xf32>
    %88 = tpu.matmul %83, %85, %cst_32 {dimension_numbers = #tpu.dot_dimension_numbers<[2], [2], [1], [1], [0, 0, 0, 1, 1, 1], [0], [0]>} : vector<2x8x32xf32>, vector<2x8x32xf32>, vector<2x8x8xf32> -> vector<2x8x8xf32>
    "tpu.trace_stop"() : () -> ()
    %cst_33 = arith.constant dense<0xFF800000> : vector<2x8xf32>
    %89 = vector.multi_reduction <maximumf>, %88, %cst_33 [2] : vector<2x8x8xf32> to vector<2x8xf32>
    %90 = vector.shape_cast %89 : vector<2x8xf32> to vector<2x8x1xf32>
    %91 = vector.broadcast %90 : vector<2x8x1xf32> to vector<2x8x8xf32>
    %92 = arith.subf %88, %91 : vector<2x8x8xf32>
    %93 = math.exp %92 : vector<2x8x8xf32>
    %cst_34 = arith.constant dense<0.000000e+00> : vector<2x8xf32>
    %94 = vector.multi_reduction <add>, %93, %cst_34 [2] : vector<2x8x8xf32> to vector<2x8xf32>
    %95 = vector.shape_cast %94 : vector<2x8xf32> to vector<2x8x1xf32>
    %96 = tpu.reciprocal %95 {approx = true} : vector<2x8x1xf32> -> vector<2x8x1xf32>
    %97 = vector.broadcast %96 : vector<2x8x1xf32> to vector<2x8x8xf32>
    %98 = arith.mulf %93, %97 : vector<2x8x8xf32>
    "tpu.trace_start"() <{level = 10 : i32, message = "bqk,bkd->bqd"}> : () -> ()
    %cst_35 = arith.constant dense<0.000000e+00> : vector<2x8x32xf32>
    %99 = tpu.matmul %98, %87, %cst_35 {dimension_numbers = #tpu.dot_dimension_numbers<[2], [1], [1], [2], [0, 0, 0, 1, 1, 2], [0], [0]>} : vector<2x8x8xf32>, vector<2x8x32xf32>, vector<2x8x32xf32> -> vector<2x8x32xf32>
    "tpu.trace_stop"() : () -> ()
    %100 = vector.shape_cast %99 : vector<2x8x32xf32> to vector<16x32xf32>
    %c64 = arith.constant 64 : index
    %c0_36 = arith.constant 0 : index
    %101 = vector.load %arg6[%c64, %c0_36] : memref<128x128xf32, #tpu.memory_space<vmem>>, vector<32x128xf32>
    %cst_37 = arith.constant dense<0.000000e+00> : vector<16x128xf32>
    %102 = tpu.matmul %100, %101, %cst_37 {dimension_numbers = #tpu.dot_dimension_numbers<[1], [0], [0], [1], [0, 0, 1, 1], [], []>} : vector<16x32xf32>, vector<32x128xf32>, vector<16x128xf32> -> vector<16x128xf32>
    %103 = arith.addf %79, %102 : vector<16x128xf32>
    %104 = vector.extract_strided_slice %30 {offsets = [0, 96], sizes = [16, 32], strides = [1, 1]} : vector<16x384xf32> to vector<16x32xf32>
    %cst_38 = arith.constant 0.176776692 : f32
    %105 = vector.broadcast %cst_38 : f32 to vector<16x32xf32>
    %106 = arith.mulf %104, %105 : vector<16x32xf32>
    %107 = vector.shape_cast %106 : vector<16x32xf32> to vector<2x8x32xf32>
    %108 = vector.extract_strided_slice %30 {offsets = [0, 224], sizes = [16, 32], strides = [1, 1]} : vector<16x384xf32> to vector<16x32xf32>
    %109 = vector.shape_cast %108 : vector<16x32xf32> to vector<2x8x32xf32>
    %110 = vector.extract_strided_slice %30 {offsets = [0, 352], sizes = [16, 32], strides = [1, 1]} : vector<16x384xf32> to vector<16x32xf32>
    %111 = vector.shape_cast %110 : vector<16x32xf32> to vector<2x8x32xf32>
    "tpu.trace_start"() <{level = 10 : i32, message = "bqd,bkd->bqk"}> : () -> ()
    %cst_39 = arith.constant dense<0.000000e+00> : vector<2x8x8xf32>
    %112 = tpu.matmul %107, %109, %cst_39 {dimension_numbers = #tpu.dot_dimension_numbers<[2], [2], [1], [1], [0, 0, 0, 1, 1, 1], [0], [0]>} : vector<2x8x32xf32>, vector<2x8x32xf32>, vector<2x8x8xf32> -> vector<2x8x8xf32>
    "tpu.trace_stop"() : () -> ()
    %cst_40 = arith.constant dense<0xFF800000> : vector<2x8xf32>
    %113 = vector.multi_reduction <maximumf>, %112, %cst_40 [2] : vector<2x8x8xf32> to vector<2x8xf32>
    %114 = vector.shape_cast %113 : vector<2x8xf32> to vector<2x8x1xf32>
    %115 = vector.broadcast %114 : vector<2x8x1xf32> to vector<2x8x8xf32>
    %116 = arith.subf %112, %115 : vector<2x8x8xf32>
    %117 = math.exp %116 : vector<2x8x8xf32>
    %cst_41 = arith.constant dense<0.000000e+00> : vector<2x8xf32>
    %118 = vector.multi_reduction <add>, %117, %cst_41 [2] : vector<2x8x8xf32> to vector<2x8xf32>
    %119 = vector.shape_cast %118 : vector<2x8xf32> to vector<2x8x1xf32>
    %120 = tpu.reciprocal %119 {approx = true} : vector<2x8x1xf32> -> vector<2x8x1xf32>
    %121 = vector.broadcast %120 : vector<2x8x1xf32> to vector<2x8x8xf32>
    %122 = arith.mulf %117, %121 : vector<2x8x8xf32>
    "tpu.trace_start"() <{level = 10 : i32, message = "bqk,bkd->bqd"}> : () -> ()
    %cst_42 = arith.constant dense<0.000000e+00> : vector<2x8x32xf32>
    %123 = tpu.matmul %122, %111, %cst_42 {dimension_numbers = #tpu.dot_dimension_numbers<[2], [1], [1], [2], [0, 0, 0, 1, 1, 2], [0], [0]>} : vector<2x8x8xf32>, vector<2x8x32xf32>, vector<2x8x32xf32> -> vector<2x8x32xf32>
    "tpu.trace_stop"() : () -> ()
    %124 = vector.shape_cast %123 : vector<2x8x32xf32> to vector<16x32xf32>
    %c96 = arith.constant 96 : index
    %c0_43 = arith.constant 0 : index
    %125 = vector.load %arg6[%c96, %c0_43] : memref<128x128xf32, #tpu.memory_space<vmem>>, vector<32x128xf32>
    %cst_44 = arith.constant dense<0.000000e+00> : vector<16x128xf32>
    %126 = tpu.matmul %124, %125, %cst_44 {dimension_numbers = #tpu.dot_dimension_numbers<[1], [0], [0], [1], [0, 0, 1, 1], [], []>} : vector<16x32xf32>, vector<32x128xf32>, vector<16x128xf32> -> vector<16x128xf32>
    %127 = arith.addf %103, %126 : vector<16x128xf32>
    %128 = arith.addf %1, %127 : vector<16x128xf32>
    %c0_45 = arith.constant 0 : index
    %c0_46 = arith.constant 0 : index
    %129 = vector.load %arg7[%c0_45, %c0_46] : memref<1x128xf32, #tpu.memory_space<vmem>>, vector<1x128xf32>
    %130 = vector.broadcast %129 : vector<1x128xf32> to vector<16x128xf32>
    %131 = arith.addf %128, %130 : vector<16x128xf32>
    %cst_47 = arith.constant dense<0.000000e+00> : vector<16xf32>
    %132 = vector.multi_reduction <add>, %131, %cst_47 [1] : vector<16x128xf32> to vector<16xf32>
    %133 = vector.shape_cast %132 : vector<16xf32> to vector<16x1xf32>
    %cst_48 = arith.constant 1.280000e+02 : f32
    %134 = vector.broadcast %cst_48 : f32 to vector<16x1xf32>
    %135 = arith.divf %133, %134 : vector<16x1xf32>
    %136 = arith.mulf %131, %131 : vector<16x128xf32>
    %cst_49 = arith.constant dense<0.000000e+00> : vector<16xf32>
    %137 = vector.multi_reduction <add>, %136, %cst_49 [1] : vector<16x128xf32> to vector<16xf32>
    %138 = vector.shape_cast %137 : vector<16xf32> to vector<16x1xf32>
    %cst_50 = arith.constant 1.280000e+02 : f32
    %139 = vector.broadcast %cst_50 : f32 to vector<16x1xf32>
    %140 = arith.divf %138, %139 : vector<16x1xf32>
    %141 = arith.mulf %135, %135 : vector<16x1xf32>
    %142 = arith.subf %140, %141 : vector<16x1xf32>
    %143 = vector.broadcast %135 : vector<16x1xf32> to vector<16x128xf32>
    %144 = arith.subf %131, %143 : vector<16x128xf32>
    %cst_51 = arith.constant 9.99999974E-6 : f32
    %145 = vector.broadcast %cst_51 : f32 to vector<16x1xf32>
    %146 = arith.addf %142, %145 : vector<16x1xf32>
    %147 = math.rsqrt %146 : vector<16x1xf32>
    %148 = vector.broadcast %147 : vector<16x1xf32> to vector<16x128xf32>
    %149 = arith.mulf %144, %148 : vector<16x128xf32>
    %c0_52 = arith.constant 0 : index
    %c0_53 = arith.constant 0 : index
    %150 = vector.load %arg8[%c0_52, %c0_53] : memref<1x128xf32, #tpu.memory_space<vmem>>, vector<1x128xf32>
    %151 = vector.broadcast %150 : vector<1x128xf32> to vector<16x128xf32>
    %152 = arith.mulf %149, %151 : vector<16x128xf32>
    %c0_54 = arith.constant 0 : index
    %c0_55 = arith.constant 0 : index
    %153 = vector.load %arg9[%c0_54, %c0_55] : memref<1x128xf32, #tpu.memory_space<vmem>>, vector<1x128xf32>
    %154 = vector.broadcast %153 : vector<1x128xf32> to vector<16x128xf32>
    %155 = arith.addf %152, %154 : vector<16x128xf32>
    %c0_56 = arith.constant 0 : index
    %c0_57 = arith.constant 0 : index
    %156 = vector.load %arg13[%c0_56, %c0_57] : memref<1x128xf32, #tpu.memory_space<vmem>>, vector<1x128xf32>
    %157 = vector.broadcast %156 : vector<1x128xf32> to vector<16x128xf32>
    %158 = arith.addf %131, %157 : vector<16x128xf32>
    %c0_58 = arith.constant 0 : index
    %c0_59 = arith.constant 0 : index
    %159 = vector.load %arg10[%c0_58, %c0_59] : memref<128x512xf32, #tpu.memory_space<vmem>>, vector<128x512xf32>
    %cst_60 = arith.constant dense<0.000000e+00> : vector<16x512xf32>
    %160 = tpu.matmul %155, %159, %cst_60 {dimension_numbers = #tpu.dot_dimension_numbers<[1], [0], [0], [1], [0, 0, 1, 1], [], []>} : vector<16x128xf32>, vector<128x512xf32>, vector<16x512xf32> -> vector<16x512xf32>
    %c0_61 = arith.constant 0 : index
    %c0_62 = arith.constant 0 : index
    %161 = vector.load %arg11[%c0_61, %c0_62] : memref<1x512xf32, #tpu.memory_space<vmem>>, vector<1x512xf32>
    %162 = vector.broadcast %161 : vector<1x512xf32> to vector<16x512xf32>
    %163 = arith.addf %160, %162 : vector<16x512xf32>
    %cst_63 = arith.constant 5.000000e-01 : f32
    %164 = vector.broadcast %cst_63 : f32 to vector<16x512xf32>
    %165 = arith.mulf %164, %163 : vector<16x512xf32>
    %cst_64 = arith.constant 0.707106769 : f32
    %166 = vector.broadcast %cst_64 : f32 to vector<16x512xf32>
    %167 = arith.mulf %163, %166 : vector<16x512xf32>
    %168 = math.erf %167 : vector<16x512xf32>
    %cst_65 = arith.constant 1.000000e+00 : f32
    %169 = vector.broadcast %cst_65 : f32 to vector<16x512xf32>
    %170 = arith.addf %169, %168 : vector<16x512xf32>
    %171 = arith.mulf %165, %170 : vector<16x512xf32>
    %c0_66 = arith.constant 0 : index
    %c0_67 = arith.constant 0 : index
    %172 = vector.load %arg12[%c0_66, %c0_67] : memref<512x128xf32, #tpu.memory_space<vmem>>, vector<512x128xf32>
    %cst_68 = arith.constant dense<0.000000e+00> : vector<16x128xf32>
    %173 = tpu.matmul %171, %172, %cst_68 {dimension_numbers = #tpu.dot_dimension_numbers<[1], [0], [0], [1], [0, 0, 1, 1], [], []>} : vector<16x512xf32>, vector<512x128xf32>, vector<16x128xf32> -> vector<16x128xf32>
    %174 = arith.addf %158, %173 : vector<16x128xf32>
    %175 = vector.shape_cast %174 : vector<16x128xf32> to vector<2x8x128xf32>
    %c0_69 = arith.constant 0 : index
    %c0_70 = arith.constant 0 : index
    %c0_71 = arith.constant 0 : index
    %176 = vector.load %arg14[%c0_69, %c0_70, %c0_71] : memref<2x8x128xf32, #tpu.memory_space<vmem>>, vector<2x8x128xf32>
    tpu.vector_store %arg14[%c0_69, %c0_70, %c0_71], %175 {strides = array<i32>} : memref<2x8x128xf32, #tpu.memory_space<vmem>>, vector<2x8x128xf32>,
    return
  }
  func.func @transform_0(%arg0: i32) -> (i32, i32, i32) {
    %c0_i32 = arith.constant 0 : i32
    %c0_i32_0 = arith.constant 0 : i32
    %c0_i32_1 = arith.constant 0 : i32
    return %arg0, %c0_i32, %c0_i32_0 : i32, i32, i32
  }
  func.func @transform_1(%arg0: i32) -> (i32, i32) {
    %c0_i32 = arith.constant 0 : i32
    %c0_i32_0 = arith.constant 0 : i32
    %c0_i32_1 = arith.constant 0 : i32
    return %c0_i32, %c0_i32_0 : i32, i32
  }
  func.func @transform_2(%arg0: i32) -> (i32, i32) {
    %c0_i32 = arith.constant 0 : i32
    %c0_i32_0 = arith.constant 0 : i32
    %c0_i32_1 = arith.constant 0 : i32
    return %c0_i32, %c0_i32_0 : i32, i32
  }
  func.func @transform_3(%arg0: i32) -> (i32, i32) {
    %c0_i32 = arith.constant 0 : i32
    %c0_i32_0 = arith.constant 0 : i32
    %c0_i32_1 = arith.constant 0 : i32
    return %c0_i32, %c0_i32_0 : i32, i32
  }
  func.func @transform_4(%arg0: i32) -> (i32, i32) {
    %c0_i32 = arith.constant 0 : i32
    %c0_i32_0 = arith.constant 0 : i32
    %c0_i32_1 = arith.constant 0 : i32
    return %c0_i32, %c0_i32_0 : i32, i32
  }
  func.func @transform_5(%arg0: i32) -> (i32, i32) {
    %c0_i32 = arith.constant 0 : i32
    %c0_i32_0 = arith.constant 0 : i32
    %c0_i32_1 = arith.constant 0 : i32
    return %c0_i32, %c0_i32_0 : i32, i32
  }
  func.func @transform_6(%arg0: i32) -> (i32, i32) {
    %c0_i32 = arith.constant 0 : i32
    %c0_i32_0 = arith.constant 0 : i32
    %c0_i32_1 = arith.constant 0 : i32
    return %c0_i32, %c0_i32_0 : i32, i32
  }
  func.func @transform_7(%arg0: i32) -> (i32, i32) {
    %c0_i32 = arith.constant 0 : i32
    %c0_i32_0 = arith.constant 0 : i32
    %c0_i32_1 = arith.constant 0 : i32
    return %c0_i32, %c0_i32_0 : i32, i32
  }
  func.func @transform_8(%arg0: i32) -> (i32, i32) {
    %c0_i32 = arith.constant 0 : i32
    %c0_i32_0 = arith.constant 0 : i32
    %c0_i32_1 = arith.constant 0 : i32
    return %c0_i32, %c0_i32_0 : i32, i32
  }
  func.func @transform_9(%arg0: i32) -> (i32, i32) {
    %c0_i32 = arith.constant 0 : i32
    %c0_i32_0 = arith.constant 0 : i32
    %c0_i32_1 = arith.constant 0 : i32
    return %c0_i32, %c0_i32_0 : i32, i32
  }
  func.func @transform_10(%arg0: i32) -> (i32, i32) {
    %c0_i32 = arith.constant 0 : i32
    %c0_i32_0 = arith.constant 0 : i32
    %c0_i32_1 = arith.constant 0 : i32
    return %c0_i32, %c0_i32_0 : i32, i32
  }
  func.func @transform_11(%arg0: i32) -> (i32, i32) {
    %c0_i32 = arith.constant 0 : i32
    %c0_i32_0 = arith.constant 0 : i32
    %c0_i32_1 = arith.constant 0 : i32
    return %c0_i32, %c0_i32_0 : i32, i32
  }
  func.func @transform_12(%arg0: i32) -> (i32, i32) {
    %c0_i32 = arith.constant 0 : i32
    %c0_i32_0 = arith.constant 0 : i32
    %c0_i32_1 = arith.constant 0 : i32
    return %c0_i32, %c0_i32_0 : i32, i32
  }
  func.func @transform_13(%arg0: i32) -> (i32, i32, i32) {
    %c0_i32 = arith.constant 0 : i32
    %c0_i32_0 = arith.constant 0 : i32
    %c0_i32_1 = arith.constant 0 : i32
    return %arg0, %c0_i32, %c0_i32_0 : i32, i32, i32
  }
}

module attributes {stable_mosaic.version = 11 : i64} {
  func.func @kernel(%arg0: i32, %arg1: memref<2x8x128xf32, #tpu.memory_space<vmem>>, %arg2: memref<1x128xf32, #tpu.memory_space<vmem>>, %arg3: memref<1x128xf32, #tpu.memory_space<vmem>>, %arg4: memref<128x384xf32, #tpu.memory_space<vmem>>, %arg5: memref<1x384xf32, #tpu.memory_space<vmem>>, %arg6: memref<128x128xf32, #tpu.memory_space<vmem>>, %arg7: memref<1x128xf32, #tpu.memory_space<vmem>>, %arg8: memref<1x128xf32, #tpu.memory_space<vmem>>, %arg9: memref<1x128xf32, #tpu.memory_space<vmem>>, %arg10: memref<128x512xf32, #tpu.memory_space<vmem>>, %arg11: memref<1x512xf32, #tpu.memory_space<vmem>>, %arg12: memref<512x128xf32, #tpu.memory_space<vmem>>, %arg13: memref<1x128xf32, #tpu.memory_space<vmem>>, %arg14: memref<2x8x128xf32, #tpu.memory_space<vmem>>) attributes {dimension_semantics = [#tpu.dimension_semantics<parallel>], iteration_bounds = array<i64: 2>, scalar_prefetch = 0 : i64, scratch_operands = 0 : i64, tpu.core_type = #tpu.core_type<tc>, window_params = [{transform_indices = @transform_0, window_bounds = array<i64: 2, 8, 128>}, {pipeline_mode = #tpu.pipeline_mode<synchronous>, transform_indices = @transform_1, window_bounds = array<i64: 1, 128>}, {pipeline_mode = #tpu.pipeline_mode<synchronous>, transform_indices = @transform_2, window_bounds = array<i64: 1, 128>}, {pipeline_mode = #tpu.pipeline_mode<synchronous>, transform_indices = @transform_3, window_bounds = array<i64: 128, 384>}, {pipeline_mode = #tpu.pipeline_mode<synchronous>, transform_indices = @transform_4, window_bounds = array<i64: 1, 384>}, {pipeline_mode = #tpu.pipeline_mode<synchronous>, transform_indices = @transform_5, window_bounds = array<i64: 128, 128>}, {pipeline_mode = #tpu.pipeline_mode<synchronous>, transform_indices = @transform_6, window_bounds = array<i64: 1, 128>}, {pipeline_mode = #tpu.pipeline_mode<synchronous>, transform_indices = @transform_7, window_bounds = array<i64: 1, 128>}, {pipeline_mode = #tpu.pipeline_mode<synchronous>, transform_indices = @transform_8, window_bounds = array<i64: 1, 128>}, {pipeline_mode = #tpu.pipeline_mode<synchronous>, transform_indices = @transform_9, window_bounds = array<i64: 128, 512>}, {pipeline_mode = #tpu.pipeline_mode<synchronous>, transform_indices = @transform_10, window_bounds = array<i64: 1, 512>}, {pipeline_mode = #tpu.pipeline_mode<synchronous>, transform_indices = @transform_11, window_bounds = array<i64: 512, 128>}, {pipeline_mode = #tpu.pipeline_mode<synchronous>, transform_indices = @transform_12, window_bounds = array<i64: 1, 128>}, {transform_indices = @transform_13, window_bounds = array<i64: 2, 8, 128>}]} {
    %c0 = arith.constant 0 : index
    %c0_0 = arith.constant 0 : index
    %c0_1 = arith.constant 0 : index
    %0 = vector.load %arg1[%c0, %c0_0, %c0_1] : memref<2x8x128xf32, #tpu.memory_space<vmem>>, vector<2x8x128xf32>
    %1 = vector.shape_cast %0 : vector<2x8x128xf32> to vector<16x128xf32>
    %cst = arith.constant dense<0.000000e+00> : vector<16xf32>
    %2 = vector.multi_reduction <add>, %1, %cst [1] : vector<16x128xf32> to vector<16xf32>
    %3 = vector.shape_cast %2 : vector<16xf32> to vector<16x1xf32>
    %cst_2 = arith.constant 1.280000e+02 : f32
    %4 = vector.broadcast %cst_2 : f32 to vector<16x1xf32>
    %5 = arith.divf %3, %4 : vector<16x1xf32>
    %6 = arith.mulf %1, %1 : vector<16x128xf32>
    %cst_3 = arith.constant dense<0.000000e+00> : vector<16xf32>
    %7 = vector.multi_reduction <add>, %6, %cst_3 [1] : vector<16x128xf32> to vector<16xf32>
    %8 = vector.shape_cast %7 : vector<16xf32> to vector<16x1xf32>
    %cst_4 = arith.constant 1.280000e+02 : f32
    %9 = vector.broadcast %cst_4 : f32 to vector<16x1xf32>
    %10 = arith.divf %8, %9 : vector<16x1xf32>
    %11 = arith.mulf %5, %5 : vector<16x1xf32>
    %12 = arith.subf %10, %11 : vector<16x1xf32>
    %13 = vector.broadcast %5 : vector<16x1xf32> to vector<16x128xf32>
    %14 = arith.subf %1, %13 : vector<16x128xf32>
    %cst_5 = arith.constant 9.99999974E-6 : f32
    %15 = vector.broadcast %cst_5 : f32 to vector<16x1xf32>
    %16 = arith.addf %12, %15 : vector<16x1xf32>
    %17 = math.rsqrt %16 : vector<16x1xf32>
    %18 = vector.broadcast %17 : vector<16x1xf32> to vector<16x128xf32>
    %19 = arith.mulf %14, %18 : vector<16x128xf32>
    %c0_6 = arith.constant 0 : index
    %c0_7 = arith.constant 0 : index
    %20 = vector.load %arg2[%c0_6, %c0_7] : memref<1x128xf32, #tpu.memory_space<vmem>>, vector<1x128xf32>
    %21 = vector.broadcast %20 : vector<1x128xf32> to vector<16x128xf32>
    %22 = arith.mulf %19, %21 : vector<16x128xf32>
    %c0_8 = arith.constant 0 : index
    %c0_9 = arith.constant 0 : index
    %23 = vector.load %arg3[%c0_8, %c0_9] : memref<1x128xf32, #tpu.memory_space<vmem>>, vector<1x128xf32>
    %24 = vector.broadcast %23 : vector<1x128xf32> to vector<16x128xf32>
    %25 = arith.addf %22, %24 : vector<16x128xf32>
    %c0_10 = arith.constant 0 : index
    %c0_11 = arith.constant 0 : index
    %26 = vector.load %arg4[%c0_10, %c0_11] : memref<128x384xf32, #tpu.memory_space<vmem>>, vector<128x384xf32>
    %cst_12 = arith.constant dense<0.000000e+00> : vector<16x384xf32>
    %27 = tpu.matmul %25, %26, %cst_12 {dimension_numbers = #tpu.dot_dimension_numbers<[1], [0], [0], [1], [0, 0, 1, 1], [], []>} : vector<16x128xf32>, vector<128x384xf32>, vector<16x384xf32> -> vector<16x384xf32>
    %c0_13 = arith.constant 0 : index
    %c0_14 = arith.constant 0 : index
    %28 = vector.load %arg5[%c0_13, %c0_14] : memref<1x384xf32, #tpu.memory_space<vmem>>, vector<1x384xf32>
    %29 = vector.broadcast %28 : vector<1x384xf32> to vector<16x384xf32>
    %30 = arith.addf %27, %29 : vector<16x384xf32>
    %cst_15 = arith.constant 0.000000e+00 : f32
    %31 = vector.broadcast %cst_15 : f32 to vector<16x128xf32>
    %32 = vector.extract_strided_slice %30 {offsets = [0, 0], sizes = [16, 32], strides = [1, 1]} : vector<16x384xf32> to vector<16x32xf32>
    %cst_16 = arith.constant 0.176776692 : f32
    %33 = vector.broadcast %cst_16 : f32 to vector<16x32xf32>
    %34 = arith.mulf %32, %33 : vector<16x32xf32>
    %35 = vector.shape_cast %34 : vector<16x32xf32> to vector<2x8x32xf32>
    %36 = vector.extract_strided_slice %30 {offsets = [0, 128], sizes = [16, 32], strides = [1, 1]} : vector<16x384xf32> to vector<16x32xf32>
    %37 = vector.shape_cast %36 : vector<16x32xf32> to vector<2x8x32xf32>
    %38 = vector.extract_strided_slice %30 {offsets = [0, 256], sizes = [16, 32], strides = [1, 1]} : vector<16x384xf32> to vector<16x32xf32>
    %39 = vector.shape_cast %38 : vector<16x32xf32> to vector<2x8x32xf32>
    "tpu.trace_start"() <{level = 10 : i32, message = "bqd,bkd->bqk"}> : () -> ()
    %cst_17 = arith.constant dense<0.000000e+00> : vector<2x8x8xf32>
    %40 = tpu.matmul %35, %37, %cst_17 {dimension_numbers = #tpu.dot_dimension_numbers<[2], [2], [1], [1], [0, 0, 0, 1, 1, 1], [0], [0]>} : vector<2x8x32xf32>, vector<2x8x32xf32>, vector<2x8x8xf32> -> vector<2x8x8xf32>
    "tpu.trace_stop"() : () -> ()
    %cst_18 = arith.constant dense<0xFF800000> : vector<2x8xf32>
    %41 = vector.multi_reduction <maximumf>, %40, %cst_18 [2] : vector<2x8x8xf32> to vector<2x8xf32>
    %42 = vector.shape_cast %41 : vector<2x8xf32> to vector<2x8x1xf32>
    %43 = vector.broadcast %42 : vector<2x8x1xf32> to vector<2x8x8xf32>
    %44 = arith.subf %40, %43 : vector<2x8x8xf32>
    %45 = math.exp %44 : vector<2x8x8xf32>
    %cst_19 = arith.constant dense<0.000000e+00> : vector<2x8xf32>
    %46 = vector.multi_reduction <add>, %45, %cst_19 [2] : vector<2x8x8xf32> to vector<2x8xf32>
    %47 = vector.shape_cast %46 : vector<2x8xf32> to vector<2x8x1xf32>
    %48 = tpu.reciprocal %47 {approx = true} : vector<2x8x1xf32> -> vector<2x8x1xf32>
    %49 = vector.broadcast %48 : vector<2x8x1xf32> to vector<2x8x8xf32>
    %50 = arith.mulf %45, %49 : vector<2x8x8xf32>
    "tpu.trace_start"() <{level = 10 : i32, message = "bqk,bkd->bqd"}> : () -> ()
    %cst_20 = arith.constant dense<0.000000e+00> : vector<2x8x32xf32>
    %51 = tpu.matmul %50, %39, %cst_20 {dimension_numbers = #tpu.dot_dimension_numbers<[2], [1], [1], [2], [0, 0, 0, 1, 1, 2], [0], [0]>} : vector<2x8x8xf32>, vector<2x8x32xf32>, vector<2x8x32xf32> -> vector<2x8x32xf32>
    "tpu.trace_stop"() : () -> ()
    %52 = vector.shape_cast %51 : vector<2x8x32xf32> to vector<16x32xf32>
    %c0_21 = arith.constant 0 : index
    %c0_22 = arith.constant 0 : index
    %53 = vector.load %arg6[%c0_21, %c0_22] : memref<128x128xf32, #tpu.memory_space<vmem>>, vector<32x128xf32>
    %cst_23 = arith.constant dense<0.000000e+00> : vector<16x128xf32>
    %54 = tpu.matmul %52, %53, %cst_23 {dimension_numbers = #tpu.dot_dimension_numbers<[1], [0], [0], [1], [0, 0, 1, 1], [], []>} : vector<16x32xf32>, vector<32x128xf32>, vector<16x128xf32> -> vector<16x128xf32>
    %55 = arith.addf %31, %54 : vector<16x128xf32>
    %56 = vector.extract_strided_slice %30 {offsets = [0, 32], sizes = [16, 32], strides = [1, 1]} : vector<16x384xf32> to vector<16x32xf32>
    %cst_24 = arith.constant 0.176776692 : f32
    %57 = vector.broadcast %cst_24 : f32 to vector<16x32xf32>
    %58 = arith.mulf %56, %57 : vector<16x32xf32>
    %59 = vector.shape_cast %58 : vector<16x32xf32> to vector<2x8x32xf32>
    %60 = vector.extract_strided_slice %30 {offsets = [0, 160], sizes = [16, 32], strides = [1, 1]} : vector<16x384xf32> to vector<16x32xf32>
    %61 = vector.shape_cast %60 : vector<16x32xf32> to vector<2x8x32xf32>
    %62 = vector.extract_strided_slice %30 {offsets = [0, 288], sizes = [16, 32], strides = [1, 1]} : vector<16x384xf32> to vector<16x32xf32>
    %63 = vector.shape_cast %62 : vector<16x32xf32> to vector<2x8x32xf32>
    "tpu.trace_start"() <{level = 10 : i32, message = "bqd,bkd->bqk"}> : () -> ()
    %cst_25 = arith.constant dense<0.000000e+00> : vector<2x8x8xf32>
    %64 = tpu.matmul %59, %61, %cst_25 {dimension_numbers = #tpu.dot_dimension_numbers<[2], [2], [1], [1], [0, 0, 0, 1, 1, 1], [0], [0]>} : vector<2x8x32xf32>, vector<2x8x32xf32>, vector<2x8x8xf32> -> vector<2x8x8xf32>
    "tpu.trace_stop"() : () -> ()
    %cst_26 = arith.constant dense<0xFF800000> : vector<2x8xf32>
    %65 = vector.multi_reduction <maximumf>, %64, %cst_26 [2] : vector<2x8x8xf32> to vector<2x8xf32>
    %66 = vector.shape_cast %65 : vector<2x8xf32> to vector<2x8x1xf32>
    %67 = vector.broadcast %66 : vector<2x8x1xf32> to vector<2x8x8xf32>
    %68 = arith.subf %64, %67 : vector<2x8x8xf32>
    %69 = math.exp %68 : vector<2x8x8xf32>
    %cst_27 = arith.constant dense<0.000000e+00> : vector<2x8xf32>
    %70 = vector.multi_reduction <add>, %69, %cst_27 [2] : vector<2x8x8xf32> to vector<2x8xf32>
    %71 = vector.shape_cast %70 : vector<2x8xf32> to vector<2x8x1xf32>
    %72 = tpu.reciprocal %71 {approx = true} : vector<2x8x1xf32> -> vector<2x8x1xf32>
    %73 = vector.broadcast %72 : vector<2x8x1xf32> to vector<2x8x8xf32>
    %74 = arith.mulf %69, %73 : vector<2x8x8xf32>
    "tpu.trace_start"() <{level = 10 : i32, message = "bqk,bkd->bqd"}> : () -> ()
    %cst_28 = arith.constant dense<0.000000e+00> : vector<2x8x32xf32>
    %75 = tpu.matmul %74, %63, %cst_28 {dimension_numbers = #tpu.dot_dimension_numbers<[2], [1], [1], [2], [0, 0, 0, 1, 1, 2], [0], [0]>} : vector<2x8x8xf32>, vector<2x8x32xf32>, vector<2x8x32xf32> -> vector<2x8x32xf32>
    "tpu.trace_stop"() : () -> ()
    %76 = vector.shape_cast %75 : vector<2x8x32xf32> to vector<16x32xf32>
    %c32 = arith.constant 32 : index
    %c0_29 = arith.constant 0 : index
    %77 = vector.load %arg6[%c32, %c0_29] : memref<128x128xf32, #tpu.memory_space<vmem>>, vector<32x128xf32>
    %cst_30 = arith.constant dense<0.000000e+00> : vector<16x128xf32>
    %78 = tpu.matmul %76, %77, %cst_30 {dimension_numbers = #tpu.dot_dimension_numbers<[1], [0], [0], [1], [0, 0, 1, 1], [], []>} : vector<16x32xf32>, vector<32x128xf32>, vector<16x128xf32> -> vector<16x128xf32>
    %79 = arith.addf %55, %78 : vector<16x128xf32>
    %80 = vector.extract_strided_slice %30 {offsets = [0, 64], sizes = [16, 32], strides = [1, 1]} : vector<16x384xf32> to vector<16x32xf32>
    %cst_31 = arith.constant 0.176776692 : f32
    %81 = vector.broadcast %cst_31 : f32 to vector<16x32xf32>
    %82 = arith.mulf %80, %81 : vector<16x32xf32>
    %83 = vector.shape_cast %82 : vector<16x32xf32> to vector<2x8x32xf32>
    %84 = vector.extract_strided_slice %30 {offsets = [0, 192], sizes = [16, 32], strides = [1, 1]} : vector<16x384xf32> to vector<16x32xf32>
    %85 = vector.shape_cast %84 : vector<16x32xf32> to vector<2x8x32xf32>
    %86 = vector.extract_strided_slice %30 {offsets = [0, 320], sizes = [16, 32], strides = [1, 1]} : vector<16x384xf32> to vector<16x32xf32>
    %87 = vector.shape_cast %86 : vector<16x32xf32> to vector<2x8x32xf32>
    "tpu.trace_start"() <{level = 10 : i32, message = "bqd,bkd->bqk"}> : () -> ()
    %cst_32 = arith.constant dense<0.000000e+00> : vector<2x8x8xf32>
    %88 = tpu.matmul %83, %85, %cst_32 {dimension_numbers = #tpu.dot_dimension_numbers<[2], [2], [1], [1], [0, 0, 0, 1, 1, 1], [0], [0]>} : vector<2x8x32xf32>, vector<2x8x32xf32>, vector<2x8x8xf32> -> vector<2x8x8xf32>
    "tpu.trace_stop"() : () -> ()
    %cst_33 = arith.constant dense<0xFF800000> : vector<2x8xf32>
    %89 = vector.multi_reduction <maximumf>, %88, %cst_33 [2] : vector<2x8x8xf32> to vector<2x8xf32>
    %90 = vector.shape_cast %89 : vector<2x8xf32> to vector<2x8x1xf32>
    %91 = vector.broadcast %90 : vector<2x8x1xf32> to vector<2x8x8xf32>
    %92 = arith.subf %88, %91 : vector<2x8x8xf32>
    %93 = math.exp %92 : vector<2x8x8xf32>
    %cst_34 = arith.constant dense<0.000000e+00> : vector<2x8xf32>
    %94 = vector.multi_reduction <add>, %93, %cst_34 [2] : vector<2x8x8xf32> to vector<2x8xf32>
    %95 = vector.shape_cast %94 : vector<2x8xf32> to vector<2x8x1xf32>
    %96 = tpu.reciprocal %95 {approx = true} : vector<2x8x1xf32> -> vector<2x8x1xf32>
    %97 = vector.broadcast %96 : vector<2x8x1xf32> to vector<2x8x8xf32>
    %98 = arith.mulf %93, %97 : vector<2x8x8xf32>
    "tpu.trace_start"() <{level = 10 : i32, message = "bqk,bkd->bqd"}> : () -> ()
    %cst_35 = arith.constant dense<0.000000e+00> : vector<2x8x32xf32>
    %99 = tpu.matmul %98, %87, %cst_35 {dimension_numbers = #tpu.dot_dimension_numbers<[2], [1], [1], [2], [0, 0, 0, 1, 1, 2], [0], [0]>} : vector<2x8x8xf32>, vector<2x8x32xf32>, vector<2x8x32xf32> -> vector<2x8x32xf32>
    "tpu.trace_stop"() : () -> ()
    %100 = vector.shape_cast %99 : vector<2x8x32xf32> to vector<16x32xf32>
    %c64 = arith.constant 64 : index
    %c0_36 = arith.constant 0 : index
    %101 = vector.load %arg6[%c64, %c0_36] : memref<128x128xf32, #tpu.memory_space<vmem>>, vector<32x128xf32>
    %cst_37 = arith.constant dense<0.000000e+00> : vector<16x128xf32>
    %102 = tpu.matmul %100, %101, %cst_37 {dimension_numbers = #tpu.dot_dimension_numbers<[1], [0], [0], [1], [0, 0, 1, 1], [], []>} : vector<16x32xf32>, vector<32x128xf32>, vector<16x128xf32> -> vector<16x128xf32>
    %103 = arith.addf %79, %102 : vector<16x128xf32>
    %104 = vector.extract_strided_slice %30 {offsets = [0, 96], sizes = [16, 32], strides = [1, 1]} : vector<16x384xf32> to vector<16x32xf32>
    %cst_38 = arith.constant 0.176776692 : f32
    %105 = vector.broadcast %cst_38 : f32 to vector<16x32xf32>
    %106 = arith.mulf %104, %105 : vector<16x32xf32>
    %107 = vector.shape_cast %106 : vector<16x32xf32> to vector<2x8x32xf32>
    %108 = vector.extract_strided_slice %30 {offsets = [0, 224], sizes = [16, 32], strides = [1, 1]} : vector<16x384xf32> to vector<16x32xf32>
    %109 = vector.shape_cast %108 : vector<16x32xf32> to vector<2x8x32xf32>
    %110 = vector.extract_strided_slice %30 {offsets = [0, 352], sizes = [16, 32], strides = [1, 1]} : vector<16x384xf32> to vector<16x32xf32>
    %111 = vector.shape_cast %110 : vector<16x32xf32> to vector<2x8x32xf32>
    "tpu.trace_start"() <{level = 10 : i32, message = "bqd,bkd->bqk"}> : () -> ()
    %cst_39 = arith.constant dense<0.000000e+00> : vector<2x8x8xf32>
    %112 = tpu.matmul %107, %109, %cst_39 {dimension_numbers = #tpu.dot_dimension_numbers<[2], [2], [1], [1], [0, 0, 0, 1, 1, 1], [0], [0]>} : vector<2x8x32xf32>, vector<2x8x32xf32>, vector<2x8x8xf32> -> vector<2x8x8xf32>
    "tpu.trace_stop"() : () -> ()
    %cst_40 = arith.constant dense<0xFF800000> : vector<2x8xf32>
    %113 = vector.multi_reduction <maximumf>, %112, %cst_40 [2] : vector<2x8x8xf32> to vector<2x8xf32>
    %114 = vector.shape_cast %113 : vector<2x8xf32> to vector<2x8x1xf32>
    %115 = vector.broadcast %114 : vector<2x8x1xf32> to vector<2x8x8xf32>
    %116 = arith.subf %112, %115 : vector<2x8x8xf32>
    %117 = math.exp %116 : vector<2x8x8xf32>
    %cst_41 = arith.constant dense<0.000000e+00> : vector<2x8xf32>
    %118 = vector.multi_reduction <add>, %117, %cst_41 [2] : vector<2x8x8xf32> to vector<2x8xf32>
    %119 = vector.shape_cast %118 : vector<2x8xf32> to vector<2x8x1xf32>
    %120 = tpu.reciprocal %119 {approx = true} : vector<2x8x1xf32> -> vector<2x8x1xf32>
    %121 = vector.broadcast %120 : vector<2x8x1xf32> to vector<2x8x8xf32>
    %122 = arith.mulf %117, %121 : vector<2x8x8xf32>
    "tpu.trace_start"() <{level = 10 : i32, message = "bqk,bkd->bqd"}> : () -> ()
    %cst_42 = arith.constant dense<0.000000e+00> : vector<2x8x32xf32>
    %123 = tpu.matmul %122, %111, %cst_42 {dimension_numbers = #tpu.dot_dimension_numbers<[2], [1], [1], [2], [0, 0, 0, 1, 1, 2], [0], [0]>} : vector<2x8x8xf32>, vector<2x8x32xf32>, vector<2x8x32xf32> -> vector<2x8x32xf32>
    "tpu.trace_stop"() : () -> ()
    %124 = vector.shape_cast %123 : vector<2x8x32xf32> to vector<16x32xf32>
    %c96 = arith.constant 96 : index
    %c0_43 = arith.constant 0 : index
    %125 = vector.load %arg6[%c96, %c0_43] : memref<128x128xf32, #tpu.memory_space<vmem>>, vector<32x128xf32>
    %cst_44 = arith.constant dense<0.000000e+00> : vector<16x128xf32>
    %126 = tpu.matmul %124, %125, %cst_44 {dimension_numbers = #tpu.dot_dimension_numbers<[1], [0], [0], [1], [0, 0, 1, 1], [], []>} : vector<16x32xf32>, vector<32x128xf32>, vector<16x128xf32> -> vector<16x128xf32>
    %127 = arith.addf %103, %126 : vector<16x128xf32>
    %128 = arith.addf %1, %127 : vector<16x128xf32>
    %c0_45 = arith.constant 0 : index
    %c0_46 = arith.constant 0 : index
    %129 = vector.load %arg7[%c0_45, %c0_46] : memref<1x128xf32, #tpu.memory_space<vmem>>, vector<1x128xf32>
    %130 = vector.broadcast %129 : vector<1x128xf32> to vector<16x128xf32>
    %131 = arith.addf %128, %130 : vector<16x128xf32>
    %cst_47 = arith.constant dense<0.000000e+00> : vector<16xf32>
    %132 = vector.multi_reduction <add>, %131, %cst_47 [1] : vector<16x128xf32> to vector<16xf32>
    %133 = vector.shape_cast %132 : vector<16xf32> to vector<16x1xf32>
    %cst_48 = arith.constant 1.280000e+02 : f32
    %134 = vector.broadcast %cst_48 : f32 to vector<16x1xf32>
    %135 = arith.divf %133, %134 : vector<16x1xf32>
    %136 = arith.mulf %131, %131 : vector<16x128xf32>
    %cst_49 = arith.constant dense<0.000000e+00> : vector<16xf32>
    %137 = vector.multi_reduction <add>, %136, %cst_49 [1] : vector<16x128xf32> to vector<16xf32>
    %138 = vector.shape_cast %137 : vector<16xf32> to vector<16x1xf32>
    %cst_50 = arith.constant 1.280000e+02 : f32
    %139 = vector.broadcast %cst_50 : f32 to vector<16x1xf32>
    %140 = arith.divf %138, %139 : vector<16x1xf32>
    %141 = arith.mulf %135, %135 : vector<16x1xf32>
    %142 = arith.subf %140, %141 : vector<16x1xf32>
    %143 = vector.broadcast %135 : vector<16x1xf32> to vector<16x128xf32>
    %144 = arith.subf %131, %143 : vector<16x128xf32>
    %cst_51 = arith.constant 9.99999974E-6 : f32
    %145 = vector.broadcast %cst_51 : f32 to vector<16x1xf32>
    %146 = arith.addf %142, %145 : vector<16x1xf32>
    %147 = math.rsqrt %146 : vector<16x1xf32>
    %148 = vector.broadcast %147 : vector<16x1xf32> to vector<16x128xf32>
    %149 = arith.mulf %144, %148 : vector<16x128xf32>
    %c0_52 = arith.constant 0 : index
    %c0_53 = arith.constant 0 : index
    %150 = vector.load %arg8[%c0_52, %c0_53] : memref<1x128xf32, #tpu.memory_space<vmem>>, vector<1x128xf32>
    %151 = vector.broadcast %150 : vector<1x128xf32> to vector<16x128xf32>
    %152 = arith.mulf %149, %151 : vector<16x128xf32>
    %c0_54 = arith.constant 0 : index
    %c0_55 = arith.constant 0 : index
    %153 = vector.load %arg9[%c0_54, %c0_55] : memref<1x128xf32, #tpu.memory_space<vmem>>, vector<1x128xf32>
    %154 = vector.broadcast %153 : vector<1x128xf32> to vector<16x128xf32>
    %155 = arith.addf %152, %154 : vector<16x128xf32>
    %c0_56 = arith.constant 0 : index
    %c0_57 = arith.constant 0 : index
    %156 = vector.load %arg13[%c0_56, %c0_57] : memref<1x128xf32, #tpu.memory_space<vmem>>, vector<1x128xf32>
    %157 = vector.broadcast %156 : vector<1x128xf32> to vector<16x128xf32>
    %158 = arith.addf %131, %157 : vector<16x128xf32>
    %c0_58 = arith.constant 0 : index
    %c0_59 = arith.constant 0 : index
    %159 = vector.load %arg10[%c0_58, %c0_59] : memref<128x512xf32, #tpu.memory_space<vmem>>, vector<128x512xf32>
    %cst_60 = arith.constant dense<0.000000e+00> : vector<16x512xf32>
    %160 = tpu.matmul %155, %159, %cst_60 {dimension_numbers = #tpu.dot_dimension_numbers<[1], [0], [0], [1], [0, 0, 1, 1], [], []>} : vector<16x128xf32>, vector<128x512xf32>, vector<16x512xf32> -> vector<16x512xf32>
    %c0_61 = arith.constant 0 : index
    %c0_62 = arith.constant 0 : index
    %161 = vector.load %arg11[%c0_61, %c0_62] : memref<1x512xf32, #tpu.memory_space<vmem>>, vector<1x512xf32>
    %162 = vector.broadcast %161 : vector<1x512xf32> to vector<16x512xf32>
    %163 = arith.addf %160, %162 : vector<16x512xf32>
    %cst_63 = arith.constant 5.000000e-01 : f32
    %164 = vector.broadcast %cst_63 : f32 to vector<16x512xf32>
    %165 = arith.mulf %164, %163 : vector<16x512xf32>
    %cst_64 = arith.constant 0.707106769 : f32
    %166 = vector.broadcast %cst_64 : f32 to vector<16x512xf32>
    %167 = arith.mulf %163, %166 : vector<16x512xf32>
    %168 = math.erf %167 : vector<16x512xf32>
    %cst_65 = arith.constant 1.000000e+00 : f32
    %169 = vector.broadcast %cst_65 : f32 to vector<16x512xf32>
    %170 = arith.addf %169, %168 : vector<16x512xf32>
    %171 = arith.mulf %165, %170 : vector<16x512xf32>
    %c0_66 = arith.constant 0 : index
    %c0_67 = arith.constant 0 : index
    %172 = vector.load %arg12[%c0_66, %c0_67] : memref<512x128xf32, #tpu.memory_space<vmem>>, vector<512x128xf32>
    %cst_68 = arith.constant dense<0.000000e+00> : vector<16x128xf32>
    %173 = tpu.matmul %171, %172, %cst_68 {dimension_numbers = #tpu.dot_dimension_numbers<[1], [0], [0], [1], [0, 0, 1, 1], [], []>} : vector<16x512xf32>, vector<512x128xf32>, vector<16x128xf32> -> vector<16x128xf32>
    %174 = arith.addf %158, %173 : vector<16x128xf32>
    %175 = vector.shape_cast %174 : vector<16x128xf32> to vector<2x8x128xf32>
    %c0_69 = arith.constant 0 : index
    %c0_70 = arith.constant 0 : index
    %c0_71 = arith.constant 0 : index
    %176 = vector.load %arg14[%c0_69, %c0_70, %c0_71] : memref<2x8x128xf32, #tpu.memory_space<vmem>>, vector<2x8x128xf32>
    tpu.vector_store %arg14[%c0_69, %c0_70, %c0_71], %175 {strides = array<i32>} : memref<2x8x128xf32, #tpu.memory_space<vmem>>, vector<2x8x128xf32>,
    return
  }
  func.func @transform_0(%arg0: i32) -> (i32, i32, i32) {
    %c0_i32 = arith.constant 0 : i32
    %c0_i32_0 = arith.constant 0 : i32
    %c0_i32_1 = arith.constant 0 : i32
    return %arg0, %c0_i32, %c0_i32_0 : i32, i32, i32
  }
  func.func @transform_1(%arg0: i32) -> (i32, i32) {
    %c0_i32 = arith.constant 0 : i32
    %c0_i32_0 = arith.constant 0 : i32
    %c0_i32_1 = arith.constant 0 : i32
    return %c0_i32, %c0_i32_0 : i32, i32
  }
  func.func @transform_2(%arg0: i32) -> (i32, i32) {
    %c0_i32 = arith.constant 0 : i32
    %c0_i32_0 = arith.constant 0 : i32
    %c0_i32_1 = arith.constant 0 : i32
    return %c0_i32, %c0_i32_0 : i32, i32
  }
  func.func @transform_3(%arg0: i32) -> (i32, i32) {
    %c0_i32 = arith.constant 0 : i32
    %c0_i32_0 = arith.constant 0 : i32
    %c0_i32_1 = arith.constant 0 : i32
    return %c0_i32, %c0_i32_0 : i32, i32
  }
  func.func @transform_4(%arg0: i32) -> (i32, i32) {
    %c0_i32 = arith.constant 0 : i32
    %c0_i32_0 = arith.constant 0 : i32
    %c0_i32_1 = arith.constant 0 : i32
    return %c0_i32, %c0_i32_0 : i32, i32
  }
  func.func @transform_5(%arg0: i32) -> (i32, i32) {
    %c0_i32 = arith.constant 0 : i32
    %c0_i32_0 = arith.constant 0 : i32
    %c0_i32_1 = arith.constant 0 : i32
    return %c0_i32, %c0_i32_0 : i32, i32
  }
  func.func @transform_6(%arg0: i32) -> (i32, i32) {
    %c0_i32 = arith.constant 0 : i32
    %c0_i32_0 = arith.constant 0 : i32
    %c0_i32_1 = arith.constant 0 : i32
    return %c0_i32, %c0_i32_0 : i32, i32
  }
  func.func @transform_7(%arg0: i32) -> (i32, i32) {
    %c0_i32 = arith.constant 0 : i32
    %c0_i32_0 = arith.constant 0 : i32
    %c0_i32_1 = arith.constant 0 : i32
    return %c0_i32, %c0_i32_0 : i32, i32
  }
  func.func @transform_8(%arg0: i32) -> (i32, i32) {
    %c0_i32 = arith.constant 0 : i32
    %c0_i32_0 = arith.constant 0 : i32
    %c0_i32_1 = arith.constant 0 : i32
    return %c0_i32, %c0_i32_0 : i32, i32
  }
  func.func @transform_9(%arg0: i32) -> (i32, i32) {
    %c0_i32 = arith.constant 0 : i32
    %c0_i32_0 = arith.constant 0 : i32
    %c0_i32_1 = arith.constant 0 : i32
    return %c0_i32, %c0_i32_0 : i32, i32
  }
  func.func @transform_10(%arg0: i32) -> (i32, i32) {
    %c0_i32 = arith.constant 0 : i32
    %c0_i32_0 = arith.constant 0 : i32
    %c0_i32_1 = arith.constant 0 : i32
    return %c0_i32, %c0_i32_0 : i32, i32
  }
  func.func @transform_11(%arg0: i32) -> (i32, i32) {
    %c0_i32 = arith.constant 0 : i32
    %c0_i32_0 = arith.constant 0 : i32
    %c0_i32_1 = arith.constant 0 : i32
    return %c0_i32, %c0_i32_0 : i32, i32
  }
  func.func @transform_12(%arg0: i32) -> (i32, i32) {
    %c0_i32 = arith.constant 0 : i32
    %c0_i32_0 = arith.constant 0 : i32
    %c0_i32_1 = arith.constant 0 : i32
    return %c0_i32, %c0_i32_0 : i32, i32
  }
  func.func @transform_13(%arg0: i32) -> (i32, i32, i32) {
    %c0_i32 = arith.constant 0 : i32
    %c0_i32_0 = arith.constant 0 : i32
    %c0_i32_1 = arith.constant 0 : i32
    return %arg0, %c0_i32, %c0_i32_0 : i32, i32, i32
  }
}

</mosaic_0001>

<bundles_post_ra>
// kernel: tpu_custom_call.1
= control target key start
LH: loop header
LB: loop body
LE: loop exit
PB: predicated region body
PF: predicated region fallthrough
CT: control target
= control target key end

     0   :  { %s4892_s0 = inlined_call_operand.hbm [shape: f32[4,8,128], index: 0, kind: input, shape index: {}]   ;;  %s4893_s1 = inlined_call_operand.hbm [shape: f32[1,128], index: 1, kind: input, shape index: {}]   ;;  %s4894_s2 = inlined_call_operand.hbm [shape: f32[1,128], index: 2, kind: input, shape index: {}]   ;;  %s4895_s3 = inlined_call_operand.hbm [shape: f32[128,384], index: 3, kind: input, shape index: {}]   ;;  %s4896_s4 = inlined_call_operand.vmem [shape: f32[1,384], index: 4, kind: input, shape index: {}]   ;;  %s4897_s5 = inlined_call_operand.hbm [shape: f32[128,128], index: 5, kind: input, shape index: {}]   ;;  %s4898_s6 = inlined_call_operand.vmem [shape: f32[1,128], index: 6, kind: input, shape index: {}]   ;;  %s4899_s7 = inlined_call_operand.vmem [shape: f32[1,128], index: 7, kind: input, shape index: {}]   ;;  %s4900_s8 = inlined_call_operand.vmem [shape: f32[1,128], index: 8, kind: input, shape index: {}]   ;;  %s4901_s9 = inlined_call_operand.hbm [shape: f32[128,512], index: 9, kind: input, shape index: {}]   ;;  %s4902_s10 = inlined_call_operand.vmem [shape: f32[1,512], index: 10, kind: input, shape index: {}]   ;;  %s4903_s11 = inlined_call_operand.hbm [shape: f32[512,128], index: 11, kind: input, shape index: {}]   ;;  %s4904_s12 = inlined_call_operand.vmem [shape: f32[1,128], index: 12, kind: input, shape index: {}]   ;;  %s4905_s13 = inlined_call_operand.hbm [shape: f32[4,8,128], index: 13, kind: output, shape index: {}]  }
   0x1   :  { %4910 = sst [smem:[#allocation20_spill]] %s4893_s1 }
   0x2   :  { %4911 = sst [smem:[#allocation21_spill]] %s4895_s3 }
   0x3   :  { %4912 = sst [smem:[#allocation22_spill]] %s4899_s7 }
   0x4   :  { %4913 = sst [smem:[#allocation23_spill]] %s4900_s8 }
   0x5   :  { %4914 = sst [smem:[#allocation24_spill]] %s4902_s10 }
   0x6   :  { %4915 = sst [smem:[#allocation25_spill]] %s4904_s12 }
   0x7   :  { %4916 = sst [smem:[#allocation26_spill]] %s4905_s13 }
   0x8   :  { %18 = vsyncpa [#allocation3], 0 }
   0x9   :  { %20 = vsyncpa [#allocation3 + $0x1], 0 }
   0xa   :  { %21 = vsyncpa [#allocation6], 0 }
   0xb   :  { %22 = vsyncpa [#allocation9], 0 }
   0xc   :  { %23 = vsyncpa [#allocation12], 0 }
   0xd   :  { %24 = vsyncpa [#allocation4], 0 }
   0xe   :  { %26 = vsyncpa [#allocation4 + $0x1], 0  ;;  %s4324_s25 = smov 0   ;;  %s4326_s26 = smov 0  }
   0xf   :  { %s4328_s27 = smov 0   ;;  %s4330_s28 = smov 0  }
  0x10 LB: > { %s4233_s29 = smov [#allocation5]   ;;  %s4345_s14 = sadd.s32 4294967295, %s4231_s28   ;;  %s4231_s28 = sphi %s4330_s28, %s4946_s28   ;;  %s4227_s27 = sphi %s4328_s27, %s4945_s27   ;;  %s4223_s26 = sphi %s4326_s26, %s4944_s26   ;;  %s4219_s25 = sphi %s4324_s25, %s4943_s25  }
  0x11   : > { %s354_s30 = sshll.u32 %s4233_s29, 4  ;;  %p3175_p0 = scmp.ge.s32.totalorder %s4231_s28, 1  ;;  %s4350_s30 = int_to_ptr.vmem [resolvable:$true] %s354_s30 }
  0x12   : > { %p4907_p1 = scmp.eq.s32.totalorder %s4345_s14, 0  ;;  %p341_p2 = scmp.lt.s32.totalorder %s4231_s28, 3 }
  0x13   : > { %s4234_s16 = smov [#allocation8]   ;;  %s4235_s19 = smov [#allocation11]  }
  0x14   : > { %p4352_p3 = pnand %p3175_p0, %p341_p2  ;;  %s375_s17 = sshll.u32 %s4234_s16, 4  ;;  %s4359_s17 = int_to_ptr.vmem [resolvable:$true] %s375_s17 }
  0x15   : > { %s413_s20 = sshll.u32 %s4235_s19, 4  ;;  %s4919_s1 = sld [smem:[#allocation20_spill]]  ;;  %s4367_s20 = int_to_ptr.vmem [resolvable:$true] %s413_s20 }
  0x16   : > { %s4917_s15 = scalar_select %p4352_p3, 1, 0 }
  0x17   : > { %p3807_p5 = pneg %p4352_p3 }
  0x19   : > { %p4363_p6 = pnand %p3807_p5, %p4907_p1 }
  0x1b   : > { %s3955_s23 = scalar_lea.hbm %s4919_s1, 16  ;;  %p4377_p8 = pneg %p4363_p6 }
  0x1c   : > { %p3956_p7 = scmp.ne.s32.totalorder %s4919_s1, %s3955_s23  ;;  %p3962_p11 = scmp.lt.u32.totalorder %s3955_s23, %s4919_s1 }
  0x1e   : > { %p3958_p9 = pnand %p4377_p8, %p3956_p7 }
  0x20   : > { %p3959_p10 = pneg %p3958_p9 }
  0x22   : > { %p3964_p12 = pnand %p3962_p11, %p3959_p10 }
  0x24   : > { %3967 = shalt.err (!%p3964_p12)
}
  0x25   : > { %s3968_s21 = scalar_lea.vmem %s4350_s30, 16  ;;  %s3975_s22 = scalar_lea.vmem %s4350_s30, 32 }
  0x26   : > { %p3969_p13 = scmp.ne.s32.totalorder %s4350_s30, %s3968_s21  ;;  %p3976_p5 = scmp.lt.s32.totalorder %s4350_s30, %s4350_s30 }
  0x27   : > { %p3977_p7 = scmp.lt.s32.totalorder %s3975_s22, %s3968_s21 }
  0x28   : > { %p3971_p0 = pnand %p3969_p13, %p4377_p8 }
  0x29   : > { %p3978_p9 = por %p3977_p7, %p3976_p5 }
  0x2a   : > { %p3972_p2 = pneg %p3971_p0 }
  0x2c   : > { %p3979_p4 = pnand %p3978_p9, %p3972_p2 }
  0x2e   : > { %3982 = shalt.err (!%p3979_p4)
}
  0x2f   : > { %3810 = dma.hbm_to_vmem [thread:$0]  (!%p4363_p6), %s4919_s1, 16, %s4350_s30, [#allocation6]  }
  0x30   : > { %s4921_s3 = sld [smem:[#allocation21_spill]] }
  0x36   : > { %s3983_s19 = scalar_lea.hbm %s4921_s3, 6144 }
  0x37   : > { %p3984_p10 = scmp.ne.s32.totalorder %s4921_s3, %s3983_s19  ;;  %p3990_p4 = scmp.lt.u32.totalorder %s3983_s19, %s4921_s3 }
  0x39   : > { %p3986_p11 = pnand %p3984_p10, %p4377_p8 }
  0x3b   : > { %p3987_p12 = pneg %p3986_p11 }
  0x3d   : > { %p3992_p13 = pnand %p3990_p4, %p3987_p12 }
  0x3f   : > { %3995 = shalt.err (!%p3992_p13)
}
  0x40   : > { %s3996_s30 = scalar_lea.vmem %s4359_s17, 6144  ;;  %p4004_p7 = scmp.lt.s32.totalorder %s4359_s17, %s4359_s17 }
  0x41   : > { %p3997_p0 = scmp.ne.s32.totalorder %s4359_s17, %s3996_s30  ;;  %p4005_p9 = scmp.lt.s32.totalorder %s3996_s30, %s3996_s30 }
  0x43   : > { %p3999_p2 = pnand %p3997_p0, %p4377_p8  ;;  %p4006_p10 = por %p4005_p9, %p4004_p7 }
  0x45   : > { %p4000_p5 = pneg %p3999_p2 }
  0x47   : > { %p4007_p11 = pnand %p4006_p10, %p4000_p5 }
  0x49   : > { %4010 = shalt.err (!%p4007_p11)
}
  0x4a   : > { %s4236_s10 = smov 384   ;;  %s4237_s12 = smov 24  }
  0x4b   : > { %3816 = dma.hbm_to_vmem [thread:$0]  (!%p4363_p6), %s4921_s3, 6144, %s4359_s17, [#allocation9], %s4236_s10, %s4236_s10, %s4237_s12  }
  0x4c   : > { %s4011_s19 = scalar_lea.hbm %s4901_s9, 8192 }
  0x4d   : > { %p4012_p12 = scmp.ne.s32.totalorder %s4901_s9, %s4011_s19  ;;  %p4018_p0 = scmp.lt.u32.totalorder %s4011_s19, %s4901_s9 }
  0x4f   : > { %p4014_p4 = pnand %p4012_p12, %p4377_p8 }
  0x51   : > { %p4015_p13 = pneg %p4014_p4 }
  0x53   : > { %p4020_p2 = pnand %p4018_p0, %p4015_p13 }
  0x55   : > { %4023 = shalt.err (!%p4020_p2)
}
  0x56   : > { %s4024_s17 = scalar_lea.vmem %s4367_s20, 8192  ;;  %p4032_p10 = scmp.lt.s32.totalorder %s4367_s20, %s4367_s20 }
  0x57   : > { %p4025_p5 = scmp.ne.s32.totalorder %s4367_s20, %s4024_s17  ;;  %p4033_p11 = scmp.lt.s32.totalorder %s4024_s17, %s4024_s17 }
  0x59   : > { %p4027_p7 = pnand %p4025_p5, %p4377_p8  ;;  %p4034_p12 = por %p4033_p11, %p4032_p10 }
  0x5b   : > { %p4028_p9 = pneg %p4027_p7 }
  0x5d   : > { %p4035_p4 = pnand %p4034_p12, %p4028_p9 }
  0x5f   : > { %4038 = shalt.err (!%p4035_p4)
}
  0x60   : > { %s4238_s10 = smov 512   ;;  %s4239_s1 = smov 32  }
  0x61   : > { %3822 = dma.hbm_to_vmem [thread:$0]  (!%p4363_p6), %s4901_s9, 8192, %s4367_s20, [#allocation12], %s4238_s10, %s4238_s10, %s4239_s1  }
  0x62   : > { %s4240_s23 = smov [#allocation7]   ;;  %s4241_s29 = smov [#allocation10]  }
  0x63   : > { %s365_s24 = sshll.u32 %s4240_s23, 4  ;;  %s391_s19 = sshll.u32 %s4241_s29, 4  ;;  %s366_s24 = int_to_ptr.vmem [resolvable:$true] %s365_s24  ;;  %s392_s19 = int_to_ptr.vmem [resolvable:$true] %s391_s19 }
  0x64   : > { %s4039_s30 = scalar_lea.hbm %s4894_s2, 16 }
  0x65   : > { %p4040_p13 = scmp.ne.s32.totalorder %s4894_s2, %s4039_s30  ;;  %p4046_p5 = scmp.lt.u32.totalorder %s4039_s30, %s4894_s2 }
  0x67   : > { %p4042_p0 = pnand %p4040_p13, %p4377_p8 }
  0x69   : > { %p4043_p2 = pneg %p4042_p0 }
  0x6b   : > { %p4048_p7 = pnand %p4046_p5, %p4043_p2 }
  0x6d   : > { %4051 = shalt.err (!%p4048_p7)
}
  0x6e   : > { %s4052_s20 = scalar_lea.vmem %s366_s24, 16  ;;  %s4059_s10 = scalar_lea.vmem %s366_s24, 32 }
  0x6f   : > { %p4053_p9 = scmp.ne.s32.totalorder %s366_s24, %s4052_s20  ;;  %p4060_p12 = scmp.lt.s32.totalorder %s366_s24, %s366_s24 }
  0x70   : > { %p4061_p4 = scmp.lt.s32.totalorder %s4059_s10, %s4052_s20 }
  0x71   : > { %p4055_p10 = pnand %p4053_p9, %p4377_p8 }
  0x72   : > { %p4062_p1 = por %p4061_p4, %p4060_p12 }
  0x73   : > { %p4056_p11 = pneg %p4055_p10 }
  0x75   : > { %p4063_p3 = pnand %p4062_p1, %p4056_p11 }
  0x77   : > { %4066 = shalt.err (!%p4063_p3)
}
  0x78   : > { %3813 = dma.hbm_to_vmem [thread:$0]  (!%p4363_p6), %s4894_s2, 16, %s366_s24, [#allocation6]  }
  0x79   : > { %s4067_s12 = scalar_lea.hbm %s4897_s5, 2048 }
  0x7a   : > { %p4068_p13 = scmp.ne.s32.totalorder %s4897_s5, %s4067_s12  ;;  %p4074_p3 = scmp.lt.u32.totalorder %s4067_s12, %s4897_s5 }
  0x7c   : > { %p4070_p0 = pnand %p4068_p13, %p4377_p8 }
  0x7e   : > { %p4071_p1 = pneg %p4070_p0 }
  0x80   : > { %p4076_p2 = pnand %p4074_p3, %p4071_p1 }
  0x82   : > { %4079 = shalt.err (!%p4076_p2)
}
  0x83   : > { %s4080_s22 = scalar_lea.vmem %s392_s19, 2048  ;;  %p4088_p10 = scmp.lt.s32.totalorder %s392_s19, %s392_s19 }
  0x84   : > { %p4081_p5 = scmp.ne.s32.totalorder %s392_s19, %s4080_s22  ;;  %p4089_p11 = scmp.lt.s32.totalorder %s4080_s22, %s4080_s22 }
  0x86   : > { %p4083_p7 = pnand %p4081_p5, %p4377_p8  ;;  %p4090_p12 = por %p4089_p11, %p4088_p10 }
  0x88   : > { %p4084_p9 = pneg %p4083_p7 }
  0x8a   : > { %p4091_p4 = pnand %p4090_p12, %p4084_p9 }
  0x8c   : > { %4094 = shalt.err (!%p4091_p4)
}
  0x8d   : > { %s4242_s24 = smov 128   ;;  %s4243_s30 = smov 8  }
  0x8e   : > { %3819 = dma.hbm_to_vmem [thread:$0]  (!%p4363_p6), %s4897_s5, 2048, %s392_s19, [#allocation9], %s4242_s24, %s4242_s24, %s4243_s30  }
  0x8f   : > { %s4244_s10 = smov [#allocation13]   ;;  %s4095_s8 = scalar_lea.hbm %s4903_s11, 8192 }
  0x90   : > { %s429_s3 = sshll.u32 %s4244_s10, 4  ;;  %p4096_p13 = scmp.ne.s32.totalorder %s4903_s11, %s4095_s8  ;;  %s430_s3 = int_to_ptr.vmem [resolvable:$true] %s429_s3 }
  0x91   : > { %p4102_p3 = scmp.lt.u32.totalorder %s4095_s8, %s4903_s11 }
  0x92   : > { %p4098_p0 = pnand %p4096_p13, %p4377_p8 }
  0x94   : > { %p4099_p1 = pneg %p4098_p0 }
  0x96   : > { %p4104_p2 = pnand %p4102_p3, %p4099_p1 }
  0x98   : > { %4107 = shalt.err (!%p4104_p2)
}
  0x99   : > { %s4108_s19 = scalar_lea.vmem %s430_s3, 8192  ;;  %p4116_p10 = scmp.lt.s32.totalorder %s430_s3, %s430_s3 }
  0x9a   : > { %p4109_p5 = scmp.ne.s32.totalorder %s430_s3, %s4108_s19  ;;  %p4117_p11 = scmp.lt.s32.totalorder %s4108_s19, %s4108_s19 }
  0x9c   : > { %p4111_p7 = pnand %p4109_p5, %p4377_p8  ;;  %p4118_p12 = por %p4117_p11, %p4116_p10 }
  0x9e   : > { %p4112_p9 = pneg %p4111_p7 }
  0xa0   : > { %p4119_p4 = pnand %p4118_p12, %p4112_p9 }
  0xa2   : > { %4122 = shalt.err (!%p4119_p4)
}
  0xa3   : > { %3825 = dma.hbm_to_vmem [thread:$0]  (!%p4363_p6), %s4903_s11, 8192, %s430_s3, [#allocation12], %s4242_s24, %s4242_s24, %s4243_s30  }
  0xa4   : > { %s3174_s18 = sadd.s32 4294967294, %s4231_s28   ;;  %s4507_s16 = sadd.s32 1, %s4231_s28  }
  0xa5   : > { %s36_s17 = ssub.s32 %s4231_s28, %s4507_s16  ;;  %s39_s20 = sadd.s32 1, %s4227_s27 }
  0xa6   : > { %p37_p8 = scmp.eq.s32.totalorder %s36_s17, 0  ;;  %p46_p13 = scmp.ne.s32.totalorder %s4227_s27, %s4223_s26 }
  0xa7   : > { %p47_p0 = scmp.eq.s32.totalorder %s4231_s28, 0  ;;  %p52_p1 = scmp.ne.s32.totalorder %s4223_s26, %s4219_s25 }
  0xa8   : > { %s4518_s10 = scalar_select %p37_p8, %s4227_s27, %s39_s20  }
  0xa9   : > { %p4520_p3 = por %p47_p0, %p46_p13  ;;  %p4923_p2 = scmp.eq.s32.totalorder %s4345_s14, 0 }
  0xaa   : > { %p328_p5 = scmp.eq.s32.totalorder %s4345_s14, 1  ;;  %p334_p7 = scmp.eq.s32.totalorder %s3174_s18, 1 }
  0xab   : > { %p4526_p6 = por %p4923_p2, %p52_p1  ;;  %p3840_p9 = scmp.lt.s32.totalorder %s4231_s28, 2 }
  0xac   : > { %s446_s7 = sand.u32 1, %s4227_s27   ;;  %p4533_p10 = por %p328_p5, %p46_p13 }
  0xad   : > { %p4537_p11 = por %p334_p7, %p52_p1  ;;  %s3183_s13 = sshll.u32 %s446_s7, 4 }
  0xae   : > { %s4925_s8 = scalar_select %p4533_p10, 1, 0 }
  0xaf   : > { %s4926_s12 = scalar_select %p4537_p11, 1, 0 }
  0xb0   : > { %s3238_s23 = sshll.u32 %s4231_s28, 8  ;;  %s450_s22 = scalar_lea.vmem [#allocation2], %s3183_s13 }
  0xb1   : > { %s4545_s21 = scalar_lea.hbm %s4892_s0, %s3238_s23  ;;  %s457_s18 = sshll.u32 %s450_s22, 4  ;;  %s4547_s18 = int_to_ptr.vmem [resolvable:$true] %s457_s18 }
  0xb2   : > { %p4551_p12 = pnand %p3840_p9, %p4520_p3  ;;  %s4555_s20 = scalar_lea.sflag [#allocation3], %s446_s7 }
  0xb3   : > { %s4123_s29 = scalar_lea.hbm %s4545_s21, 256  ;;  %s4128_s1 = scalar_lea.hbm %s4892_s0, 512 }
  0xb4   : > { %p4124_p4 = scmp.ne.s32.totalorder %s4545_s21, %s4123_s29  ;;  %p4125_p8 = pneg %p4551_p12 }
  0xb5   : > { %p4129_p1 = scmp.lt.u32.totalorder %s4545_s21, %s4892_s0  ;;  %p4130_p3 = scmp.lt.u32.totalorder %s4128_s1, %s4123_s29 }
  0xb6   : > { %p4126_p13 = pnand %p4125_p8, %p4124_p4  ;;  %p4132_p5 = scmp.lt.u32.totalorder %s4123_s29, %s4545_s21 }
  0xb7   : > { %p4131_p2 = por %p4130_p3, %p4129_p1 }
  0xb8   : > { %p4127_p0 = pneg %p4126_p13 }
  0xb9   : > { %p4133_p7 = por %p4132_p5, %p4131_p2 }
  0xbb   : > { %p4134_p9 = pnand %p4133_p7, %p4127_p0 }
  0xbd   : > { %4137 = shalt.err (!%p4134_p9)
}
  0xbe   : > { %s4138_s7 = scalar_lea.vmem %s4547_s18, 256  ;;  %s4245_s13 = smov [#allocation2]  }
  0xbf   : > { %p4139_p4 = scmp.ne.s32.totalorder %s4547_s18, %s4138_s7  ;;  %s4143_s23 = sshll.u32 %s4245_s13, 4  ;;  %s4144_s23 = int_to_ptr.vmem [resolvable:$false] %s4143_s23 }
  0xc0   : > { %s4145_s19 = scalar_lea.vmem %s4144_s23, 512  ;;  %p4146_p10 = scmp.lt.s32.totalorder %s4547_s18, %s4144_s23 }
  0xc1   : > { %p4141_p13 = pnand %p4139_p4, %p4125_p8  ;;  %p4147_p1 = scmp.lt.s32.totalorder %s4145_s19, %s4138_s7 }
  0xc3   : > { %p4142_p11 = pneg %p4141_p13  ;;  %p4148_p3 = por %p4147_p1, %p4146_p10 }
  0xc5   : > { %p4149_p2 = pnand %p4148_p3, %p4142_p11 }
  0xc7   : > { %4152 = shalt.err (!%p4149_p2)
}
  0xc8   : > { %3829 = dma.hbm_to_vmem [thread:$0]  (!%p4551_p12), %s4545_s21, 256, %s4547_s18, %s4555_s20, %s4242_s24, %s4242_s24, %s4243_s30  }
  0xc9   : > { %p4928_p8 = scmp.ne.s32.totalorder %s4917_s15, 0 }
  0xca   : > { %s4589_s29 = sand.u32 (!%p4928_p8), 1, %s4223_s26  }
  0xcb   : > { %469 = sbr.rel (%p4928_p8) target bundleno = 3812 (0xee4), region = 72  ;;  %s3187_s1 = sshll.u32 (!%p4928_p8), %s4589_s29, 4 }
  0xcc   : > { %s472_s22 = scalar_lea.sflag (!%p4928_p8), [#allocation3], %s4589_s29  ;;  %s475_s17 = scalar_lea.vmem (!%p4928_p8), [#allocation2], %s3187_s1 }
  0xd2   : > { %4198 = dma.done.wait (%p4526_p6), %s472_s22, 256  }
  0xd3   : > { %4200 = vsyncadd (%p4526_p6), %s472_s22, 4294967040  ;;  %p4929_p10 = scmp.eq.s32.totalorder %s4345_s14, 0 }
  0xd5   : > { %4202 = dma.done.wait (%p4929_p10), [#allocation6], 32   ;;  %p4930_p11 = pmov %p4929_p10 }
  0xd6   : > { %p4931_p12 = pmov %p4929_p10 }
  0xd7   : > { %4204 = vsyncadd (%p4930_p11), [#allocation6], 4294967264 }
  0xd8   : > { %4206 = dma.done.wait (%p4931_p12), [#allocation9], 8192   ;;  %p4932_p0 = pmov %p4929_p10 }
  0xda   : > { %4208 = vsyncadd (%p4932_p0), [#allocation9], 4294959104  ;;  %p4933_p5 = pmov %p4932_p0 }
  0xdb   : > { %p4934_p7 = pmov %p4932_p0 }
  0xdc   : > { %4210 = dma.done.wait (%p4933_p5), [#allocation12], 16384  }
  0xdd   : > { %4212 = vsyncadd (%p4934_p7), [#allocation12], 4294950912  ;;  %v4611_v0 = vld [vmem:[%s475_s17 + $0x8] sm:$0xff]  ;;  %v4613_v1 = vld [vmem:[%s475_s17] sm:$0xff]  ;;  %v4246_v55 = vmov 0.0   ;;  %vm4247_vm0 = vmmov 0  }
  0xde   : > { %v592_v2 = vld [vmem:[#allocation8 + $0x8] sm:$0xff]  ;;  %548 = vadd.xlane.f32.xlu1 %v4611_v0  ;;  %546 = vadd.xlane.f32.xlu0 %v4613_v1  ;;  %v554_v3 = vmul.f32 %v4611_v0, %v4611_v0  ;;  %v553_v4 = vmul.f32 %v4613_v1, %v4613_v1  ;;  %v595_v5 = vld [vmem:[#allocation8 + $0x20] sm:$0xff]  ;;  %v594_v7 = vld [vmem:[#allocation8 + $0x18] sm:$0xff]  ;;  %vm810_vm1 = vcmask 261120   ;;  %vm963_vm2 = vcmask 64512   ;;  %s4248_s30 = smov 96  }
  0xdf   : > { %v591_v6 = vld [vmem:[#allocation8] sm:$0xff]  ;;  %v3549_v8 = vpack.c.bf16 %v595_v5, %v592_v2  ;;  %v593_v10 = vld [vmem:[#allocation8 + $0x10] sm:$0xff]  ;;  %v596_v11 = vld [vmem:[#allocation8 + $0x28] sm:$0xff]  ;;  %720 = vmatprep.mubr.f32.mxu0 %v4246_v55  ;;  %s4249_s3 = smov 64   ;;  %s4250_s21 = smov 32  }
  0xe0   : > { %v3551_v9 = vpack.c.bf16 %v594_v7, %v591_v6  ;;  %v598_v12 = vld [vmem:[#allocation8 + $0x38] sm:$0xff]  ;;  %v3581_v13 = vpack.c.bf16 %v596_v11, %v593_v10  ;;  %v601_v14 = vld [vmem:[#allocation8 + $0x50] sm:$0xff]  ;;  %v600_v17 = vld [vmem:[#allocation8 + $0x48] sm:$0xff]  ;;  %s4935_s23 = sld [smem:[#allocation22_spill]]  ;;  %s4936_s17 = sld [smem:[#allocation23_spill]] }
  0xe1   : > { %3550 = vmatprep.subr.bf16.mxu0 %v3549_v8  ;;  %v3553_v15 = vpack.c.bf16 %v601_v14, %v598_v12  ;;  %v597_v16 = vld [vmem:[#allocation8 + $0x30] sm:$0xff]  ;;  %v599_v18 = vld [vmem:[#allocation8 + $0x40] sm:$0xff]  ;;  %v602_v20 = vld [vmem:[#allocation8 + $0x58] sm:$0xff]  ;;  %s4938_s18 = sld [smem:[#allocation25_spill]]  ;;  %s541_s20 = scalar_lea.vmem [#allocation14], %s3187_s1 }
  0xe2   : > { %557 = vadd.xlane.f32.xlu1 %v554_v3  ;;  %555 = vadd.xlane.f32.xlu0 %v553_v4  ;;  %v3555_v19 = vpack.c.bf16 %v600_v17, %v597_v16  ;;  %v3585_v21 = vpack.c.bf16 %v602_v20, %v599_v18  ;;  %v604_v22 = vld [vmem:[#allocation8 + $0x68] sm:$0xff]  ;;  %v607_v23 = vld [vmem:[#allocation8 + $0x80] sm:$0xff]  ;;  %v606_v26 = vld [vmem:[#allocation8 + $0x78] sm:$0xff]  ;;  %s3044_s7 = sshll.u32 %s541_s20, 4  ;;  %s3239_s13 = sshll.u32 %s4345_s14, 8  ;;  %s4842_s7 = int_to_ptr.vmem [resolvable:$true] %s3044_s7 }
  0xe3   : > { %3552 = vmatpush1.bf16.msra.mxu0 %v3551_v9  ;;  %3582 = vmatprep.subr.bf16.mxu1 %v3581_v13  ;;  %v3557_v24 = vpack.c.bf16 %v607_v23, %v604_v22  ;;  %v603_v25 = vld [vmem:[#allocation8 + $0x60] sm:$0xff]  ;;  %v605_v27 = vld [vmem:[#allocation8 + $0x70] sm:$0xff]  ;;  %v608_v29 = vld [vmem:[#allocation8 + $0x88] sm:$0xff]  ;;  %s4939_s22 = sld [smem:[#allocation26_spill]]  ;;  %s3031_s1 = scalar_lea.sflag [#allocation4], %s4589_s29 }
  0xe4   : > { %3584 = vmatpush3.bf16.msra.mxu1 %v3581_v13  ;;  %3554 = vmatprep.subr.bf16.mxu0 %v3553_v15  ;;  %v3559_v28 = vpack.c.bf16 %v606_v26, %v603_v25  ;;  %v3589_v30 = vpack.c.bf16 %v608_v29, %v605_v27  ;;  %v610_v31 = vld [vmem:[#allocation8 + $0x98] sm:$0xff]  ;;  %v613_v32 = vld [vmem:[#allocation8 + $0xb0] sm:$0xff]  ;;  %v612_v35 = vld [vmem:[#allocation8 + $0xa8] sm:$0xff]  ;;  %s4153_s15 = scalar_lea.vmem %s4842_s7, 256  ;;  %p4940_p9 = scmp.ne.s32.totalorder %s4925_s8, 0 }
  0xe5   : > { %3586 = vmatprep.subr.bf16.mxu1 %v3585_v21  ;;  %v3561_v33 = vpack.c.bf16 %v613_v32, %v610_v31  ;;  %v609_v34 = vld [vmem:[#allocation8 + $0x90] sm:$0xff]  ;;  %v611_v36 = vld [vmem:[#allocation8 + $0xa0] sm:$0xff]  ;;  %v614_v38 = vld [vmem:[#allocation8 + $0xb8] sm:$0xff]  ;;  %p4154_p6 = scmp.ne.s32.totalorder %s4842_s7, %s4153_s15  ;;  %s4251_s14 = smov [#allocation14]  }
  0xe6   : > { %v3563_v37 = vpack.c.bf16 %v612_v35, %v609_v34  ;;  %v3593_v39 = vpack.c.bf16 %v614_v38, %v611_v36  ;;  %v616_v40 = vld [vmem:[#allocation8 + $0xc8] sm:$0xff]  ;;  %v619_v41 = vld [vmem:[#allocation8 + $0xe0] sm:$0xff]  ;;  %v618_v44 = vld [vmem:[#allocation8 + $0xd8] sm:$0xff]  ;;  %s4157_s24 = sshll.u32 %s4251_s14, 4  ;;  %s4158_s24 = int_to_ptr.vmem [resolvable:$false] %s4157_s24 }
  0xe7   : > { %3556 = vmatpush1.bf16.msra.mxu0 %v3555_v19  ;;  %v3565_v42 = vpack.c.bf16 %v619_v41, %v616_v40  ;;  %v615_v43 = vld [vmem:[#allocation8 + $0xc0] sm:$0xff]  ;;  %v617_v45 = vld [vmem:[#allocation8 + $0xd0] sm:$0xff]  ;;  %v620_v47 = vld [vmem:[#allocation8 + $0xe8] sm:$0xff]  ;;  %v641_v41 = vlaneseq  ;;  %p4155_p4 = pnand %p4154_p6, %p4940_p9  ;;  %p4160_p1 = scmp.lt.s32.totalorder %s4842_s7, %s4158_s24 }
  0xe8   : > { %3588 = vmatpush3.bf16.msra.mxu1 %v3585_v21  ;;  %3558 = vmatprep.subr.bf16.mxu0 %v3557_v24  ;;  %v3567_v46 = vpack.c.bf16 %v618_v44, %v615_v43  ;;  %v622_v48 = vld [vmem:[#allocation8 + $0xf8] sm:$0xff]  ;;  %v625_v49 = vld [vmem:[#allocation8 + $0x110] sm:$0xff]  ;;  %v3597_v50 = vpack.c.bf16 %v620_v47, %v617_v45  ;;  %v624_v53 = vld [vmem:[#allocation8 + $0x108] sm:$0xff] }
  0xe9   : > { %3590 = vmatprep.subr.bf16.mxu1 %v3589_v30  ;;  %v3569_v51 = vpack.c.bf16 %v625_v49, %v622_v48  ;;  %v621_v52 = vld [vmem:[#allocation8 + $0xf0] sm:$0xff]  ;;  %v623_v54 = vld [vmem:[#allocation8 + $0x100] sm:$0xff]  ;;  %v626_v57 = vld [vmem:[#allocation8 + $0x118] sm:$0xff]  ;;  %p4156_p13 = pneg %p4155_p4 }
  0xea   : > { %v3571_v56 = vpack.c.bf16 %v624_v53, %v621_v52  ;;  %v628_v58 = vld [vmem:[#allocation8 + $0x128] sm:$0xff]  ;;  %v631_v59 = vld [vmem:[#allocation8 + $0x140] sm:$0xff]  ;;  %v3601_v60 = vpack.c.bf16 %v626_v57, %v623_v54  ;;  %v630_v63 = vld [vmem:[#allocation8 + $0x138] sm:$0xff] }
  0xeb   : > { %3560 = vmatpush1.bf16.msra.mxu0 %v3559_v28  ;;  %v3573_v61 = vpack.c.bf16 %v631_v59, %v628_v58  ;;  %v627_v62 = vld [vmem:[#allocation8 + $0x120] sm:$0xff]  ;;  %v629_v2 = vld [vmem:[#allocation8 + $0x130] sm:$0xff]  ;;  %v632_v3 = vld [vmem:[#allocation8 + $0x148] sm:$0xff] }
  0xec   : > { %3592 = vmatpush3.bf16.msra.mxu1 %v3589_v30  ;;  %3562 = vmatprep.subr.bf16.mxu0 %v3561_v33  ;;  %v634_v4 = vld [vmem:[#allocation8 + $0x158] sm:$0xff]  ;;  %v637_v5 = vld [vmem:[#allocation8 + $0x170] sm:$0xff]  ;;  %v3605_v6 = vpack.c.bf16 %v632_v3, %v629_v2  ;;  %v3575_v7 = vpack.c.bf16 %v630_v63, %v627_v62  ;;  %v635_v8 = vld [vmem:[#allocation8 + $0x160] sm:$0xff] }
  0xed   : > { %3594 = vmatprep.subr.bf16.mxu1 %v3593_v39  ;;  %v638_v9 = vld [vmem:[#allocation8 + $0x178] sm:$0xff]  ;;  %v3577_v10 = vpack.c.bf16 %v637_v5, %v634_v4  ;;  %v633_v11 = vld [vmem:[#allocation8 + $0x150] sm:$0xff]  ;;  %v636_v12 = vld [vmem:[#allocation8 + $0x168] sm:$0xff] }
  0xee   : > { %v3609_v13 = vpack.c.bf16 %v638_v9, %v635_v8  ;;  %v3579_v14 = vpack.c.bf16 %v636_v12, %v633_v11  ;;  %v3195_v32 = vld [vmem:[#allocation5] ss:$0 sm:$0xff]  ;;  %v3196_v36 = vld [vmem:[#allocation7] ss:$0 sm:$0xff] }
  0xef   : > { %3564 = vmatpush1.bf16.msra.mxu0 %v3563_v37  ;;  %v639_v44 = vld [vmem:[%s4896_s4] sm:$0x7] }
  0xf0   : > { %3596 = vmatpush3.bf16.msra.mxu1 %v3593_v39  ;;  %3566 = vmatprep.subr.bf16.mxu0 %v3565_v42  ;;  %v4631_v42 = vshrl.u32 %v641_v41, 7 }
  0xf1   : > { %3598 = vmatprep.subr.bf16.mxu1 %v3597_v50 }
  0xf2   : > { %v643_v43 = vsub.s32 0, %v4631_v42  ;;  %v647_v45 = vsub.s32 1, %v4631_v42  ;;  %v651_v48 = vsub.s32 2, %v4631_v42 }
  0xf3   : > { %3568 = vmatpush1.bf16.msra.mxu0 %v3567_v46 }
  0xf4   : > { %3570 = vmatprep.subr.bf16.mxu0 %v3569_v51  ;;  %3600 = vmatpush3.bf16.msra.mxu1 %v3597_v50  ;;  %v644_v46 = vrot.slane %v639_v44, %v643_v43  ;;  %v648_v47 = vrot.slane %v639_v44, %v647_v45  ;;  %v652_v54 = vrot.slane %v639_v44, %v651_v48 }
  0xf5   : > { %3602 = vmatprep.subr.bf16.mxu1 %v3601_v60 }
  0xf7   : > { %3572 = vmatpush1.bf16.msra.mxu0 %v3571_v56 }
  0xf8   : > { %3574 = vmatprep.subr.bf16.mxu0 %v3573_v61  ;;  %3604 = vmatpush3.bf16.msra.mxu1 %v3601_v60 }
  0xf9   : > { %3606 = vmatprep.subr.bf16.mxu1 %v3605_v6 }
  0xfb   : > { %3576 = vmatpush1.bf16.msra.mxu0 %v3575_v7 }
  0xfc   : > { %3578 = vmatprep.subr.bf16.mxu0 %v3577_v10  ;;  %3608 = vmatpush3.bf16.msra.mxu1 %v3605_v6 }
  0xfd   : > { %3610 = vmatprep.subr.bf16.mxu1 %v3609_v13 }
  0xff   : > { %3580 = vmatpush1.bf16.msra.mxu0 %v3579_v14 }
 0x100   : > { %3430 = vmatprep.subr.mxu0 %v4246_v55  ;;  %3612 = vmatpush3.bf16.msra.mxu1 %v3609_v13 }
 0x101   : > { %3425 = vmatprep.subr.mxu1 %v4246_v55 }
 0x16b   : > { %v549_v15 = vpop.xlane.xlu1 %548  ;;  %v547_v16 = vpop.xlane.xlu0 %546 }
 0x16c   : > { %v552_v17 = vmul.f32 0.0078125, %v549_v15  ;;  %v551_v18 = vmul.f32 0.0078125, %v547_v16 }
 0x16e   : > { %v562_v19 = vmul.f32 %v552_v17, %v552_v17  ;;  %v561_v22 = vmul.f32 %v551_v18, %v551_v18  ;;  %v566_v29 = vsub.f32 %v4611_v0, %v552_v17  ;;  %v565_v31 = vsub.f32 %v4613_v1, %v551_v18 }
 0x16f   : > { %v558_v20 = vpop.xlane.xlu1 %557  ;;  %v556_v21 = vpop.xlane.xlu0 %555 }
 0x170   : > { %v560_v23 = vmul.f32 0.0078125, %v558_v20  ;;  %v559_v24 = vmul.f32 0.0078125, %v556_v21 }
 0x172   : > { %v564_v25 = vsub.f32 %v560_v23, %v562_v19  ;;  %v563_v26 = vsub.f32 %v559_v24, %v561_v22 }
 0x174   : > { %v568_v27 = vadd.f32 1e-05, %v564_v25  ;;  %v567_v28 = vadd.f32 1e-05, %v563_v26 }
 0x176   : > { %3899 = vrsqrt.f32 %v568_v27 }
 0x177   : > { %3901 = vrsqrt.f32 %v567_v28 }
 0x180   : > { %v3900_v30 = vpop.eup %3899 }
 0x181   : > { %v3902_v33 = vpop.eup %3901  ;;  %v572_v34 = vmul.f32 %v3900_v30, %v566_v29 }
 0x182   : > { %v571_v35 = vmul.f32 %v3902_v33, %v565_v31 }
 0x183   : > { %v581_v37 = vmul.f32 %v3195_v32, %v572_v34 }
 0x184   : > { %v580_v38 = vmul.f32 %v3195_v32, %v571_v35 }
 0x185   : > { %v590_v39 = vadd.f32 %v3196_v36, %v581_v37 }
 0x186   : > { %v589_v40 = vadd.f32 %v3196_v36, %v580_v38 }
 0x188   : > { %721 = vmatmul.mubr.f32.vlgmr.msra.gmra.mrb[0].mxu0 %v589_v40  ;;  %3422 = vmatprep.mubr.f32.mxu1 %v589_v40 }
 0x189   : > { %3423 = vmatmul.mubr.f32.vlgmr.msra.gmra.mrb[0].mxu1 %v590_v39  ;;  %726 = vmatprep.mubr.f32.mxu0 %v4246_v55 }
 0x18a   : > { %3427 = vmatprep.mubr.msk.f32.mxu1 %vm4247_vm0, %v4246_v55 }
 0x18c   : > { %727 = vmatmul.mubr.f32.gmra.mrb[2].mxu0 %v590_v39 }
 0x18d   : > { %3432 = vmatprep.mubr.msk.f32.mxu0 %vm4247_vm0, %v4246_v55 }
 0x25b   : > { %v722_v49 = vpop.f32.mrb[0].mxu0 }
 0x25c   : > { %v723_v50 = vadd.f32 %v722_v49, %v644_v46  ;;  %v724_v51 = vpop.f32.mrb[1].mxu0  ;;  %v3424_v52 = vpop.f32.mrb[0].mxu1 }
 0x25d   : > { %v4643_v53 = vadd.f32 %v724_v51, %v648_v47  ;;  %v799_v56 = vpop.f32.mrb[1].mxu1  ;;  %v4666_v2 = vadd.f32 %v3424_v52, %v652_v54 }
 0x25e   : > { %v4649_v58 = vmul.f32 0.17677669, %v723_v50  ;;  %v4652_v61 = vadd.f32 %v799_v56, %v652_v54 }
 0x25f   : > { %v728_v57 = vpop.f32.mrb[2].mxu0  ;;  %3426 = vmatpush3.xpose.msk.msra.mxu1 %vm810_vm1, %v4643_v53 }
 0x260   : > { %v729_v59 = vadd.f32 %v728_v57, %v644_v46  ;;  %v730_v60 = vpop.f32.mrb[3].mxu0  ;;  %3435 = vmatprep.subr.mxu1 %v4246_v55 }
 0x261   : > { %v4654_v62 = vadd.f32 %v730_v60, %v648_v47 }
 0x262   : > { %3428 = vmatmul.mubr.msk.f32.vlgmr.msra.gmra.mrb[2].mxu1 %vm810_vm1, %v4649_v58  ;;  %v4661_v63 = vmul.f32 0.17677669, %v729_v59 }
 0x263   : > { %3431 = vmatpush3.xpose.msk.msra.mxu0 %vm810_vm1, %v4654_v62  ;;  %3436 = vmatpush3.msra.mxu1 %v4652_v61 }
 0x264   : > { %3440 = vmatprep.subr.mxu0 %v4246_v55  ;;  %3437 = vmatprep.mubr.msk.f32.mxu1 %vm4247_vm0, %v4246_v55 }
 0x265   : > { %3445 = vmatprep.subr.mxu1 %v4246_v55 }
 0x266   : > { %3433 = vmatmul.mubr.msk.f32.vlgmr.msra.gmra.mrb[4].mxu0 %vm810_vm1, %v4661_v63 }
 0x267   : > { %3441 = vmatpush3.msra.mxu0 %v4666_v2  ;;  %3442 = vmatprep.mubr.msk.f32.mxu0 %vm4247_vm0, %v4246_v55 }
 0x268   : > { %3450 = vmatprep.subr.mxu0 %v4246_v55 }
 0x335   : > { %v883_v3 = vpop.f32.mrb[2].mxu1 }
 0x336   : > { %v3429_v4 = vpop.f32.mrb[3].mxu1  ;;  %v964_v23 = vsel %vm963_vm2, %v883_v3, -inf }
 0x339   : > { %v959_v5 = vpop.f32.mrb[4].mxu0 }
 0x33a   : > { %v3434_v6 = vpop.f32.mrb[5].mxu0  ;;  %v967_v7 = vsel %vm963_vm2, %v959_v5, -inf }
 0x33b   : > { %968 = vmax.xlane.f32.xlu0 %v967_v7 }
 0x351   : > { %1216 = vrot.lane.b32.xlu0 %v4654_v62, %s4248_s30 }
 0x3c8   : > { %v969_v8 = vpop.xlane.xlu0 %968 }
 0x3c9   : > { %v971_v9 = vsub.f32 %v959_v5, %v969_v8 }
 0x3cb   : > { %v974_v10 = vmul.f32 1.442695, %v971_v9 }
 0x3cc   : > { %v1217_v16 = vpop.permute.xlu0 %1216 }
 0x3cd   : > { %3903 = vpow2.f32 %v974_v10 }
 0x3d7   : > { %v3904_v11 = vpop.eup %3903 }
 0x3d8   : > { %v979_v12 = vsel %vm963_vm2, %v3904_v11, 0.0 }
 0x3d9   : > { %980 = vadd.xlane.f32.xlu1 %v979_v12 }
 0x3ea   : > { %1214 = vrot.lane.b32.xlu1 %v4661_v63, %s4248_s30 }
 0x466   : > { %v981_v13 = vpop.xlane.xlu1 %980 }
 0x467   : > { %3905 = vrcp.f32 %v981_v13 }
 0x46a   : > { %v1215_v17 = vpop.permute.xlu1 %1214 }
 0x471   : > { %v3906_v14 = vpop.eup %3905 }
 0x472   : > { %v985_v15 = vmul.f32 %v3906_v14, %v3904_v11 }
 0x474   : > { %3443 = vmatmul.mubr.msk.f32.vlgmr.msra.gmra.mrb[6].mxu0 %vm963_vm2, %v985_v15 }
 0x475   : > { %3451 = vmatpush3.xpose.msk.msra.mxu0 %vm810_vm1, %v1217_v16  ;;  %3452 = vmatprep.mubr.msk.f32.mxu0 %vm4247_vm0, %v4246_v55 }
 0x476   : > { %3460 = vmatprep.subr.mxu0 %v4246_v55 }
 0x478   : > { %3453 = vmatmul.mubr.msk.f32.vlgmr.msra.gmra.mrb[8].mxu0 %vm810_vm1, %v1215_v17 }
 0x479   : > { %3462 = vmatprep.mubr.msk.f32.mxu0 %vm4247_vm0, %v4246_v55 }
 0x547   : > { %v4689_v18 = vpop.f32.mrb[6].mxu0 }
 0x548   : > { %v3444_v19 = vpop.f32.mrb[7].mxu0 }
 0x54b   : > { %v1288_v20 = vpop.f32.mrb[8].mxu0 }
 0x54c   : > { %v3454_v21 = vpop.f32.mrb[9].mxu0  ;;  %v1295_v22 = vsel %vm963_vm2, %v1288_v20, -inf }
 0x54d   : > { %1296 = vmax.xlane.f32.xlu1 %v1295_v22 }
 0x55e   : > { %1636 = vrot.lane.b32.xlu1 %v4643_v53, %s4249_s3 }
 0x562   : > { %1634 = vrot.lane.b32.xlu1 %v4649_v58, %s4249_s3 }
 0x566   : > { %1714 = vrot.lane.b32.xlu1 %v4654_v62, %s4249_s3 }
 0x58a   : > { %965 = vmax.xlane.f32.xlu1 %v964_v23 }
 0x59b   : > { %1136 = vrot.lane.b32.xlu1 %v4649_v58, %s4248_s30 }
 0x5da   : > { %v1297_v24 = vpop.xlane.xlu1 %1296 }
 0x5db   : > { %v1299_v25 = vsub.f32 %v1288_v20, %v1297_v24 }
 0x5dd   : > { %v1302_v26 = vmul.f32 1.442695, %v1299_v25 }
 0x5de   : > { %v1637_v29 = vpop.permute.xlu1 %1636 }
 0x5df   : > { %3907 = vpow2.f32 %v1302_v26 }
 0x5e2   : > { %v1635_v30 = vpop.permute.xlu1 %1634 }
 0x5e6   : > { %v1715_v31 = vpop.permute.xlu1 %1714 }
 0x5e9   : > { %v3908_v27 = vpop.eup %3907 }
 0x5ea   : > { %v1307_v28 = vsel %vm963_vm2, %v3908_v27, 0.0 }
 0x5eb   : > { %1308 = vadd.xlane.f32.xlu0 %v1307_v28 }
 0x601   : > { %1392 = vrot.lane.b32.xlu0 %v4666_v2, %s4248_s30 }
 0x605   : > { %1712 = vrot.lane.b32.xlu0 %v4661_v63, %s4249_s3 }
 0x617   : > { %v966_v32 = vpop.xlane.xlu1 %965 }
 0x618   : > { %v970_v33 = vsub.f32 %v883_v3, %v966_v32 }
 0x61a   : > { %v972_v34 = vmul.f32 1.442695, %v970_v33 }
 0x61b   : > { %v1137_v50 = vpop.permute.xlu1 %1136 }
 0x61c   : > { %3909 = vpow2.f32 %v972_v34 }
 0x626   : > { %v3910_v35 = vpop.eup %3909 }
 0x627   : > { %v976_v36 = vsel %vm963_vm2, %v3910_v35, 0.0 }
 0x628   : > { %977 = vadd.xlane.f32.xlu0 %v976_v36 }
 0x63e   : > { %1138 = vrot.lane.b32.xlu0 %v4643_v53, %s4248_s30 }
 0x678   : > { %v1309_v37 = vpop.xlane.xlu0 %1308 }
 0x679   : > { %3911 = vrcp.f32 %v1309_v37  ;;  %v1468_v37 = vld [vmem:[#allocation10 + $0x20] sm:$0xff] }
 0x67c   : > { %v1393_v38 = vpop.permute.xlu0 %1392 }
 0x67d   : > { %3461 = vmatpush3.msra.mxu0 %v1393_v38  ;;  %v1469_v38 = vld [vmem:[#allocation10 + $0x28] sm:$0xff] }
 0x67e   : > { %3487 = vmatprep.subr.mxu0 %v4246_v55 }
 0x680   : > { %v1713_v41 = vpop.permute.xlu0 %1712 }
 0x683   : > { %v3912_v39 = vpop.eup %3911 }
 0x684   : > { %v1313_v40 = vmul.f32 %v3912_v39, %v3908_v27  ;;  %v1470_v39 = vld [vmem:[#allocation10 + $0x30] sm:$0xff] }
 0x686   : > { %3463 = vmatmul.mubr.msk.f32.vlgmr.msra.gmra.mrb[10].mxu0 %vm963_vm2, %v1313_v40  ;;  %v3613_v40 = vpack.c.bf16 %v1469_v38, %v1468_v37  ;;  %v2533_v37 = vld [vmem:[#allocation11 + $0x8] sm:$0xff] }
 0x687   : > { %3488 = vmatpush3.xpose.msk.msra.mxu0 %vm810_vm1, %v1637_v29  ;;  %3489 = vmatprep.mubr.msk.f32.mxu0 %vm4247_vm0, %v4246_v55  ;;  %v2537_v38 = vld [vmem:[#allocation11 + $0x28] sm:$0xff] }
 0x688   : > { %3492 = vmatprep.subr.mxu0 %v4246_v55 }
 0x68a   : > { %3490 = vmatmul.mubr.msk.f32.vlgmr.msra.gmra.mrb[12].mxu0 %vm810_vm1, %v1635_v30 }
 0x68b   : > { %3493 = vmatpush3.xpose.msk.msra.mxu0 %vm810_vm1, %v1715_v31  ;;  %3494 = vmatprep.mubr.msk.f32.mxu0 %vm4247_vm0, %v4246_v55 }
 0x68c   : > { %3497 = vmatprep.subr.mxu0 %v4246_v55 }
 0x68e   : > { %3495 = vmatmul.mubr.msk.f32.vlgmr.msra.gmra.mrb[14].mxu0 %vm810_vm1, %v1713_v41  ;;  %v1471_v41 = vld [vmem:[#allocation10 + $0x38] sm:$0xff] }
 0x68f   : > { %3499 = vmatprep.mubr.msk.f32.mxu0 %vm4247_vm0, %v4246_v55 }
 0x6b5   : > { %v978_v44 = vpop.xlane.xlu0 %977 }
 0x6b6   : > { %3913 = vrcp.f32 %v978_v44  ;;  %v3617_v44 = vpack.c.bf16 %v1471_v41, %v1470_v39  ;;  %v2535_v39 = vld [vmem:[#allocation11 + $0x18] sm:$0xff] }
 0x6b7   : > { %v2539_v41 = vld [vmem:[#allocation11 + $0x38] sm:$0xff] }
 0x6b9   : > { %v1139_v49 = vpop.permute.xlu0 %1138 }
 0x6c0   : > { %v3914_v46 = vpop.eup %3913 }
 0x6c1   : > { %v984_v47 = vmul.f32 %v3914_v46, %v3910_v35  ;;  %v1132_v46 = vld [vmem:[#allocation10] sm:$0xff] }
 0x6c3   : > { %3438 = vmatmul.mubr.msk.f32.vlgmr.msra.gmra.mrb[4].mxu1 %vm963_vm2, %v984_v47  ;;  %v1133_v47 = vld [vmem:[#allocation10 + $0x8] sm:$0xff] }
 0x6c4   : > { %3446 = vmatpush3.xpose.msk.msra.mxu1 %vm810_vm1, %v1139_v49  ;;  %3447 = vmatprep.mubr.msk.f32.mxu1 %vm4247_vm0, %v4246_v55  ;;  %v3621_v49 = vpack.c.bf16 %v1133_v47, %v1132_v46  ;;  %v2536_v46 = vld [vmem:[#allocation11 + $0x20] sm:$0xff]  ;;  %v3677_v47 = vpack.c.bf16 %v2539_v41, %v2535_v39  ;;  %v2571_v39 = vld [vmem:[#allocation11 + $0x138] sm:$0xff] }
 0x6c5   : > { %3455 = vmatprep.subr.mxu1 %v4246_v55  ;;  %v2568_v41 = vld [vmem:[#allocation11 + $0x120] sm:$0xff] }
 0x6c7   : > { %3448 = vmatmul.mubr.msk.f32.vlgmr.msra.gmra.mrb[6].mxu1 %vm810_vm1, %v1137_v50 }
 0x6c8   : > { %3457 = vmatprep.mubr.msk.f32.mxu1 %vm4247_vm0, %v4246_v55 }
 0x759   : > { %v4731_v51 = vpop.f32.mrb[10].mxu0 }
 0x75a   : > { %v3464_v52 = vpop.f32.mrb[11].mxu0 }
 0x75d   : > { %v1708_v54 = vpop.f32.mrb[12].mxu0 }
 0x75e   : > { %v3491_v56 = vpop.f32.mrb[13].mxu0  ;;  %v1790_v57 = vsel %vm963_vm2, %v1708_v54, -inf }
 0x75f   : > { %1791 = vmax.xlane.f32.xlu1 %v1790_v57 }
 0x761   : > { %v1786_v59 = vpop.f32.mrb[14].mxu0 }
 0x762   : > { %v3496_v60 = vpop.f32.mrb[15].mxu0  ;;  %v1793_v3 = vsel %vm963_vm2, %v1786_v59, -inf }
 0x763   : > { %1794 = vmax.xlane.f32.xlu0 %v1793_v3 }
 0x770   : > { %1812 = vrot.lane.b32.xlu1 %v4652_v61, %s4249_s3 }
 0x774   : > { %2053 = vrot.lane.b32.xlu1 %v4643_v53, %s4250_s21 }
 0x778   : > { %2051 = vrot.lane.b32.xlu1 %v4649_v58, %s4250_s21 }
 0x77c   : > { %2131 = vrot.lane.b32.xlu1 %v4654_v62, %s4250_s21 }
 0x796   : > { %v4743_v4 = vpop.f32.mrb[4].mxu1 }
 0x797   : > { %v3439_v5 = vpop.f32.mrb[5].mxu1 }
 0x79a   : > { %v1210_v6 = vpop.f32.mrb[6].mxu1 }
 0x79b   : > { %v3449_v7 = vpop.f32.mrb[7].mxu1  ;;  %v1292_v8 = vsel %vm963_vm2, %v1210_v6, -inf }
 0x79c   : > { %v1134_v7 = vld [vmem:[#allocation10 + $0x10] sm:$0xff] }
 0x7a0   : > { %1293 = vmax.xlane.f32.xlu1 %v1292_v8  ;;  %v1135_v8 = vld [vmem:[#allocation10 + $0x18] sm:$0xff] }
 0x7ec   : > { %v1792_v9 = vpop.xlane.xlu1 %1791 }
 0x7ed   : > { %v1796_v10 = vsub.f32 %v1708_v54, %v1792_v9 }
 0x7ef   : > { %v1798_v11 = vmul.f32 1.442695, %v1796_v10  ;;  %v3625_v10 = vpack.c.bf16 %v1135_v8, %v1134_v7  ;;  %v2544_v7 = vld [vmem:[#allocation11 + $0x60] sm:$0xff]  ;;  %v2542_v8 = vld [vmem:[#allocation11 + $0x50] sm:$0xff] }
 0x7f0   : > { %v1795_v12 = vpop.xlane.xlu0 %1794  ;;  %v1813_v13 = vpop.permute.xlu1 %1812 }
 0x7f1   : > { %3915 = vpow2.f32 %v1798_v11  ;;  %v1797_v53 = vsub.f32 %v1786_v59, %v1795_v12  ;;  %3498 = vmatpush3.msra.mxu0 %v1813_v13  ;;  %v1964_v12 = vld [vmem:[#allocation10 + $0x40] sm:$0xff]  ;;  %v1965_v13 = vld [vmem:[#allocation10 + $0x48] sm:$0xff] }
 0x7f2   : > { %3502 = vmatprep.subr.mxu0 %v4246_v55 }
 0x7f3   : > { %v1800_v58 = vmul.f32 1.442695, %v1797_v53  ;;  %v3629_v53 = vpack.c.bf16 %v1965_v13, %v1964_v12  ;;  %v3229_v13 = vld [vmem:[%s4898_s6] ss:$0 sm:$0xff] }
 0x7f4   : > { %v2054_v17 = vpop.permute.xlu1 %2053 }
 0x7f5   : > { %3917 = vpow2.f32 %v1800_v58  ;;  %v1966_v58 = vld [vmem:[#allocation10 + $0x50] sm:$0xff] }
 0x7f8   : > { %v2052_v19 = vpop.permute.xlu1 %2051 }
 0x7fb   : > { %v3916_v62 = vpop.eup %3915 }
 0x7fc   : > { %v1802_v14 = vsel %vm963_vm2, %v3916_v62, 0.0  ;;  %v2132_v20 = vpop.permute.xlu1 %2131 }
 0x7fd   : > { %1803 = vadd.xlane.f32.xlu0 %v1802_v14 }
 0x7ff   : > { %v3918_v15 = vpop.eup %3917 }
 0x800   : > { %v1805_v16 = vsel %vm963_vm2, %v3918_v15, 0.0 }
 0x801   : > { %1806 = vadd.xlane.f32.xlu0 %v1805_v16 }
 0x817   : > { %1888 = vrot.lane.b32.xlu0 %v4666_v2, %s4249_s3 }
 0x81b   : > { %2129 = vrot.lane.b32.xlu0 %v4661_v63, %s4250_s21 }
 0x82d   : > { %v1294_v21 = vpop.xlane.xlu1 %1293 }
 0x82e   : > { %v1298_v22 = vsub.f32 %v1210_v6, %v1294_v21 }
 0x830   : > { %v1300_v23 = vmul.f32 1.442695, %v1298_v22 }
 0x832   : > { %3919 = vpow2.f32 %v1300_v23 }
 0x83c   : > { %v3920_v24 = vpop.eup %3919 }
 0x83d   : > { %v1304_v25 = vsel %vm963_vm2, %v3920_v24, 0.0 }
 0x83e   : > { %1305 = vadd.xlane.f32.xlu0 %v1304_v25  ;;  %v2382_v25 = vld [vmem:[#allocation10 + $0x68] sm:$0xff] }
 0x854   : > { %1315 = vrot.lane.b32.xlu0 %v4652_v61, %s4248_s30  ;;  %s4937_s30 = sld [smem:[#allocation24_spill]] }
 0x858   : > { %2305 = vrot.lane.b32.xlu0 %v4666_v2, %s4250_s21 }
 0x88a   : > { %v1804_v26 = vpop.xlane.xlu0 %1803 }
 0x88b   : > { %3921 = vrcp.f32 %v1804_v26 }
 0x88e   : > { %v1807_v63 = vpop.xlane.xlu0 %1806 }
 0x88f   : > { %3923 = vrcp.f32 %v1807_v63 }
 0x892   : > { %v1889_v29 = vpop.permute.xlu0 %1888 }
 0x895   : > { %v3922_v27 = vpop.eup %3921 }
 0x896   : > { %v1810_v28 = vmul.f32 %v3922_v27, %v3916_v62  ;;  %v2130_v2 = vpop.permute.xlu0 %2129  ;;  %v1967_v62 = vld [vmem:[#allocation10 + $0x58] sm:$0xff] }
 0x897   : > { %v3633_v14 = vpack.c.bf16 %v1967_v62, %v1966_v58 }
 0x898   : > { %3500 = vmatmul.mubr.msk.f32.vlgmr.msra.gmra.mrb[16].mxu0 %vm963_vm2, %v1810_v28 }
 0x899   : > { %v3924_v30 = vpop.eup %3923  ;;  %3503 = vmatpush3.msra.mxu0 %v1889_v29  ;;  %3504 = vmatprep.mubr.msk.f32.mxu0 %vm4247_vm0, %v4246_v55 }
 0x89a   : > { %v1811_v31 = vmul.f32 %v3924_v30, %v3918_v15  ;;  %3518 = vmatprep.subr.mxu0 %v4246_v55 }
 0x89c   : > { %3505 = vmatmul.mubr.msk.f32.vlgmr.msra.gmra.mrb[18].mxu0 %vm963_vm2, %v1811_v31 }
 0x89d   : > { %3520 = vmatprep.mubr.msk.f32.mxu0 %vm4247_vm0, %v4246_v55 }
 0x8a0   : > { %3519 = vmatpush3.xpose.msk.msra.mxu0 %vm810_vm1, %v2054_v17 }
 0x8a1   : > { %3523 = vmatprep.subr.mxu0 %v4246_v55 }
 0x8a3   : > { %3521 = vmatmul.mubr.msk.f32.vlgmr.msra.gmra.mrb[20].mxu0 %vm810_vm1, %v2052_v19 }
 0x8a4   : > { %3524 = vmatpush3.xpose.msk.msra.mxu0 %vm810_vm1, %v2132_v20  ;;  %3525 = vmatprep.mubr.msk.f32.mxu0 %vm4247_vm0, %v4246_v55 }
 0x8a5   : > { %3533 = vmatprep.subr.mxu0 %v4246_v55 }
 0x8a7   : > { %3526 = vmatmul.mubr.msk.f32.vlgmr.msra.gmra.mrb[22].mxu0 %vm810_vm1, %v2130_v2  ;;  %v2384_v2 = vld [vmem:[#allocation10 + $0x78] sm:$0xff] }
 0x8a8   : > { %3535 = vmatprep.mubr.msk.f32.mxu0 %vm4247_vm0, %v4246_v55 }
 0x8cb   : > { %v1306_v32 = vpop.xlane.xlu0 %1305 }
 0x8cc   : > { %3925 = vrcp.f32 %v1306_v32 }
 0x8cf   : > { %v1316_v33 = vpop.permute.xlu0 %1315 }
 0x8d0   : > { %3456 = vmatpush3.msra.mxu1 %v1316_v33 }
 0x8d1   : > { %3614 = vmatprep.subr.bf16.mxu1 %v3613_v40 }
 0x8d3   : > { %v2306_v34 = vpop.permute.xlu0 %2305 }
 0x8d4   : > { %3534 = vmatpush3.msra.mxu0 %v2306_v34 }
 0x8d6   : > { %v3926_v35 = vpop.eup %3925 }
 0x8d7   : > { %v1312_v36 = vmul.f32 %v3926_v35, %v3920_v24  ;;  %v2381_v24 = vld [vmem:[#allocation10 + $0x60] sm:$0xff] }
 0x8d8   : > { %v3637_v63 = vpack.c.bf16 %v2382_v25, %v2381_v24  ;;  %v2554_v24 = vld [vmem:[#allocation11 + $0xb0] sm:$0xff] }
 0x8d9   : > { %3458 = vmatmul.mubr.msk.f32.vlgmr.msra.gmra.mrb[8].mxu1 %vm963_vm2, %v1312_v36 }
 0x8da   : > { %3616 = vmatpush3.bf16.msra.mxu1 %v3613_v40  ;;  %v3645_v40 = vpack.c.bf16 %v2537_v38, %v2533_v37  ;;  %v2567_v37 = vld [vmem:[#allocation11 + $0x118] sm:$0xff] }
 0x8db   : > { %3618 = vmatprep.subr.bf16.mxu1 %v3617_v44 }
 0x8dc   : > { %3646 = vmatprep.subr.bf16.mxu0 %v3645_v40  ;;  %v2564_v40 = vld [vmem:[#allocation11 + $0x100] sm:$0xff] }
 0x8de   : > { %3620 = vmatpush3.bf16.msra.mxu1 %v3617_v44  ;;  %v2532_v44 = vld [vmem:[#allocation11] sm:$0xff] }
 0x8df   : > { %3622 = vmatprep.subr.bf16.mxu1 %v3621_v49 }
 0x96b   : > { %v1884_v50 = vpop.f32.mrb[16].mxu0 }
 0x96c   : > { %v3501_v52 = vpop.f32.mrb[17].mxu0 }
 0x96d   : > { %v2538_v52 = vld [vmem:[#allocation11 + $0x30] sm:$0xff] }
 0x96f   : > { %v1960_v54 = vpop.f32.mrb[18].mxu0 }
 0x970   : > { %v3506_v56 = vpop.f32.mrb[19].mxu0 }
 0x976   : > { %v2125_v57 = vpop.f32.mrb[20].mxu0 }
 0x977   : > { %v3522_v59 = vpop.f32.mrb[21].mxu0  ;;  %v2207_v60 = vsel %vm963_vm2, %v2125_v57, -inf }
 0x978   : > { %2208 = vmax.xlane.f32.xlu1 %v2207_v60  ;;  %v2543_v59 = vld [vmem:[#allocation11 + $0x58] sm:$0xff] }
 0x979   : > { %v2547_v60 = vld [vmem:[#allocation11 + $0x78] sm:$0xff] }
 0x97a   : > { %v2203_v3 = vpop.f32.mrb[22].mxu0 }
 0x97b   : > { %v3527_v5 = vpop.f32.mrb[23].mxu0  ;;  %v2210_v6 = vsel %vm963_vm2, %v2203_v3, -inf }
 0x97c   : > { %2211 = vmax.xlane.f32.xlu1 %v2210_v6  ;;  %v3681_v5 = vpack.c.bf16 %v2547_v60, %v2543_v59  ;;  %v2540_v6 = vld [vmem:[#allocation11 + $0x40] sm:$0xff]  ;;  %v2579_v59 = vld [vmem:[#allocation11 + $0x178] sm:$0xff] }
 0x97d   : > { %v2572_v60 = vld [vmem:[#allocation11 + $0x140] sm:$0xff] }
 0x9ac   : > { %v1387_v9 = vpop.f32.mrb[8].mxu1 }
 0x9ad   : > { %v3459_v11 = vpop.f32.mrb[9].mxu1  ;;  %3473 = vmatprep.mubr.msk.f32.mxu1 %vm810_vm1, %v1387_v9  ;;  %v3651_v9 = vpack.c.bf16 %v2544_v7, %v2540_v6  ;;  %v2574_v7 = vld [vmem:[#allocation11 + $0x150] sm:$0xff] }
 0x9ae   : > { %3474 = vmatmul.mubr.msk.f32.vlgmr.msra.gmra.mrb[10].mxu1 %vm810_vm1, %v4731_v51 }
 0x9af   : > { %3624 = vmatpush3.bf16.msra.mxu1 %v3621_v49  ;;  %3484 = vmatprep.mubr.msk.f32.mxu1 %vm810_vm1, %v4743_v4  ;;  %v3647_v49 = vpack.c.bf16 %v2536_v46, %v2532_v44  ;;  %v3693_v44 = vpack.c.bf16 %v2571_v39, %v2567_v37  ;;  %v3663_v46 = vpack.c.bf16 %v2568_v41, %v2564_v40 }
 0x9b0   : > { %3626 = vmatprep.subr.bf16.mxu1 %v3625_v10 }
 0x9b3   : > { %3628 = vmatpush3.bf16.msra.mxu1 %v3625_v10  ;;  %v2546_v10 = vld [vmem:[#allocation11 + $0x70] sm:$0xff] }
 0x9b4   : > { %3630 = vmatprep.subr.bf16.mxu1 %v3629_v53  ;;  %v3683_v11 = vpack.c.bf16 %v2546_v10, %v2542_v8  ;;  %v2578_v8 = vld [vmem:[#allocation11 + $0x170] sm:$0xff]  ;;  %v2581_v10 = vld [vmem:[#allocation11 + $0x188] sm:$0xff] }
 0x9b6   : > { %3485 = vmatmul.mubr.msk.f32.vlgmr.msra.gmra.mrb[10].mxu1 %vm810_vm1, %v4689_v18 }
 0x9b7   : > { %3632 = vmatpush3.bf16.msra.mxu1 %v3629_v53  ;;  %3515 = vmatprep.mubr.msk.f32.mxu1 %vm810_vm1, %v1884_v50  ;;  %v2534_v50 = vld [vmem:[#allocation11 + $0x10] sm:$0xff] }
 0x9b8   : > { %3634 = vmatprep.subr.bf16.mxu1 %v3633_v14  ;;  %v3679_v56 = vpack.c.bf16 %v2538_v52, %v2534_v50  ;;  %v2573_v52 = vld [vmem:[#allocation11 + $0x148] sm:$0xff] }
 0x9bb   : > { %3636 = vmatpush3.bf16.msra.mxu1 %v3633_v14 }
 0x9bc   : > { %3528 = vmatprep.subr.mxu1 %v4246_v55 }
 0x9be   : > { %3516 = vmatmul.mubr.msk.f32.vlgmr.msra.gmra.mrb[10].mxu1 %vm810_vm1, %v1960_v54  ;;  %v2541_v54 = vld [vmem:[#allocation11 + $0x48] sm:$0xff] }
 0x9bf   : > { %3530 = vmatprep.mubr.msk.f32.mxu1 %vm4247_vm0, %v4246_v55 }
 0xa05   : > { %v2209_v51 = vpop.xlane.xlu1 %2208 }
 0xa06   : > { %v2213_v4 = vsub.f32 %v2125_v57, %v2209_v51  ;;  %v2545_v57 = vld [vmem:[#allocation11 + $0x68] sm:$0xff] }
 0xa08   : > { %v2215_v15 = vmul.f32 1.442695, %v2213_v4 }
 0xa09   : > { %v2212_v16 = vpop.xlane.xlu1 %2211 }
 0xa0a   : > { %3927 = vpow2.f32 %v2215_v15  ;;  %v2214_v17 = vsub.f32 %v2203_v3, %v2212_v16  ;;  %v3649_v3 = vpack.c.bf16 %v2545_v57, %v2541_v54  ;;  %v2549_v16 = vld [vmem:[#allocation11 + $0x88] sm:$0xff] }
 0xa0b   : > { %v2577_v54 = vld [vmem:[#allocation11 + $0x168] sm:$0xff] }
 0xa0c   : > { %v2217_v19 = vmul.f32 1.442695, %v2214_v17  ;;  %v2551_v17 = vld [vmem:[#allocation11 + $0x98] sm:$0xff]  ;;  %v3665_v57 = vpack.c.bf16 %v2577_v54, %v2573_v52 }
 0xa0d   : > { %v3230_v54 = vld [vmem:[%s4935_s23] ss:$0 sm:$0xff] }
 0xa0e   : > { %3929 = vpow2.f32 %v2217_v19  ;;  %v2555_v19 = vld [vmem:[#allocation11 + $0xb8] sm:$0xff] }
 0xa14   : > { %v3928_v18 = vpop.eup %3927 }
 0xa15   : > { %v2219_v20 = vsel %vm963_vm2, %v3928_v18, 0.0 }
 0xa16   : > { %2220 = vadd.xlane.f32.xlu1 %v2219_v20  ;;  %v2552_v20 = vld [vmem:[#allocation11 + $0xa0] sm:$0xff] }
 0xa18   : > { %v3930_v21 = vpop.eup %3929 }
 0xa19   : > { %v2222_v22 = vsel %vm963_vm2, %v3930_v21, 0.0 }
 0xa1a   : > { %2223 = vadd.xlane.f32.xlu1 %v2222_v22 }
 0xa2b   : > { %2229 = vrot.lane.b32.xlu1 %v4652_v61, %s4250_s21  ;;  %v2383_v61 = vld [vmem:[#allocation10 + $0x70] sm:$0xff] }
 0xa2c   : > { %v3641_v32 = vpack.c.bf16 %v2384_v2, %v2383_v61 }
 0xaa3   : > { %v2221_v23 = vpop.xlane.xlu1 %2220 }
 0xaa4   : > { %3931 = vrcp.f32 %v2221_v23  ;;  %v2550_v23 = vld [vmem:[#allocation11 + $0x90] sm:$0xff] }
 0xaa5   : > { %v3687_v25 = vpack.c.bf16 %v2554_v24, %v2550_v23  ;;  %v2588_v23 = vld [vmem:[#allocation11 + $0x1c0] sm:$0xff] }
 0xaa6   : > { %v2592_v24 = vld [vmem:[#allocation11 + $0x1e0] sm:$0xff] }
 0xaa7   : > { %v2224_v26 = vpop.xlane.xlu1 %2223 }
 0xaa8   : > { %3933 = vrcp.f32 %v2224_v26  ;;  %v2557_v26 = vld [vmem:[#allocation11 + $0xc8] sm:$0xff] }
 0xaab   : > { %v2230_v27 = vpop.permute.xlu1 %2229 }
 0xaac   : > { %3529 = vmatpush3.msra.mxu1 %v2230_v27  ;;  %v2559_v27 = vld [vmem:[#allocation11 + $0xd8] sm:$0xff] }
 0xaad   : > { %3638 = vmatprep.subr.bf16.mxu1 %v3637_v63 }
 0xaae   : > { %v3932_v28 = vpop.eup %3931 }
 0xaaf   : > { %v2227_v29 = vmul.f32 %v3932_v28, %v3928_v18  ;;  %v2548_v18 = vld [vmem:[#allocation11 + $0x80] sm:$0xff] }
 0xab0   : > { %v3655_v22 = vpack.c.bf16 %v2552_v20, %v2548_v18  ;;  %v2591_v18 = vld [vmem:[#allocation11 + $0x1d8] sm:$0xff] }
 0xab1   : > { %3531 = vmatmul.mubr.msk.f32.vlgmr.msra.gmra.mrb[12].mxu1 %vm963_vm2, %v2227_v29  ;;  %v2563_v29 = vld [vmem:[#allocation11 + $0xf8] sm:$0xff] }
 0xab2   : > { %v3934_v30 = vpop.eup %3933  ;;  %3640 = vmatpush3.bf16.msra.mxu1 %v3637_v63  ;;  %v2561_v63 = vld [vmem:[#allocation11 + $0xe8] sm:$0xff]  ;;  %v3689_v61 = vpack.c.bf16 %v2563_v29, %v2559_v27  ;;  %v2595_v20 = vld [vmem:[#allocation11 + $0x1f8] sm:$0xff] }
 0xab3   : > { %v2228_v31 = vmul.f32 %v3934_v30, %v3930_v21  ;;  %3642 = vmatprep.subr.bf16.mxu1 %v3641_v32  ;;  %v3685_v21 = vpack.c.bf16 %v2555_v19, %v2551_v17  ;;  %v3657_v28 = vpack.c.bf16 %v2561_v63, %v2557_v26  ;;  %v2556_v30 = vld [vmem:[#allocation11 + $0xc0] sm:$0xff]  ;;  %v2589_v17 = vld [vmem:[#allocation11 + $0x1c8] sm:$0xff]  ;;  %v3675_v26 = vpack.c.bf16 %v2592_v24, %v2588_v23  ;;  %v2594_v63 = vld [vmem:[#allocation11 + $0x1f0] sm:$0xff] }
 0xab4   : > { %v2593_v19 = vld [vmem:[#allocation11 + $0x1e8] sm:$0xff] }
 0xab5   : > { %3536 = vmatmul.mubr.msk.f32.vlgmr.msra.gmra.mrb[24].mxu0 %vm963_vm2, %v2228_v31  ;;  %v2560_v31 = vld [vmem:[#allocation11 + $0xe0] sm:$0xff]  ;;  %v2829_v29 = vld [vmem:[#allocation13 + $0x88] sm:$0xff] }
 0xab6   : > { %2682 = vmatprep.mubr.f32.mxu0 %v4246_v55  ;;  %3644 = vmatpush3.bf16.msra.mxu1 %v3641_v32  ;;  %v3659_v2 = vpack.c.bf16 %v2560_v31, %v2556_v30  ;;  %v2558_v32 = vld [vmem:[#allocation11 + $0xd0] sm:$0xff]  ;;  %v2860_v30 = vld [vmem:[#allocation13 + $0x180] sm:$0xff] }
 0xab7   : > { %3678 = vmatprep.subr.bf16.mxu1 %v3677_v47  ;;  %3648 = vmatpush1.bf16.msra.mxu0 %v3647_v49  ;;  %v2566_v47 = vld [vmem:[#allocation11 + $0x110] sm:$0xff] }
 0xab8   : > { %3650 = vmatprep.subr.bf16.mxu0 %v3649_v3  ;;  %v2570_v49 = vld [vmem:[#allocation11 + $0x130] sm:$0xff]  ;;  %v2576_v3 = vld [vmem:[#allocation11 + $0x160] sm:$0xff] }
 0xab9   : > { %v3695_v50 = vpack.c.bf16 %v2570_v49, %v2566_v47  ;;  %v3667_v6 = vpack.c.bf16 %v2576_v3, %v2572_v60  ;;  %v2813_v60 = vld [vmem:[#allocation13 + $0x8] sm:$0xff]  ;;  %v2844_v3 = vld [vmem:[#allocation13 + $0x100] sm:$0xff] }
 0xabb   : > { %3652 = vmatpush1.bf16.msra.mxu0 %v3651_v9  ;;  %v3699_v9 = vpack.c.bf16 %v2578_v8, %v2574_v7  ;;  %v2831_v8 = vld [vmem:[#allocation13 + $0x98] sm:$0xff] }
 0xb84   : > { %v2301_v33 = vpop.f32.mrb[12].mxu1 }
 0xb85   : > { %v3532_v34 = vpop.f32.mrb[13].mxu1  ;;  %3546 = vmatprep.mubr.msk.f32.mxu1 %vm810_vm1, %v2301_v33  ;;  %v2562_v33 = vld [vmem:[#allocation11 + $0xf0] sm:$0xff] }
 0xb86   : > { %v3691_v34 = vpack.c.bf16 %v2562_v33, %v2558_v32 }
 0xb88   : > { %v2377_v35 = vpop.f32.mrb[24].mxu0 }
 0xb89   : > { %v3537_v36 = vpop.f32.mrb[25].mxu0  ;;  %3547 = vmatmul.mubr.msk.f32.vlgmr.msra.gmra.mrb[10].mxu1 %vm810_vm1, %v2377_v35  ;;  %v2565_v35 = vld [vmem:[#allocation11 + $0x108] sm:$0xff] }
 0xb8a   : > { %2759 = vmatprep.mubr.f32.mxu1 %v4246_v55  ;;  %3680 = vmatpush1.bf16.msra.mxu1 %v3679_v56  ;;  %v2569_v36 = vld [vmem:[#allocation11 + $0x128] sm:$0xff]  ;;  %v2575_v56 = vld [vmem:[#allocation11 + $0x158] sm:$0xff] }
 0xb8b   : > { %3682 = vmatprep.subr.bf16.mxu1 %v3681_v5  ;;  %v3661_v38 = vpack.c.bf16 %v2569_v36, %v2565_v35  ;;  %v3697_v5 = vpack.c.bf16 %v2579_v59, %v2575_v56  ;;  %v2812_v59 = vld [vmem:[#allocation13] sm:$0xff] }
 0xb8e   : > { %3684 = vmatpush1.bf16.msra.mxu1 %v3683_v11  ;;  %v2585_v11 = vld [vmem:[#allocation11 + $0x1a8] sm:$0xff] }
 0xb8f   : > { %3686 = vmatprep.subr.bf16.mxu1 %v3685_v21  ;;  %v3673_v21 = vpack.c.bf16 %v2593_v19, %v2589_v17  ;;  %v2846_v17 = vld [vmem:[#allocation13 + $0x110] sm:$0xff]  ;;  %v2832_v19 = vld [vmem:[#allocation13 + $0xa0] sm:$0xff] }
 0xb92   : > { %3688 = vmatpush1.bf16.msra.mxu1 %v3687_v25  ;;  %v2590_v25 = vld [vmem:[#allocation11 + $0x1d0] sm:$0xff] }
 0xb93   : > { %3690 = vmatprep.subr.bf16.mxu1 %v3689_v61  ;;  %v3707_v27 = vpack.c.bf16 %v2594_v63, %v2590_v25  ;;  %v2861_v61 = vld [vmem:[#allocation13 + $0x188] sm:$0xff]  ;;  %v2816_v25 = vld [vmem:[#allocation13 + $0x20] sm:$0xff] }
 0xb96   : > { %3692 = vmatpush1.bf16.msra.mxu1 %v3691_v34 }
 0xb97   : > { %3694 = vmatprep.subr.bf16.mxu1 %v3693_v44 }
 0xb9a   : > { %3696 = vmatpush1.bf16.msra.mxu1 %v3695_v50 }
 0xb9b   : > { %3698 = vmatprep.subr.bf16.mxu1 %v3697_v5  ;;  %v2845_v5 = vld [vmem:[#allocation13 + $0x108] sm:$0xff] }
 0xb9e   : > { %3700 = vmatpush1.bf16.msra.mxu1 %v3699_v9  ;;  %v2862_v9 = vld [vmem:[#allocation13 + $0x190] sm:$0xff] }
 0xc5c   : > { %v3548_v12 = vpop.f32.mrb[10].mxu1 }
 0xc5d   : > { %v2457_v53 = vpop.f32.mrb[11].mxu1  ;;  %v2469_v62 = vadd.f32 %v3548_v12, %v4611_v0  ;;  %v2583_v12 = vld [vmem:[#allocation11 + $0x198] sm:$0xff] }
 0xc5e   : > { %v2468_v58 = vadd.f32 %v2457_v53, %v4613_v1  ;;  %v2553_v1 = vld [vmem:[#allocation11 + $0xa8] sm:$0xff]  ;;  %v2587_v53 = vld [vmem:[#allocation11 + $0x1b8] sm:$0xff] }
 0xc5f   : > { %v4810_v4 = vadd.f32 %v3229_v13, %v2469_v62  ;;  %v3653_v0 = vpack.c.bf16 %v2553_v1, %v2549_v16  ;;  %v2584_v62 = vld [vmem:[#allocation11 + $0x1a0] sm:$0xff]  ;;  %v2582_v16 = vld [vmem:[#allocation11 + $0x190] sm:$0xff] }
 0xc60   : > { %v4805_v14 = vadd.f32 %v3229_v13, %v2468_v58  ;;  %v3669_v13 = vpack.c.bf16 %v2585_v11, %v2581_v10  ;;  %v2580_v58 = vld [vmem:[#allocation11 + $0x180] sm:$0xff]  ;;  %v2586_v1 = vld [vmem:[#allocation11 + $0x1b0] sm:$0xff]  ;;  %v2863_v10 = vld [vmem:[#allocation13 + $0x198] sm:$0xff] }
 0xc61   : > { %v2486_v15 = vmul.f32 %v4810_v4, %v4810_v4  ;;  %3654 = vmatprep.subr.bf16.mxu0 %v3653_v0  ;;  %v3703_v0 = vpack.c.bf16 %v2586_v1, %v2582_v16  ;;  %v2815_v16 = vld [vmem:[#allocation13 + $0x18] sm:$0xff] }
 0xc62   : > { %2479 = vadd.xlane.f32.xlu0 %v4805_v14  ;;  %v2485_v51 = vmul.f32 %v4805_v14, %v4805_v14  ;;  %3656 = vmatpush1.bf16.msra.mxu0 %v3655_v22  ;;  %v3705_v22 = vpack.c.bf16 %v2595_v20, %v2591_v18  ;;  %v2833_v18 = vld [vmem:[#allocation13 + $0xa8] sm:$0xff]  ;;  %v2864_v20 = vld [vmem:[#allocation13 + $0x1a0] sm:$0xff] }
 0xc63   : > { %3658 = vmatprep.subr.bf16.mxu0 %v3657_v28  ;;  %v2828_v28 = vld [vmem:[#allocation13 + $0x80] sm:$0xff]  ;;  %v3717_v63 = vpack.c.bf16 %v2833_v18, %v2832_v19  ;;  %v2825_v19 = vld [vmem:[#allocation13 + $0x68] sm:$0xff] }
 0xc64   : > { %2487 = vadd.xlane.f32.xlu1 %v2485_v51  ;;  %v3701_v51 = vpack.c.bf16 %v2587_v53, %v2583_v12  ;;  %v3709_v31 = vpack.c.bf16 %v2829_v29, %v2828_v28  ;;  %v3743_v53 = vpack.c.bf16 %v2845_v5, %v2844_v3  ;;  %v2817_v28 = vld [vmem:[#allocation13 + $0x28] sm:$0xff]  ;;  %v2848_v29 = vld [vmem:[#allocation13 + $0x120] sm:$0xff]  ;;  %v2838_v5 = vld [vmem:[#allocation13 + $0xd0] sm:$0xff] }
 0xc66   : > { %2481 = vadd.xlane.f32.xlu0 %v4810_v4  ;;  %3660 = vmatpush1.bf16.msra.mxu0 %v3659_v2  ;;  %v3741_v2 = vpack.c.bf16 %v2861_v61, %v2860_v30  ;;  %v2849_v30 = vld [vmem:[#allocation13 + $0x128] sm:$0xff]  ;;  %v2834_v61 = vld [vmem:[#allocation13 + $0xb0] sm:$0xff] }
 0xc67   : > { %3662 = vmatprep.subr.bf16.mxu0 %v3661_v38  ;;  %3702 = vmatprep.subr.bf16.mxu1 %v3701_v51  ;;  %v3745_v51 = vpack.c.bf16 %v2863_v10, %v2862_v9  ;;  %v2871_v9 = vld [vmem:[#allocation13 + $0x1d8] sm:$0xff]  ;;  %v2822_v10 = vld [vmem:[#allocation13 + $0x50] sm:$0xff] }
 0xc68   : > { %3704 = vmatpush1.bf16.msra.mxu1 %v3703_v0  ;;  %v2847_v0 = vld [vmem:[#allocation13 + $0x118] sm:$0xff] }
 0xc69   : > { %3706 = vmatprep.subr.bf16.mxu1 %v3705_v22  ;;  %v3747_v24 = vpack.c.bf16 %v2847_v0, %v2846_v17  ;;  %v2873_v17 = vld [vmem:[#allocation13 + $0x1e8] sm:$0xff]  ;;  %v2824_v0 = vld [vmem:[#allocation13 + $0x60] sm:$0xff] }
 0xc6a   : > { %2489 = vadd.xlane.f32.xlu0 %v2486_v15  ;;  %3664 = vmatpush1.bf16.msra.mxu0 %v3663_v46  ;;  %v3671_v15 = vpack.c.bf16 %v2584_v62, %v2580_v58 }
 0xc6b   : > { %3666 = vmatprep.subr.bf16.mxu0 %v3665_v57  ;;  %v3231_v57 = vld [vmem:[%s4936_s17] ss:$0 sm:$0xff]  ;;  %s4848_s17 = scalar_lea.hbm %s4939_s22, %s3239_s13 }
 0xc6c   : > { %3708 = vmatpush1.bf16.msra.mxu1 %v3707_v27 }
 0xc6d   : > { %3742 = vmatprep.subr.bf16.mxu1 %v3741_v2  ;;  %v2835_v2 = vld [vmem:[#allocation13 + $0xb8] sm:$0xff] }
 0xc6e   : > { %3668 = vmatpush1.bf16.msra.mxu0 %v3667_v6  ;;  %v2830_v6 = vld [vmem:[#allocation13 + $0x90] sm:$0xff] }
 0xc6f   : > { %3670 = vmatprep.subr.bf16.mxu0 %v3669_v13  ;;  %v3711_v13 = vpack.c.bf16 %v2813_v60, %v2812_v59  ;;  %v3713_v62 = vpack.c.bf16 %v2831_v8, %v2830_v6  ;;  %v2852_v59 = vld [vmem:[#allocation13 + $0x140] sm:$0xff]  ;;  %v2853_v60 = vld [vmem:[#allocation13 + $0x148] sm:$0xff]  ;;  %v2839_v6 = vld [vmem:[#allocation13 + $0xd8] sm:$0xff] }
 0xc70   : > { %v3759_v3 = vpack.c.bf16 %v2853_v60, %v2852_v59  ;;  %v3729_v8 = vpack.c.bf16 %v2839_v6, %v2838_v5 }
 0xc72   : > { %3672 = vmatpush1.bf16.msra.mxu0 %v3671_v15  ;;  %v2814_v15 = vld [vmem:[#allocation13 + $0x10] sm:$0xff] }
 0xc73   : > { %3674 = vmatprep.subr.bf16.mxu0 %v3673_v21  ;;  %v2865_v21 = vld [vmem:[#allocation13 + $0x1a8] sm:$0xff]  ;;  %v3715_v23 = vpack.c.bf16 %v2815_v16, %v2814_v15  ;;  %v2872_v16 = vld [vmem:[#allocation13 + $0x1e0] sm:$0xff] }
 0xc74   : > { %v3749_v27 = vpack.c.bf16 %v2865_v21, %v2864_v20  ;;  %v2841_v15 = vld [vmem:[#allocation13 + $0xe8] sm:$0xff]  ;;  %v3765_v18 = vpack.c.bf16 %v2873_v17, %v2872_v16  ;;  %v3735_v20 = vpack.c.bf16 %v2825_v19, %v2824_v0  ;;  %v2856_v21 = vld [vmem:[#allocation13 + $0x160] sm:$0xff] }
 0xc76   : > { %3676 = vmatpush1.bf16.msra.mxu0 %v3675_v26 }
 0xc77   : > { %3710 = vmatprep.subr.bf16.mxu0 %v3709_v31  ;;  %v3751_v31 = vpack.c.bf16 %v2849_v30, %v2848_v29  ;;  %v2827_v29 = vld [vmem:[#allocation13 + $0x78] sm:$0xff] }
 0xcef   : > { %v2480_v32 = vpop.xlane.xlu0 %2479 }
 0xcf0   : > { %v2483_v33 = vmul.f32 0.0078125, %v2480_v32  ;;  %v2866_v32 = vld [vmem:[#allocation13 + $0x1b0] sm:$0xff] }
 0xcf1   : > { %v2488_v34 = vpop.xlane.xlu1 %2487 }
 0xcf2   : > { %v2493_v35 = vmul.f32 %v2483_v33, %v2483_v33  ;;  %v2491_v36 = vmul.f32 0.0078125, %v2488_v34  ;;  %v2497_v50 = vsub.f32 %v4805_v14, %v2483_v33  ;;  %v3721_v33 = vpack.c.bf16 %v2835_v2, %v2834_v61  ;;  %v2867_v34 = vld [vmem:[#allocation13 + $0x1b8] sm:$0xff] }
 0xcf3   : > { %v2482_v37 = vpop.xlane.xlu0 %2481  ;;  %v2859_v61 = vld [vmem:[#allocation13 + $0x178] sm:$0xff] }
 0xcf4   : > { %v2495_v38 = vsub.f32 %v2491_v36, %v2493_v35  ;;  %v2484_v39 = vmul.f32 0.0078125, %v2482_v37  ;;  %v2818_v35 = vld [vmem:[#allocation13 + $0x30] sm:$0xff]  ;;  %v2819_v36 = vld [vmem:[#allocation13 + $0x38] sm:$0xff]  ;;  %v3753_v37 = vpack.c.bf16 %v2867_v34, %v2866_v32 }
 0xcf5   : > { %v2596_v32 = vld [vmem:[%s4937_s30] sm:$0xf]  ;;  %s4159_s30 = scalar_lea.vmem %s4158_s24, 512 }
 0xcf6   : > { %v2499_v40 = vadd.f32 1e-05, %v2495_v38  ;;  %v2494_v44 = vmul.f32 %v2484_v39, %v2484_v39  ;;  %v2498_v11 = vsub.f32 %v4810_v4, %v2484_v39  ;;  %v3723_v38 = vpack.c.bf16 %v2819_v36, %v2818_v35  ;;  %v2850_v39 = vld [vmem:[#allocation13 + $0x130] sm:$0xff]  ;;  %p4161_p3 = scmp.lt.s32.totalorder %s4159_s30, %s4153_s15 }
 0xcf7   : > { %v2490_v41 = vpop.xlane.xlu0 %2489  ;;  %v2601_v34 = vrot.slane %v2596_v32, %v643_v43  ;;  %v2609_v35 = vrot.slane %v2596_v32, %v651_v48  ;;  %v2605_v36 = vrot.slane %v2596_v32, %v647_v45 }
 0xcf8   : > { %3935 = vrsqrt.f32 %v2499_v40  ;;  %v2492_v46 = vmul.f32 0.0078125, %v2490_v41  ;;  %v2851_v40 = vld [vmem:[#allocation13 + $0x138] sm:$0xff]  ;;  %p4162_p2 = por %p4161_p3, %p4160_p1 }
 0xcf9   : > { %v3755_v41 = vpack.c.bf16 %v2851_v40, %v2850_v39 }
 0xcfa   : > { %v2496_v47 = vsub.f32 %v2492_v46, %v2494_v44  ;;  %v2836_v44 = vld [vmem:[#allocation13 + $0xc0] sm:$0xff]  ;;  %v2837_v46 = vld [vmem:[#allocation13 + $0xc8] sm:$0xff]  ;;  %p4163_p8 = pnand %p4162_p2, %p4156_p13 }
 0xcfc   : > { %v2500_v49 = vadd.f32 1e-05, %v2496_v47  ;;  %v2868_v47 = vld [vmem:[#allocation13 + $0x1c0] sm:$0xff] }
 0xcfe   : > { %3937 = vrsqrt.f32 %v2500_v49  ;;  %v3725_v49 = vpack.c.bf16 %v2837_v46, %v2836_v44 }
 0xd02   : > { %v3936_v52 = vpop.eup %3935 }
 0xd03   : > { %v2503_v56 = vmul.f32 %v3936_v52, %v2497_v50  ;;  %v2869_v50 = vld [vmem:[#allocation13 + $0x1c8] sm:$0xff]  ;;  %v2820_v52 = vld [vmem:[#allocation13 + $0x40] sm:$0xff] }
 0xd05   : > { %v2512_v7 = vmul.f32 %v3230_v54, %v2503_v56  ;;  %v3757_v56 = vpack.c.bf16 %v2869_v50, %v2868_v47 }
 0xd07   : > { %v2521_v12 = vadd.f32 %v3231_v57, %v2512_v7  ;;  %v2870_v7 = vld [vmem:[#allocation13 + $0x1d0] sm:$0xff] }
 0xd08   : > { %v3938_v58 = vpop.eup %3937 }
 0xd09   : > { %2683 = vmatmul.mubr.f32.vlgmr.msra.gmra.mrb[26].mxu0 %v2521_v12  ;;  %2760 = vmatmul.mubr.f32.vlgmr.msra.gmra.mrb[14].mxu1 %v2521_v12  ;;  %v2504_v1 = vmul.f32 %v3938_v58, %v2498_v11  ;;  %v2823_v11 = vld [vmem:[#allocation13 + $0x58] sm:$0xff]  ;;  %v3761_v12 = vpack.c.bf16 %v2871_v9, %v2870_v7 }
 0xd0a   : > { %2688 = vmatprep.mubr.f32.mxu0 %v4246_v55  ;;  %2765 = vmatprep.mubr.f32.mxu1 %v4246_v55  ;;  %v3719_v55 = vpack.c.bf16 %v2817_v28, %v2816_v25  ;;  %v2855_v58 = vld [vmem:[#allocation13 + $0x158] sm:$0xff]  ;;  %v2826_v28 = vld [vmem:[#allocation13 + $0x70] sm:$0xff] }
 0xd0b   : > { %v2513_v22 = vmul.f32 %v3230_v54, %v2504_v1  ;;  %3712 = vmatpush3.bf16.msra.mxu0 %v3711_v13  ;;  %3744 = vmatpush3.bf16.msra.mxu1 %v3743_v53  ;;  %v2821_v54 = vld [vmem:[#allocation13 + $0x48] sm:$0xff]  ;;  %v3731_v13 = vpack.c.bf16 %v2823_v11, %v2822_v10  ;;  %v2854_v53 = vld [vmem:[#allocation13 + $0x150] sm:$0xff]  ;;  %v2843_v25 = vld [vmem:[#allocation13 + $0xf8] sm:$0xff] }
 0xd0c   : > { %3714 = vmatprep.subr.bf16.mxu0 %v3713_v62  ;;  %3746 = vmatprep.subr.bf16.mxu1 %v3745_v51  ;;  %v3763_v62 = vpack.c.bf16 %v2855_v58, %v2854_v53  ;;  %v2840_v51 = vld [vmem:[#allocation13 + $0xe0] sm:$0xff] }
 0xd0d   : > { %v2522_v26 = vadd.f32 %v3231_v57, %v2513_v22  ;;  %v3727_v57 = vpack.c.bf16 %v2821_v54, %v2820_v52  ;;  %v3733_v1 = vpack.c.bf16 %v2841_v15, %v2840_v51  ;;  %v2857_v22 = vld [vmem:[#allocation13 + $0x168] sm:$0xff] }
 0xd0f   : > { %2689 = vmatmul.mubr.f32.gmra.mrb[28].mxu0 %v2522_v26  ;;  %2766 = vmatmul.mubr.f32.gmra.mrb[16].mxu1 %v2522_v26  ;;  %v2874_v26 = vld [vmem:[#allocation13 + $0x1f0] sm:$0xff] }
 0xd10   : > { %3716 = vmatpush3.bf16.msra.mxu0 %v3715_v23  ;;  %3748 = vmatpush3.bf16.msra.mxu1 %v3747_v24  ;;  %v3767_v23 = vpack.c.bf16 %v2857_v22, %v2856_v21  ;;  %v2842_v24 = vld [vmem:[#allocation13 + $0xf0] sm:$0xff] }
 0xd11   : > { %3718 = vmatprep.subr.bf16.mxu0 %v3717_v63  ;;  %3750 = vmatprep.subr.bf16.mxu1 %v3749_v27  ;;  %v3737_v63 = vpack.c.bf16 %v2843_v25, %v2842_v24  ;;  %v2875_v27 = vld [vmem:[#allocation13 + $0x1f8] sm:$0xff] }
 0xd12   : > { %v3769_v30 = vpack.c.bf16 %v2875_v27, %v2874_v26 }
 0xd14   : > { %3720 = vmatpush3.bf16.msra.mxu0 %v3719_v55  ;;  %3752 = vmatpush3.bf16.msra.mxu1 %v3751_v31  ;;  %v3739_v55 = vpack.c.bf16 %v2827_v29, %v2826_v28  ;;  %v2858_v31 = vld [vmem:[#allocation13 + $0x170] sm:$0xff] }
 0xd15   : > { %3722 = vmatprep.subr.bf16.mxu0 %v3721_v33  ;;  %3754 = vmatprep.subr.bf16.mxu1 %v3753_v37  ;;  %v3771_v2 = vpack.c.bf16 %v2859_v61, %v2858_v31  ;;  %v2612_v33 = vsub.s32 3, %v4631_v42 }
 0xd17   : > { %v2613_v37 = vrot.slane %v2596_v32, %v2612_v33 }
 0xd18   : > { %3724 = vmatpush3.bf16.msra.mxu0 %v3723_v38  ;;  %3756 = vmatpush3.bf16.msra.mxu1 %v3755_v41 }
 0xd19   : > { %3726 = vmatprep.subr.bf16.mxu0 %v3725_v49  ;;  %3758 = vmatprep.subr.bf16.mxu1 %v3757_v56 }
 0xd1c   : > { %3728 = vmatpush3.bf16.msra.mxu0 %v3727_v57  ;;  %3760 = vmatpush3.bf16.msra.mxu1 %v3759_v3 }
 0xd1d   : > { %3730 = vmatprep.subr.bf16.mxu0 %v3729_v8  ;;  %3762 = vmatprep.subr.bf16.mxu1 %v3761_v12 }
 0xd20   : > { %3732 = vmatpush3.bf16.msra.mxu0 %v3731_v13  ;;  %3764 = vmatpush3.bf16.msra.mxu1 %v3763_v62 }
 0xd21   : > { %3734 = vmatprep.subr.bf16.mxu0 %v3733_v1  ;;  %3766 = vmatprep.subr.bf16.mxu1 %v3765_v18 }
 0xd24   : > { %3736 = vmatpush3.bf16.msra.mxu0 %v3735_v20  ;;  %3768 = vmatpush3.bf16.msra.mxu1 %v3767_v23 }
 0xd25   : > { %3738 = vmatprep.subr.bf16.mxu0 %v3737_v63  ;;  %3770 = vmatprep.subr.bf16.mxu1 %v3769_v30 }
 0xd28   : > { %3740 = vmatpush3.bf16.msra.mxu0 %v3739_v55  ;;  %3772 = vmatpush3.bf16.msra.mxu1 %v3771_v2 }
 0xddc   : > { %v2684_v38 = vpop.f32.mrb[26].mxu0  ;;  %v2761_v39 = vpop.f32.mrb[14].mxu1 }
 0xddd   : > { %v2685_v40 = vadd.f32 %v2684_v38, %v2601_v34  ;;  %v2762_v41 = vadd.f32 %v2761_v39, %v2609_v35  ;;  %v2686_v44 = vpop.f32.mrb[27].mxu0  ;;  %v2763_v46 = vpop.f32.mrb[15].mxu1 }
 0xdde   : > { %v2687_v47 = vadd.f32 %v2686_v44, %v2605_v36  ;;  %v2764_v49 = vadd.f32 %v2763_v46, %v2613_v37 }
 0xddf   : > { %v2780_v50 = vmul.f32 0.70710677, %v2685_v40  ;;  %v2782_v52 = vmul.f32 0.70710677, %v2762_v41  ;;  %v2772_v51 = vmul.f32 0.5, %v2685_v40  ;;  %v2774_v1 = vmul.f32 0.5, %v2762_v41 }
 0xde0   : > { %v2781_v54 = vmul.f32 0.70710677, %v2687_v47  ;;  %v2783_v56 = vmul.f32 0.70710677, %v2764_v49  ;;  %v2773_v58 = vmul.f32 0.5, %v2687_v47  ;;  %v2775_v15 = vmul.f32 0.5, %v2764_v49 }
 0xde1   : > { %3939 = verf.f32 %v2780_v50 }
 0xde2   : > { %3941 = verf.f32 %v2782_v52  ;;  %v2690_v43 = vpop.f32.mrb[28].mxu0  ;;  %v2767_v48 = vpop.f32.mrb[16].mxu1 }
 0xde3   : > { %3943 = verf.f32 %v2781_v54  ;;  %v2691_v42 = vadd.f32 %v2690_v43, %v2601_v34  ;;  %v2768_v45 = vadd.f32 %v2767_v48, %v2609_v35  ;;  %v2692_v57 = vpop.f32.mrb[29].mxu0  ;;  %v2769_v59 = vpop.f32.mrb[17].mxu1 }
 0xde4   : > { %3945 = verf.f32 %v2783_v56  ;;  %v2693_v60 = vadd.f32 %v2692_v57, %v2605_v36  ;;  %v2770_v3 = vadd.f32 %v2769_v59, %v2613_v37  ;;  %v3232_v36 = vld [vmem:[%s4938_s18] ss:$0 sm:$0xff] }
 0xde5   : > { %v2784_v5 = vmul.f32 0.70710677, %v2691_v42  ;;  %v2786_v6 = vmul.f32 0.70710677, %v2768_v45  ;;  %v2776_v27 = vmul.f32 0.5, %v2691_v42  ;;  %v2778_v30 = vmul.f32 0.5, %v2768_v45 }
 0xde6   : > { %v2785_v7 = vmul.f32 0.70710677, %v2693_v60  ;;  %v2787_v8 = vmul.f32 0.70710677, %v2770_v3  ;;  %v2777_v26 = vmul.f32 0.5, %v2693_v60  ;;  %v2779_v28 = vmul.f32 0.5, %v2770_v3 }
 0xde7   : > { %3947 = verf.f32 %v2784_v5  ;;  %v2530_v39 = vadd.f32 %v3232_v36, %v4805_v14  ;;  %v2531_v14 = vadd.f32 %v3232_v36, %v4810_v4 }
 0xde8   : > { %3949 = verf.f32 %v2786_v6 }
 0xde9   : > { %3951 = verf.f32 %v2785_v7 }
 0xdea   : > { %3953 = verf.f32 %v2787_v8 }
 0xdeb   : > { %v3940_v9 = vpop.eup %3939 }
 0xdec   : > { %v3942_v10 = vpop.eup %3941  ;;  %v2796_v12 = vadd.f32 1.0, %v3940_v9 }
 0xded   : > { %v3944_v11 = vpop.eup %3943  ;;  %v2798_v53 = vadd.f32 1.0, %v3942_v10 }
 0xdee   : > { %v3946_v13 = vpop.eup %3945  ;;  %v2797_v62 = vadd.f32 1.0, %v3944_v11  ;;  %v2804_v19 = vmul.f32 %v2796_v12, %v2772_v51 }
 0xdef   : > { %v2799_v16 = vadd.f32 1.0, %v3946_v13  ;;  %v2806_v21 = vmul.f32 %v2798_v53, %v2774_v1 }
 0xdf0   : > { %v2805_v17 = vmul.f32 %v2797_v62, %v2773_v58 }
 0xdf1   : > { %v3948_v0 = vpop.eup %3947  ;;  %v2807_v18 = vmul.f32 %v2799_v16, %v2775_v15 }
 0xdf2   : > { %v3950_v20 = vpop.eup %3949  ;;  %2940 = vmatprep.mubr.f32.mxu0 %v2805_v17  ;;  %v2800_v23 = vadd.f32 1.0, %v3948_v0 }
 0xdf3   : > { %v3952_v22 = vpop.eup %3951  ;;  %3015 = vmatprep.mubr.f32.mxu1 %v2807_v18  ;;  %2941 = vmatmul.mubr.f32.vlgmr.msra.gmra.mrb[30].mxu0 %v2804_v19  ;;  %v2802_v25 = vadd.f32 1.0, %v3950_v20 }
 0xdf4   : > { %v3954_v24 = vpop.eup %3953  ;;  %v2801_v63 = vadd.f32 1.0, %v3952_v22  ;;  %3016 = vmatmul.mubr.f32.vlgmr.msra.gmra.mrb[18].mxu1 %v2806_v21  ;;  %v2808_v61 = vmul.f32 %v2800_v23, %v2776_v27 }
 0xdf5   : > { %v2803_v29 = vadd.f32 1.0, %v3954_v24  ;;  %v2810_v2 = vmul.f32 %v2802_v25, %v2778_v30 }
 0xdf6   : > { %v2809_v55 = vmul.f32 %v2801_v63, %v2777_v26 }
 0xdf7   : > { %v2811_v31 = vmul.f32 %v2803_v29, %v2779_v28 }
 0xdf8   : > { %2945 = vmatprep.mubr.f32.mxu0 %v2809_v55 }
 0xdf9   : > { %3020 = vmatprep.mubr.f32.mxu1 %v2811_v31  ;;  %2946 = vmatmul.mubr.f32.gmra.mrb[32].mxu0 %v2808_v61 }
 0xdfa   : > { %3021 = vmatmul.mubr.f32.gmra.mrb[20].mxu1 %v2810_v2 }
 0xec6   : > { %v3346_v32 = vpop.f32.mrb[30].mxu0 }
 0xec7   : > { %v3384_v33 = vpop.f32.mrb[18].mxu1  ;;  %v3347_v34 = vpop.f32.mrb[31].mxu0 }
 0xec8   : > { %v3348_v35 = vadd.f32 %v3347_v34, %v3346_v32  ;;  %v3385_v37 = vpop.f32.mrb[19].mxu1 }
 0xec9   : > { %v3386_v38 = vadd.f32 %v3385_v37, %v3384_v33 }
 0xecb   : > { %v3018_v40 = vadd.f32 %v3386_v38, %v3348_v35 }
 0xecc   : > { %v3349_v41 = vpop.f32.mrb[32].mxu0 }
 0xecd   : > { %v3026_v44 = vadd.f32 %v3018_v40, %v2530_v39  ;;  %v3387_v46 = vpop.f32.mrb[20].mxu1  ;;  %v3350_v47 = vpop.f32.mrb[33].mxu0 }
 0xece   : > { %v3351_v49 = vadd.f32 %v3350_v47, %v3349_v41  ;;  %v3388_v50 = vpop.f32.mrb[21].mxu1 }
 0xecf   : > { %3028 = vst [vmem:[%s541_s20] sm:$0xff] %v3026_v44  ;;  %v3389_v52 = vadd.f32 %v3388_v50, %v3387_v46 }
 0xed1   : > { %v3023_v54 = vadd.f32 %v3389_v52, %v3351_v49 }
 0xed3   : > { %v3027_v56 = vadd.f32 %v3023_v54, %v2531_v14 }
 0xed5   : > { %3029 = vst [vmem:[%s541_s20 + $0x8] sm:$0xff] %v3027_v56 }
 0xed6   : > { %4166 = shalt.err (!%p4163_p8)
}
 0xed7   : > { %s4167_s3 = scalar_lea.hbm %s4848_s17, 256  ;;  %s4171_s20 = scalar_lea.hbm %s4939_s22, 512 }
 0xed8   : > { %p4168_p10 = scmp.ne.s32.totalorder %s4848_s17, %s4167_s3  ;;  %p4172_p0 = scmp.lt.u32.totalorder %s4848_s17, %s4939_s22 }
 0xed9   : > { %p4173_p5 = scmp.lt.u32.totalorder %s4171_s20, %s4167_s3  ;;  %p4175_p6 = scmp.lt.u32.totalorder %s4167_s3, %s4848_s17 }
 0xeda   : > { %p4169_p11 = pnand %p4168_p10, %p4940_p9 }
 0xedb   : > { %p4174_p7 = por %p4173_p5, %p4172_p0 }
 0xedc   : > { %p4170_p12 = pneg %p4169_p11 }
 0xedd   : > { %p4176_p4 = por %p4175_p6, %p4174_p7 }
 0xedf   : > { %p4177_p13 = pnand %p4176_p4, %p4170_p12 }
 0xee1   : > { %4180 = shalt.err (!%p4177_p13)
}
 0xee2   : > { %s4252_s19 = smov 128   ;;  %s4253_s15 = smov 8  }
 0xee3   : > { %3805 = dma.vmem_to_hbm [thread:$0]  (%p4940_p9), %s4842_s7, 256, %s4848_s17, %s3031_s1, %s4252_s19, %s4252_s19, %s4253_s15  }
 0xee4 PF: > { %s3059_s14 = sand.u32 1, %s4219_s25   ;;  %p4941_p1 = scmp.ne.s32.totalorder %s4926_s12, 0 }
 0xee5   : > { %p4942_p3 = scmp.ge.s32.totalorder %s4231_s28, 2  ;;  %s3060_s24 = scalar_lea.sflag [#allocation4], %s3059_s14 }
 0xee7   : > { %p3831_p2 = pnand %p4942_p3, %p4941_p1 }
 0xee9   : > { %4214 = dma.done.wait (!%p3831_p2), %s3060_s24, 256  }
 0xeea   : > { %4216 = vsyncadd (!%p3831_p2), %s3060_s24, 4294967040  ;;  %p29_p8 = scmp.ge.s32.totalorder %s4507_s16, 4   ;;  %s4943_s25 = smov %s4223_s26 }
 0xeeb   : > { %s4944_s26 = smov %s4227_s27  ;;  %s4945_s27 = smov %s4518_s10 }
 0xeec   : > { %s4946_s28 = smov %s4507_s16  ;;  %31 = sbr.rel (!%p29_p8) target bundleno = 16 (0x10), region = 141 }
 0xef3   :  { %3065 = vsyncpa [#allocation3], 1 }
 0xef4   :  { %3067 = vsyncpa [#allocation3 + $0x1], 1 }
 0xef5   :  { %3068 = vsyncpa [#allocation6], 1 }
 0xef6   :  { %3069 = vsyncpa [#allocation9], 1 }
 0xef7   :  { %3070 = vsyncpa [#allocation12], 1 }
 0xef8   :  { %3071 = vsyncpa [#allocation4], 1 }
 0xef9   :  { %3073 = vsyncpa [#allocation4 + $0x1], 1 }

// kernel: tpu_custom_call.1
= control target key start
LH: loop header
LB: loop body
LE: loop exit
PB: predicated region body
PF: predicated region fallthrough
CT: control target
= control target key end

     0   :  { %s4892_s0 = inlined_call_operand.hbm [shape: f32[4,8,128], index: 0, kind: input, shape index: {}]   ;;  %s4893_s1 = inlined_call_operand.hbm [shape: f32[1,128], index: 1, kind: input, shape index: {}]   ;;  %s4894_s2 = inlined_call_operand.hbm [shape: f32[1,128], index: 2, kind: input, shape index: {}]   ;;  %s4895_s3 = inlined_call_operand.hbm [shape: f32[128,384], index: 3, kind: input, shape index: {}]   ;;  %s4896_s4 = inlined_call_operand.vmem [shape: f32[1,384], index: 4, kind: input, shape index: {}]   ;;  %s4897_s5 = inlined_call_operand.hbm [shape: f32[128,128], index: 5, kind: input, shape index: {}]   ;;  %s4898_s6 = inlined_call_operand.vmem [shape: f32[1,128], index: 6, kind: input, shape index: {}]   ;;  %s4899_s7 = inlined_call_operand.vmem [shape: f32[1,128], index: 7, kind: input, shape index: {}]   ;;  %s4900_s8 = inlined_call_operand.vmem [shape: f32[1,128], index: 8, kind: input, shape index: {}]   ;;  %s4901_s9 = inlined_call_operand.hbm [shape: f32[128,512], index: 9, kind: input, shape index: {}]   ;;  %s4902_s10 = inlined_call_operand.vmem [shape: f32[1,512], index: 10, kind: input, shape index: {}]   ;;  %s4903_s11 = inlined_call_operand.hbm [shape: f32[512,128], index: 11, kind: input, shape index: {}]   ;;  %s4904_s12 = inlined_call_operand.vmem [shape: f32[1,128], index: 12, kind: input, shape index: {}]   ;;  %s4905_s13 = inlined_call_operand.hbm [shape: f32[4,8,128], index: 13, kind: output, shape index: {}]  }
   0x1   :  { %4910 = sst [smem:[#allocation20_spill]] %s4893_s1 }
   0x2   :  { %4911 = sst [smem:[#allocation21_spill]] %s4895_s3 }
   0x3   :  { %4912 = sst [smem:[#allocation22_spill]] %s4899_s7 }
   0x4   :  { %4913 = sst [smem:[#allocation23_spill]] %s4900_s8 }
   0x5   :  { %4914 = sst [smem:[#allocation24_spill]] %s4902_s10 }
   0x6   :  { %4915 = sst [smem:[#allocation25_spill]] %s4904_s12 }
   0x7   :  { %4916 = sst [smem:[#allocation26_spill]] %s4905_s13 }
   0x8   :  { %18 = vsyncpa [#allocation3], 0 }
   0x9   :  { %20 = vsyncpa [#allocation3 + $0x1], 0 }
   0xa   :  { %21 = vsyncpa [#allocation6], 0 }
   0xb   :  { %22 = vsyncpa [#allocation9], 0 }
   0xc   :  { %23 = vsyncpa [#allocation12], 0 }
   0xd   :  { %24 = vsyncpa [#allocation4], 0 }
   0xe   :  { %26 = vsyncpa [#allocation4 + $0x1], 0  ;;  %s4324_s25 = smov 0   ;;  %s4326_s26 = smov 0  }
   0xf   :  { %s4328_s27 = smov 0   ;;  %s4330_s28 = smov 0  }
  0x10 LB: > { %s4233_s29 = smov [#allocation5]   ;;  %s4345_s14 = sadd.s32 4294967295, %s4231_s28   ;;  %s4231_s28 = sphi %s4330_s28, %s4946_s28   ;;  %s4227_s27 = sphi %s4328_s27, %s4945_s27   ;;  %s4223_s26 = sphi %s4326_s26, %s4944_s26   ;;  %s4219_s25 = sphi %s4324_s25, %s4943_s25  }
  0x11   : > { %s354_s30 = sshll.u32 %s4233_s29, 4  ;;  %p3175_p0 = scmp.ge.s32.totalorder %s4231_s28, 1  ;;  %s4350_s30 = int_to_ptr.vmem [resolvable:$true] %s354_s30 }
  0x12   : > { %p4907_p1 = scmp.eq.s32.totalorder %s4345_s14, 0  ;;  %p341_p2 = scmp.lt.s32.totalorder %s4231_s28, 3 }
  0x13   : > { %s4234_s16 = smov [#allocation8]   ;;  %s4235_s19 = smov [#allocation11]  }
  0x14   : > { %p4352_p3 = pnand %p3175_p0, %p341_p2  ;;  %s375_s17 = sshll.u32 %s4234_s16, 4  ;;  %s4359_s17 = int_to_ptr.vmem [resolvable:$true] %s375_s17 }
  0x15   : > { %s413_s20 = sshll.u32 %s4235_s19, 4  ;;  %s4919_s1 = sld [smem:[#allocation20_spill]]  ;;  %s4367_s20 = int_to_ptr.vmem [resolvable:$true] %s413_s20 }
  0x16   : > { %s4917_s15 = scalar_select %p4352_p3, 1, 0 }
  0x17   : > { %p3807_p5 = pneg %p4352_p3 }
  0x19   : > { %p4363_p6 = pnand %p3807_p5, %p4907_p1 }
  0x1b   : > { %s3955_s23 = scalar_lea.hbm %s4919_s1, 16  ;;  %p4377_p8 = pneg %p4363_p6 }
  0x1c   : > { %p3956_p7 = scmp.ne.s32.totalorder %s4919_s1, %s3955_s23  ;;  %p3962_p11 = scmp.lt.u32.totalorder %s3955_s23, %s4919_s1 }
  0x1e   : > { %p3958_p9 = pnand %p4377_p8, %p3956_p7 }
  0x20   : > { %p3959_p10 = pneg %p3958_p9 }
  0x22   : > { %p3964_p12 = pnand %p3962_p11, %p3959_p10 }
  0x24   : > { %3967 = shalt.err (!%p3964_p12)
}
  0x25   : > { %s3968_s21 = scalar_lea.vmem %s4350_s30, 16  ;;  %s3975_s22 = scalar_lea.vmem %s4350_s30, 32 }
  0x26   : > { %p3969_p13 = scmp.ne.s32.totalorder %s4350_s30, %s3968_s21  ;;  %p3976_p5 = scmp.lt.s32.totalorder %s4350_s30, %s4350_s30 }
  0x27   : > { %p3977_p7 = scmp.lt.s32.totalorder %s3975_s22, %s3968_s21 }
  0x28   : > { %p3971_p0 = pnand %p3969_p13, %p4377_p8 }
  0x29   : > { %p3978_p9 = por %p3977_p7, %p3976_p5 }
  0x2a   : > { %p3972_p2 = pneg %p3971_p0 }
  0x2c   : > { %p3979_p4 = pnand %p3978_p9, %p3972_p2 }
  0x2e   : > { %3982 = shalt.err (!%p3979_p4)
}
  0x2f   : > { %3810 = dma.hbm_to_vmem [thread:$0]  (!%p4363_p6), %s4919_s1, 16, %s4350_s30, [#allocation6]  }
  0x30   : > { %s4921_s3 = sld [smem:[#allocation21_spill]] }
  0x36   : > { %s3983_s19 = scalar_lea.hbm %s4921_s3, 6144 }
  0x37   : > { %p3984_p10 = scmp.ne.s32.totalorder %s4921_s3, %s3983_s19  ;;  %p3990_p4 = scmp.lt.u32.totalorder %s3983_s19, %s4921_s3 }
  0x39   : > { %p3986_p11 = pnand %p3984_p10, %p4377_p8 }
  0x3b   : > { %p3987_p12 = pneg %p3986_p11 }
  0x3d   : > { %p3992_p13 = pnand %p3990_p4, %p3987_p12 }
  0x3f   : > { %3995 = shalt.err (!%p3992_p13)
}
  0x40   : > { %s3996_s30 = scalar_lea.vmem %s4359_s17, 6144  ;;  %p4004_p7 = scmp.lt.s32.totalorder %s4359_s17, %s4359_s17 }
  0x41   : > { %p3997_p0 = scmp.ne.s32.totalorder %s4359_s17, %s3996_s30  ;;  %p4005_p9 = scmp.lt.s32.totalorder %s3996_s30, %s3996_s30 }
  0x43   : > { %p3999_p2 = pnand %p3997_p0, %p4377_p8  ;;  %p4006_p10 = por %p4005_p9, %p4004_p7 }
  0x45   : > { %p4000_p5 = pneg %p3999_p2 }
  0x47   : > { %p4007_p11 = pnand %p4006_p10, %p4000_p5 }
  0x49   : > { %4010 = shalt.err (!%p4007_p11)
}
  0x4a   : > { %s4236_s10 = smov 384   ;;  %s4237_s12 = smov 24  }
  0x4b   : > { %3816 = dma.hbm_to_vmem [thread:$0]  (!%p4363_p6), %s4921_s3, 6144, %s4359_s17, [#allocation9], %s4236_s10, %s4236_s10, %s4237_s12  }
  0x4c   : > { %s4011_s19 = scalar_lea.hbm %s4901_s9, 8192 }
  0x4d   : > { %p4012_p12 = scmp.ne.s32.totalorder %s4901_s9, %s4011_s19  ;;  %p4018_p0 = scmp.lt.u32.totalorder %s4011_s19, %s4901_s9 }
  0x4f   : > { %p4014_p4 = pnand %p4012_p12, %p4377_p8 }
  0x51   : > { %p4015_p13 = pneg %p4014_p4 }
  0x53   : > { %p4020_p2 = pnand %p4018_p0, %p4015_p13 }
  0x55   : > { %4023 = shalt.err (!%p4020_p2)
}
  0x56   : > { %s4024_s17 = scalar_lea.vmem %s4367_s20, 8192  ;;  %p4032_p10 = scmp.lt.s32.totalorder %s4367_s20, %s4367_s20 }
  0x57   : > { %p4025_p5 = scmp.ne.s32.totalorder %s4367_s20, %s4024_s17  ;;  %p4033_p11 = scmp.lt.s32.totalorder %s4024_s17, %s4024_s17 }
  0x59   : > { %p4027_p7 = pnand %p4025_p5, %p4377_p8  ;;  %p4034_p12 = por %p4033_p11, %p4032_p10 }
  0x5b   : > { %p4028_p9 = pneg %p4027_p7 }
  0x5d   : > { %p4035_p4 = pnand %p4034_p12, %p4028_p9 }
  0x5f   : > { %4038 = shalt.err (!%p4035_p4)
}
  0x60   : > { %s4238_s10 = smov 512   ;;  %s4239_s1 = smov 32  }
  0x61   : > { %3822 = dma.hbm_to_vmem [thread:$0]  (!%p4363_p6), %s4901_s9, 8192, %s4367_s20, [#allocation12], %s4238_s10, %s4238_s10, %s4239_s1  }
  0x62   : > { %s4240_s23 = smov [#allocation7]   ;;  %s4241_s29 = smov [#allocation10]  }
  0x63   : > { %s365_s24 = sshll.u32 %s4240_s23, 4  ;;  %s391_s19 = sshll.u32 %s4241_s29, 4  ;;  %s366_s24 = int_to_ptr.vmem [resolvable:$true] %s365_s24  ;;  %s392_s19 = int_to_ptr.vmem [resolvable:$true] %s391_s19 }
  0x64   : > { %s4039_s30 = scalar_lea.hbm %s4894_s2, 16 }
  0x65   : > { %p4040_p13 = scmp.ne.s32.totalorder %s4894_s2, %s4039_s30  ;;  %p4046_p5 = scmp.lt.u32.totalorder %s4039_s30, %s4894_s2 }
  0x67   : > { %p4042_p0 = pnand %p4040_p13, %p4377_p8 }
  0x69   : > { %p4043_p2 = pneg %p4042_p0 }
  0x6b   : > { %p4048_p7 = pnand %p4046_p5, %p4043_p2 }
  0x6d   : > { %4051 = shalt.err (!%p4048_p7)
}
  0x6e   : > { %s4052_s20 = scalar_lea.vmem %s366_s24, 16  ;;  %s4059_s10 = scalar_lea.vmem %s366_s24, 32 }
  0x6f   : > { %p4053_p9 = scmp.ne.s32.totalorder %s366_s24, %s4052_s20  ;;  %p4060_p12 = scmp.lt.s32.totalorder %s366_s24, %s366_s24 }
  0x70   : > { %p4061_p4 = scmp.lt.s32.totalorder %s4059_s10, %s4052_s20 }
  0x71   : > { %p4055_p10 = pnand %p4053_p9, %p4377_p8 }
  0x72   : > { %p4062_p1 = por %p4061_p4, %p4060_p12 }
  0x73   : > { %p4056_p11 = pneg %p4055_p10 }
  0x75   : > { %p4063_p3 = pnand %p4062_p1, %p4056_p11 }
  0x77   : > { %4066 = shalt.err (!%p4063_p3)
}
  0x78   : > { %3813 = dma.hbm_to_vmem [thread:$0]  (!%p4363_p6), %s4894_s2, 16, %s366_s24, [#allocation6]  }
  0x79   : > { %s4067_s12 = scalar_lea.hbm %s4897_s5, 2048 }
  0x7a   : > { %p4068_p13 = scmp.ne.s32.totalorder %s4897_s5, %s4067_s12  ;;  %p4074_p3 = scmp.lt.u32.totalorder %s4067_s12, %s4897_s5 }
  0x7c   : > { %p4070_p0 = pnand %p4068_p13, %p4377_p8 }
  0x7e   : > { %p4071_p1 = pneg %p4070_p0 }
  0x80   : > { %p4076_p2 = pnand %p4074_p3, %p4071_p1 }
  0x82   : > { %4079 = shalt.err (!%p4076_p2)
}
  0x83   : > { %s4080_s22 = scalar_lea.vmem %s392_s19, 2048  ;;  %p4088_p10 = scmp.lt.s32.totalorder %s392_s19, %s392_s19 }
  0x84   : > { %p4081_p5 = scmp.ne.s32.totalorder %s392_s19, %s4080_s22  ;;  %p4089_p11 = scmp.lt.s32.totalorder %s4080_s22, %s4080_s22 }
  0x86   : > { %p4083_p7 = pnand %p4081_p5, %p4377_p8  ;;  %p4090_p12 = por %p4089_p11, %p4088_p10 }
  0x88   : > { %p4084_p9 = pneg %p4083_p7 }
  0x8a   : > { %p4091_p4 = pnand %p4090_p12, %p4084_p9 }
  0x8c   : > { %4094 = shalt.err (!%p4091_p4)
}
  0x8d   : > { %s4242_s24 = smov 128   ;;  %s4243_s30 = smov 8  }
  0x8e   : > { %3819 = dma.hbm_to_vmem [thread:$0]  (!%p4363_p6), %s4897_s5, 2048, %s392_s19, [#allocation9], %s4242_s24, %s4242_s24, %s4243_s30  }
  0x8f   : > { %s4244_s10 = smov [#allocation13]   ;;  %s4095_s8 = scalar_lea.hbm %s4903_s11, 8192 }
  0x90   : > { %s429_s3 = sshll.u32 %s4244_s10, 4  ;;  %p4096_p13 = scmp.ne.s32.totalorder %s4903_s11, %s4095_s8  ;;  %s430_s3 = int_to_ptr.vmem [resolvable:$true] %s429_s3 }
  0x91   : > { %p4102_p3 = scmp.lt.u32.totalorder %s4095_s8, %s4903_s11 }
  0x92   : > { %p4098_p0 = pnand %p4096_p13, %p4377_p8 }
  0x94   : > { %p4099_p1 = pneg %p4098_p0 }
  0x96   : > { %p4104_p2 = pnand %p4102_p3, %p4099_p1 }
  0x98   : > { %4107 = shalt.err (!%p4104_p2)
}
  0x99   : > { %s4108_s19 = scalar_lea.vmem %s430_s3, 8192  ;;  %p4116_p10 = scmp.lt.s32.totalorder %s430_s3, %s430_s3 }
  0x9a   : > { %p4109_p5 = scmp.ne.s32.totalorder %s430_s3, %s4108_s19  ;;  %p4117_p11 = scmp.lt.s32.totalorder %s4108_s19, %s4108_s19 }
  0x9c   : > { %p4111_p7 = pnand %p4109_p5, %p4377_p8  ;;  %p4118_p12 = por %p4117_p11, %p4116_p10 }
  0x9e   : > { %p4112_p9 = pneg %p4111_p7 }
  0xa0   : > { %p4119_p4 = pnand %p4118_p12, %p4112_p9 }
  0xa2   : > { %4122 = shalt.err (!%p4119_p4)
}
  0xa3   : > { %3825 = dma.hbm_to_vmem [thread:$0]  (!%p4363_p6), %s4903_s11, 8192, %s430_s3, [#allocation12], %s4242_s24, %s4242_s24, %s4243_s30  }
  0xa4   : > { %s3174_s18 = sadd.s32 4294967294, %s4231_s28   ;;  %s4507_s16 = sadd.s32 1, %s4231_s28  }
  0xa5   : > { %s36_s17 = ssub.s32 %s4231_s28, %s4507_s16  ;;  %s39_s20 = sadd.s32 1, %s4227_s27 }
  0xa6   : > { %p37_p8 = scmp.eq.s32.totalorder %s36_s17, 0  ;;  %p46_p13 = scmp.ne.s32.totalorder %s4227_s27, %s4223_s26 }
  0xa7   : > { %p47_p0 = scmp.eq.s32.totalorder %s4231_s28, 0  ;;  %p52_p1 = scmp.ne.s32.totalorder %s4223_s26, %s4219_s25 }
  0xa8   : > { %s4518_s10 = scalar_select %p37_p8, %s4227_s27, %s39_s20  }
  0xa9   : > { %p4520_p3 = por %p47_p0, %p46_p13  ;;  %p4923_p2 = scmp.eq.s32.totalorder %s4345_s14, 0 }
  0xaa   : > { %p328_p5 = scmp.eq.s32.totalorder %s4345_s14, 1  ;;  %p334_p7 = scmp.eq.s32.totalorder %s3174_s18, 1 }
  0xab   : > { %p4526_p6 = por %p4923_p2, %p52_p1  ;;  %p3840_p9 = scmp.lt.s32.totalorder %s4231_s28, 2 }
  0xac   : > { %s446_s7 = sand.u32 1, %s4227_s27   ;;  %p4533_p10 = por %p328_p5, %p46_p13 }
  0xad   : > { %p4537_p11 = por %p334_p7, %p52_p1  ;;  %s3183_s13 = sshll.u32 %s446_s7, 4 }
  0xae   : > { %s4925_s8 = scalar_select %p4533_p10, 1, 0 }
  0xaf   : > { %s4926_s12 = scalar_select %p4537_p11, 1, 0 }
  0xb0   : > { %s3238_s23 = sshll.u32 %s4231_s28, 8  ;;  %s450_s22 = scalar_lea.vmem [#allocation2], %s3183_s13 }
  0xb1   : > { %s4545_s21 = scalar_lea.hbm %s4892_s0, %s3238_s23  ;;  %s457_s18 = sshll.u32 %s450_s22, 4  ;;  %s4547_s18 = int_to_ptr.vmem [resolvable:$true] %s457_s18 }
  0xb2   : > { %p4551_p12 = pnand %p3840_p9, %p4520_p3  ;;  %s4555_s20 = scalar_lea.sflag [#allocation3], %s446_s7 }
  0xb3   : > { %s4123_s29 = scalar_lea.hbm %s4545_s21, 256  ;;  %s4128_s1 = scalar_lea.hbm %s4892_s0, 512 }
  0xb4   : > { %p4124_p4 = scmp.ne.s32.totalorder %s4545_s21, %s4123_s29  ;;  %p4125_p8 = pneg %p4551_p12 }
  0xb5   : > { %p4129_p1 = scmp.lt.u32.totalorder %s4545_s21, %s4892_s0  ;;  %p4130_p3 = scmp.lt.u32.totalorder %s4128_s1, %s4123_s29 }
  0xb6   : > { %p4126_p13 = pnand %p4125_p8, %p4124_p4  ;;  %p4132_p5 = scmp.lt.u32.totalorder %s4123_s29, %s4545_s21 }
  0xb7   : > { %p4131_p2 = por %p4130_p3, %p4129_p1 }
  0xb8   : > { %p4127_p0 = pneg %p4126_p13 }
  0xb9   : > { %p4133_p7 = por %p4132_p5, %p4131_p2 }
  0xbb   : > { %p4134_p9 = pnand %p4133_p7, %p4127_p0 }
  0xbd   : > { %4137 = shalt.err (!%p4134_p9)
}
  0xbe   : > { %s4138_s7 = scalar_lea.vmem %s4547_s18, 256  ;;  %s4245_s13 = smov [#allocation2]  }
  0xbf   : > { %p4139_p4 = scmp.ne.s32.totalorder %s4547_s18, %s4138_s7  ;;  %s4143_s23 = sshll.u32 %s4245_s13, 4  ;;  %s4144_s23 = int_to_ptr.vmem [resolvable:$false] %s4143_s23 }
  0xc0   : > { %s4145_s19 = scalar_lea.vmem %s4144_s23, 512  ;;  %p4146_p10 = scmp.lt.s32.totalorder %s4547_s18, %s4144_s23 }
  0xc1   : > { %p4141_p13 = pnand %p4139_p4, %p4125_p8  ;;  %p4147_p1 = scmp.lt.s32.totalorder %s4145_s19, %s4138_s7 }
  0xc3   : > { %p4142_p11 = pneg %p4141_p13  ;;  %p4148_p3 = por %p4147_p1, %p4146_p10 }
  0xc5   : > { %p4149_p2 = pnand %p4148_p3, %p4142_p11 }
  0xc7   : > { %4152 = shalt.err (!%p4149_p2)
}
  0xc8   : > { %3829 = dma.hbm_to_vmem [thread:$0]  (!%p4551_p12), %s4545_s21, 256, %s4547_s18, %s4555_s20, %s4242_s24, %s4242_s24, %s4243_s30  }
  0xc9   : > { %p4928_p8 = scmp.ne.s32.totalorder %s4917_s15, 0 }
  0xca   : > { %s4589_s29 = sand.u32 (!%p4928_p8), 1, %s4223_s26  }
  0xcb   : > { %469 = sbr.rel (%p4928_p8) target bundleno = 3812 (0xee4), region = 72  ;;  %s3187_s1 = sshll.u32 (!%p4928_p8), %s4589_s29, 4 }
  0xcc   : > { %s472_s22 = scalar_lea.sflag (!%p4928_p8), [#allocation3], %s4589_s29  ;;  %s475_s17 = scalar_lea.vmem (!%p4928_p8), [#allocation2], %s3187_s1 }
  0xd2   : > { %4198 = dma.done.wait (%p4526_p6), %s472_s22, 256  }
  0xd3   : > { %4200 = vsyncadd (%p4526_p6), %s472_s22, 4294967040  ;;  %p4929_p10 = scmp.eq.s32.totalorder %s4345_s14, 0 }
  0xd5   : > { %4202 = dma.done.wait (%p4929_p10), [#allocation6], 32   ;;  %p4930_p11 = pmov %p4929_p10 }
  0xd6   : > { %p4931_p12 = pmov %p4929_p10 }
  0xd7   : > { %4204 = vsyncadd (%p4930_p11), [#allocation6], 4294967264 }
  0xd8   : > { %4206 = dma.done.wait (%p4931_p12), [#allocation9], 8192   ;;  %p4932_p0 = pmov %p4929_p10 }
  0xda   : > { %4208 = vsyncadd (%p4932_p0), [#allocation9], 4294959104  ;;  %p4933_p5 = pmov %p4932_p0 }
  0xdb   : > { %p4934_p7 = pmov %p4932_p0 }
  0xdc   : > { %4210 = dma.done.wait (%p4933_p5), [#allocation12], 16384  }
  0xdd   : > { %4212 = vsyncadd (%p4934_p7), [#allocation12], 4294950912  ;;  %v4611_v0 = vld [vmem:[%s475_s17 + $0x8] sm:$0xff]  ;;  %v4613_v1 = vld [vmem:[%s475_s17] sm:$0xff]  ;;  %v4246_v55 = vmov 0.0   ;;  %vm4247_vm0 = vmmov 0  }
  0xde   : > { %v592_v2 = vld [vmem:[#allocation8 + $0x8] sm:$0xff]  ;;  %548 = vadd.xlane.f32.xlu1 %v4611_v0  ;;  %546 = vadd.xlane.f32.xlu0 %v4613_v1  ;;  %v554_v3 = vmul.f32 %v4611_v0, %v4611_v0  ;;  %v553_v4 = vmul.f32 %v4613_v1, %v4613_v1  ;;  %v595_v5 = vld [vmem:[#allocation8 + $0x20] sm:$0xff]  ;;  %v594_v7 = vld [vmem:[#allocation8 + $0x18] sm:$0xff]  ;;  %vm810_vm1 = vcmask 261120   ;;  %vm963_vm2 = vcmask 64512   ;;  %s4248_s30 = smov 96  }
  0xdf   : > { %v591_v6 = vld [vmem:[#allocation8] sm:$0xff]  ;;  %v3549_v8 = vpack.c.bf16 %v595_v5, %v592_v2  ;;  %v593_v10 = vld [vmem:[#allocation8 + $0x10] sm:$0xff]  ;;  %v596_v11 = vld [vmem:[#allocation8 + $0x28] sm:$0xff]  ;;  %720 = vmatprep.mubr.f32.mxu0 %v4246_v55  ;;  %s4249_s3 = smov 64   ;;  %s4250_s21 = smov 32  }
  0xe0   : > { %v3551_v9 = vpack.c.bf16 %v594_v7, %v591_v6  ;;  %v598_v12 = vld [vmem:[#allocation8 + $0x38] sm:$0xff]  ;;  %v3581_v13 = vpack.c.bf16 %v596_v11, %v593_v10  ;;  %v601_v14 = vld [vmem:[#allocation8 + $0x50] sm:$0xff]  ;;  %v600_v17 = vld [vmem:[#allocation8 + $0x48] sm:$0xff]  ;;  %s4935_s23 = sld [smem:[#allocation22_spill]]  ;;  %s4936_s17 = sld [smem:[#allocation23_spill]] }
  0xe1   : > { %3550 = vmatprep.subr.bf16.mxu0 %v3549_v8  ;;  %v3553_v15 = vpack.c.bf16 %v601_v14, %v598_v12  ;;  %v597_v16 = vld [vmem:[#allocation8 + $0x30] sm:$0xff]  ;;  %v599_v18 = vld [vmem:[#allocation8 + $0x40] sm:$0xff]  ;;  %v602_v20 = vld [vmem:[#allocation8 + $0x58] sm:$0xff]  ;;  %s4938_s18 = sld [smem:[#allocation25_spill]]  ;;  %s541_s20 = scalar_lea.vmem [#allocation14], %s3187_s1 }
  0xe2   : > { %557 = vadd.xlane.f32.xlu1 %v554_v3  ;;  %555 = vadd.xlane.f32.xlu0 %v553_v4  ;;  %v3555_v19 = vpack.c.bf16 %v600_v17, %v597_v16  ;;  %v3585_v21 = vpack.c.bf16 %v602_v20, %v599_v18  ;;  %v604_v22 = vld [vmem:[#allocation8 + $0x68] sm:$0xff]  ;;  %v607_v23 = vld [vmem:[#allocation8 + $0x80] sm:$0xff]  ;;  %v606_v26 = vld [vmem:[#allocation8 + $0x78] sm:$0xff]  ;;  %s3044_s7 = sshll.u32 %s541_s20, 4  ;;  %s3239_s13 = sshll.u32 %s4345_s14, 8  ;;  %s4842_s7 = int_to_ptr.vmem [resolvable:$true] %s3044_s7 }
  0xe3   : > { %3552 = vmatpush1.bf16.msra.mxu0 %v3551_v9  ;;  %3582 = vmatprep.subr.bf16.mxu1 %v3581_v13  ;;  %v3557_v24 = vpack.c.bf16 %v607_v23, %v604_v22  ;;  %v603_v25 = vld [vmem:[#allocation8 + $0x60] sm:$0xff]  ;;  %v605_v27 = vld [vmem:[#allocation8 + $0x70] sm:$0xff]  ;;  %v608_v29 = vld [vmem:[#allocation8 + $0x88] sm:$0xff]  ;;  %s4939_s22 = sld [smem:[#allocation26_spill]]  ;;  %s3031_s1 = scalar_lea.sflag [#allocation4], %s4589_s29 }
  0xe4   : > { %3584 = vmatpush3.bf16.msra.mxu1 %v3581_v13  ;;  %3554 = vmatprep.subr.bf16.mxu0 %v3553_v15  ;;  %v3559_v28 = vpack.c.bf16 %v606_v26, %v603_v25  ;;  %v3589_v30 = vpack.c.bf16 %v608_v29, %v605_v27  ;;  %v610_v31 = vld [vmem:[#allocation8 + $0x98] sm:$0xff]  ;;  %v613_v32 = vld [vmem:[#allocation8 + $0xb0] sm:$0xff]  ;;  %v612_v35 = vld [vmem:[#allocation8 + $0xa8] sm:$0xff]  ;;  %s4153_s15 = scalar_lea.vmem %s4842_s7, 256  ;;  %p4940_p9 = scmp.ne.s32.totalorder %s4925_s8, 0 }
  0xe5   : > { %3586 = vmatprep.subr.bf16.mxu1 %v3585_v21  ;;  %v3561_v33 = vpack.c.bf16 %v613_v32, %v610_v31  ;;  %v609_v34 = vld [vmem:[#allocation8 + $0x90] sm:$0xff]  ;;  %v611_v36 = vld [vmem:[#allocation8 + $0xa0] sm:$0xff]  ;;  %v614_v38 = vld [vmem:[#allocation8 + $0xb8] sm:$0xff]  ;;  %p4154_p6 = scmp.ne.s32.totalorder %s4842_s7, %s4153_s15  ;;  %s4251_s14 = smov [#allocation14]  }
  0xe6   : > { %v3563_v37 = vpack.c.bf16 %v612_v35, %v609_v34  ;;  %v3593_v39 = vpack.c.bf16 %v614_v38, %v611_v36  ;;  %v616_v40 = vld [vmem:[#allocation8 + $0xc8] sm:$0xff]  ;;  %v619_v41 = vld [vmem:[#allocation8 + $0xe0] sm:$0xff]  ;;  %v618_v44 = vld [vmem:[#allocation8 + $0xd8] sm:$0xff]  ;;  %s4157_s24 = sshll.u32 %s4251_s14, 4  ;;  %s4158_s24 = int_to_ptr.vmem [resolvable:$false] %s4157_s24 }
  0xe7   : > { %3556 = vmatpush1.bf16.msra.mxu0 %v3555_v19  ;;  %v3565_v42 = vpack.c.bf16 %v619_v41, %v616_v40  ;;  %v615_v43 = vld [vmem:[#allocation8 + $0xc0] sm:$0xff]  ;;  %v617_v45 = vld [vmem:[#allocation8 + $0xd0] sm:$0xff]  ;;  %v620_v47 = vld [vmem:[#allocation8 + $0xe8] sm:$0xff]  ;;  %v641_v41 = vlaneseq  ;;  %p4155_p4 = pnand %p4154_p6, %p4940_p9  ;;  %p4160_p1 = scmp.lt.s32.totalorder %s4842_s7, %s4158_s24 }
  0xe8   : > { %3588 = vmatpush3.bf16.msra.mxu1 %v3585_v21  ;;  %3558 = vmatprep.subr.bf16.mxu0 %v3557_v24  ;;  %v3567_v46 = vpack.c.bf16 %v618_v44, %v615_v43  ;;  %v622_v48 = vld [vmem:[#allocation8 + $0xf8] sm:$0xff]  ;;  %v625_v49 = vld [vmem:[#allocation8 + $0x110] sm:$0xff]  ;;  %v3597_v50 = vpack.c.bf16 %v620_v47, %v617_v45  ;;  %v624_v53 = vld [vmem:[#allocation8 + $0x108] sm:$0xff] }
  0xe9   : > { %3590 = vmatprep.subr.bf16.mxu1 %v3589_v30  ;;  %v3569_v51 = vpack.c.bf16 %v625_v49, %v622_v48  ;;  %v621_v52 = vld [vmem:[#allocation8 + $0xf0] sm:$0xff]  ;;  %v623_v54 = vld [vmem:[#allocation8 + $0x100] sm:$0xff]  ;;  %v626_v57 = vld [vmem:[#allocation8 + $0x118] sm:$0xff]  ;;  %p4156_p13 = pneg %p4155_p4 }
  0xea   : > { %v3571_v56 = vpack.c.bf16 %v624_v53, %v621_v52  ;;  %v628_v58 = vld [vmem:[#allocation8 + $0x128] sm:$0xff]  ;;  %v631_v59 = vld [vmem:[#allocation8 + $0x140] sm:$0xff]  ;;  %v3601_v60 = vpack.c.bf16 %v626_v57, %v623_v54  ;;  %v630_v63 = vld [vmem:[#allocation8 + $0x138] sm:$0xff] }
  0xeb   : > { %3560 = vmatpush1.bf16.msra.mxu0 %v3559_v28  ;;  %v3573_v61 = vpack.c.bf16 %v631_v59, %v628_v58  ;;  %v627_v62 = vld [vmem:[#allocation8 + $0x120] sm:$0xff]  ;;  %v629_v2 = vld [vmem:[#allocation8 + $0x130] sm:$0xff]  ;;  %v632_v3 = vld [vmem:[#allocation8 + $0x148] sm:$0xff] }
  0xec   : > { %3592 = vmatpush3.bf16.msra.mxu1 %v3589_v30  ;;  %3562 = vmatprep.subr.bf16.mxu0 %v3561_v33  ;;  %v634_v4 = vld [vmem:[#allocation8 + $0x158] sm:$0xff]  ;;  %v637_v5 = vld [vmem:[#allocation8 + $0x170] sm:$0xff]  ;;  %v3605_v6 = vpack.c.bf16 %v632_v3, %v629_v2  ;;  %v3575_v7 = vpack.c.bf16 %v630_v63, %v627_v62  ;;  %v635_v8 = vld [vmem:[#allocation8 + $0x160] sm:$0xff] }
  0xed   : > { %3594 = vmatprep.subr.bf16.mxu1 %v3593_v39  ;;  %v638_v9 = vld [vmem:[#allocation8 + $0x178] sm:$0xff]  ;;  %v3577_v10 = vpack.c.bf16 %v637_v5, %v634_v4  ;;  %v633_v11 = vld [vmem:[#allocation8 + $0x150] sm:$0xff]  ;;  %v636_v12 = vld [vmem:[#allocation8 + $0x168] sm:$0xff] }
  0xee   : > { %v3609_v13 = vpack.c.bf16 %v638_v9, %v635_v8  ;;  %v3579_v14 = vpack.c.bf16 %v636_v12, %v633_v11  ;;  %v3195_v32 = vld [vmem:[#allocation5] ss:$0 sm:$0xff]  ;;  %v3196_v36 = vld [vmem:[#allocation7] ss:$0 sm:$0xff] }
  0xef   : > { %3564 = vmatpush1.bf16.msra.mxu0 %v3563_v37  ;;  %v639_v44 = vld [vmem:[%s4896_s4] sm:$0x7] }
  0xf0   : > { %3596 = vmatpush3.bf16.msra.mxu1 %v3593_v39  ;;  %3566 = vmatprep.subr.bf16.mxu0 %v3565_v42  ;;  %v4631_v42 = vshrl.u32 %v641_v41, 7 }
  0xf1   : > { %3598 = vmatprep.subr.bf16.mxu1 %v3597_v50 }
  0xf2   : > { %v643_v43 = vsub.s32 0, %v4631_v42  ;;  %v647_v45 = vsub.s32 1, %v4631_v42  ;;  %v651_v48 = vsub.s32 2, %v4631_v42 }
  0xf3   : > { %3568 = vmatpush1.bf16.msra.mxu0 %v3567_v46 }
  0xf4   : > { %3570 = vmatprep.subr.bf16.mxu0 %v3569_v51  ;;  %3600 = vmatpush3.bf16.msra.mxu1 %v3597_v50  ;;  %v644_v46 = vrot.slane %v639_v44, %v643_v43  ;;  %v648_v47 = vrot.slane %v639_v44, %v647_v45  ;;  %v652_v54 = vrot.slane %v639_v44, %v651_v48 }
  0xf5   : > { %3602 = vmatprep.subr.bf16.mxu1 %v3601_v60 }
  0xf7   : > { %3572 = vmatpush1.bf16.msra.mxu0 %v3571_v56 }
  0xf8   : > { %3574 = vmatprep.subr.bf16.mxu0 %v3573_v61  ;;  %3604 = vmatpush3.bf16.msra.mxu1 %v3601_v60 }
  0xf9   : > { %3606 = vmatprep.subr.bf16.mxu1 %v3605_v6 }
  0xfb   : > { %3576 = vmatpush1.bf16.msra.mxu0 %v3575_v7 }
  0xfc   : > { %3578 = vmatprep.subr.bf16.mxu0 %v3577_v10  ;;  %3608 = vmatpush3.bf16.msra.mxu1 %v3605_v6 }
  0xfd   : > { %3610 = vmatprep.subr.bf16.mxu1 %v3609_v13 }
  0xff   : > { %3580 = vmatpush1.bf16.msra.mxu0 %v3579_v14 }
 0x100   : > { %3430 = vmatprep.subr.mxu0 %v4246_v55  ;;  %3612 = vmatpush3.bf16.msra.mxu1 %v3609_v13 }
 0x101   : > { %3425 = vmatprep.subr.mxu1 %v4246_v55 }
 0x16b   : > { %v549_v15 = vpop.xlane.xlu1 %548  ;;  %v547_v16 = vpop.xlane.xlu0 %546 }
 0x16c   : > { %v552_v17 = vmul.f32 0.0078125, %v549_v15  ;;  %v551_v18 = vmul.f32 0.0078125, %v547_v16 }
 0x16e   : > { %v562_v19 = vmul.f32 %v552_v17, %v552_v17  ;;  %v561_v22 = vmul.f32 %v551_v18, %v551_v18  ;;  %v566_v29 = vsub.f32 %v4611_v0, %v552_v17  ;;  %v565_v31 = vsub.f32 %v4613_v1, %v551_v18 }
 0x16f   : > { %v558_v20 = vpop.xlane.xlu1 %557  ;;  %v556_v21 = vpop.xlane.xlu0 %555 }
 0x170   : > { %v560_v23 = vmul.f32 0.0078125, %v558_v20  ;;  %v559_v24 = vmul.f32 0.0078125, %v556_v21 }
 0x172   : > { %v564_v25 = vsub.f32 %v560_v23, %v562_v19  ;;  %v563_v26 = vsub.f32 %v559_v24, %v561_v22 }
 0x174   : > { %v568_v27 = vadd.f32 1e-05, %v564_v25  ;;  %v567_v28 = vadd.f32 1e-05, %v563_v26 }
 0x176   : > { %3899 = vrsqrt.f32 %v568_v27 }
 0x177   : > { %3901 = vrsqrt.f32 %v567_v28 }
 0x180   : > { %v3900_v30 = vpop.eup %3899 }
 0x181   : > { %v3902_v33 = vpop.eup %3901  ;;  %v572_v34 = vmul.f32 %v3900_v30, %v566_v29 }
 0x182   : > { %v571_v35 = vmul.f32 %v3902_v33, %v565_v31 }
 0x183   : > { %v581_v37 = vmul.f32 %v3195_v32, %v572_v34 }
 0x184   : > { %v580_v38 = vmul.f32 %v3195_v32, %v571_v35 }
 0x185   : > { %v590_v39 = vadd.f32 %v3196_v36, %v581_v37 }
 0x186   : > { %v589_v40 = vadd.f32 %v3196_v36, %v580_v38 }
 0x188   : > { %721 = vmatmul.mubr.f32.vlgmr.msra.gmra.mrb[0].mxu0 %v589_v40  ;;  %3422 = vmatprep.mubr.f32.mxu1 %v589_v40 }
 0x189   : > { %3423 = vmatmul.mubr.f32.vlgmr.msra.gmra.mrb[0].mxu1 %v590_v39  ;;  %726 = vmatprep.mubr.f32.mxu0 %v4246_v55 }
 0x18a   : > { %3427 = vmatprep.mubr.msk.f32.mxu1 %vm4247_vm0, %v4246_v55 }
 0x18c   : > { %727 = vmatmul.mubr.f32.gmra.mrb[2].mxu0 %v590_v39 }
 0x18d   : > { %3432 = vmatprep.mubr.msk.f32.mxu0 %vm4247_vm0, %v4246_v55 }
 0x25b   : > { %v722_v49 = vpop.f32.mrb[0].mxu0 }
 0x25c   : > { %v723_v50 = vadd.f32 %v722_v49, %v644_v46  ;;  %v724_v51 = vpop.f32.mrb[1].mxu0  ;;  %v3424_v52 = vpop.f32.mrb[0].mxu1 }
 0x25d   : > { %v4643_v53 = vadd.f32 %v724_v51, %v648_v47  ;;  %v799_v56 = vpop.f32.mrb[1].mxu1  ;;  %v4666_v2 = vadd.f32 %v3424_v52, %v652_v54 }
 0x25e   : > { %v4649_v58 = vmul.f32 0.17677669, %v723_v50  ;;  %v4652_v61 = vadd.f32 %v799_v56, %v652_v54 }
 0x25f   : > { %v728_v57 = vpop.f32.mrb[2].mxu0  ;;  %3426 = vmatpush3.xpose.msk.msra.mxu1 %vm810_vm1, %v4643_v53 }
 0x260   : > { %v729_v59 = vadd.f32 %v728_v57, %v644_v46  ;;  %v730_v60 = vpop.f32.mrb[3].mxu0  ;;  %3435 = vmatprep.subr.mxu1 %v4246_v55 }
 0x261   : > { %v4654_v62 = vadd.f32 %v730_v60, %v648_v47 }
 0x262   : > { %3428 = vmatmul.mubr.msk.f32.vlgmr.msra.gmra.mrb[2].mxu1 %vm810_vm1, %v4649_v58  ;;  %v4661_v63 = vmul.f32 0.17677669, %v729_v59 }
 0x263   : > { %3431 = vmatpush3.xpose.msk.msra.mxu0 %vm810_vm1, %v4654_v62  ;;  %3436 = vmatpush3.msra.mxu1 %v4652_v61 }
 0x264   : > { %3440 = vmatprep.subr.mxu0 %v4246_v55  ;;  %3437 = vmatprep.mubr.msk.f32.mxu1 %vm4247_vm0, %v4246_v55 }
 0x265   : > { %3445 = vmatprep.subr.mxu1 %v4246_v55 }
 0x266   : > { %3433 = vmatmul.mubr.msk.f32.vlgmr.msra.gmra.mrb[4].mxu0 %vm810_vm1, %v4661_v63 }
 0x267   : > { %3441 = vmatpush3.msra.mxu0 %v4666_v2  ;;  %3442 = vmatprep.mubr.msk.f32.mxu0 %vm4247_vm0, %v4246_v55 }
 0x268   : > { %3450 = vmatprep.subr.mxu0 %v4246_v55 }
 0x335   : > { %v883_v3 = vpop.f32.mrb[2].mxu1 }
 0x336   : > { %v3429_v4 = vpop.f32.mrb[3].mxu1  ;;  %v964_v23 = vsel %vm963_vm2, %v883_v3, -inf }
 0x339   : > { %v959_v5 = vpop.f32.mrb[4].mxu0 }
 0x33a   : > { %v3434_v6 = vpop.f32.mrb[5].mxu0  ;;  %v967_v7 = vsel %vm963_vm2, %v959_v5, -inf }
 0x33b   : > { %968 = vmax.xlane.f32.xlu0 %v967_v7 }
 0x351   : > { %1216 = vrot.lane.b32.xlu0 %v4654_v62, %s4248_s30 }
 0x3c8   : > { %v969_v8 = vpop.xlane.xlu0 %968 }
 0x3c9   : > { %v971_v9 = vsub.f32 %v959_v5, %v969_v8 }
 0x3cb   : > { %v974_v10 = vmul.f32 1.442695, %v971_v9 }
 0x3cc   : > { %v1217_v16 = vpop.permute.xlu0 %1216 }
 0x3cd   : > { %3903 = vpow2.f32 %v974_v10 }
 0x3d7   : > { %v3904_v11 = vpop.eup %3903 }
 0x3d8   : > { %v979_v12 = vsel %vm963_vm2, %v3904_v11, 0.0 }
 0x3d9   : > { %980 = vadd.xlane.f32.xlu1 %v979_v12 }
 0x3ea   : > { %1214 = vrot.lane.b32.xlu1 %v4661_v63, %s4248_s30 }
 0x466   : > { %v981_v13 = vpop.xlane.xlu1 %980 }
 0x467   : > { %3905 = vrcp.f32 %v981_v13 }
 0x46a   : > { %v1215_v17 = vpop.permute.xlu1 %1214 }
 0x471   : > { %v3906_v14 = vpop.eup %3905 }
 0x472   : > { %v985_v15 = vmul.f32 %v3906_v14, %v3904_v11 }
 0x474   : > { %3443 = vmatmul.mubr.msk.f32.vlgmr.msra.gmra.mrb[6].mxu0 %vm963_vm2, %v985_v15 }
 0x475   : > { %3451 = vmatpush3.xpose.msk.msra.mxu0 %vm810_vm1, %v1217_v16  ;;  %3452 = vmatprep.mubr.msk.f32.mxu0 %vm4247_vm0, %v4246_v55 }
 0x476   : > { %3460 = vmatprep.subr.mxu0 %v4246_v55 }
 0x478   : > { %3453 = vmatmul.mubr.msk.f32.vlgmr.msra.gmra.mrb[8].mxu0 %vm810_vm1, %v1215_v17 }
 0x479   : > { %3462 = vmatprep.mubr.msk.f32.mxu0 %vm4247_vm0, %v4246_v55 }
 0x547   : > { %v4689_v18 = vpop.f32.mrb[6].mxu0 }
 0x548   : > { %v3444_v19 = vpop.f32.mrb[7].mxu0 }
 0x54b   : > { %v1288_v20 = vpop.f32.mrb[8].mxu0 }
 0x54c   : > { %v3454_v21 = vpop.f32.mrb[9].mxu0  ;;  %v1295_v22 = vsel %vm963_vm2, %v1288_v20, -inf }
 0x54d   : > { %1296 = vmax.xlane.f32.xlu1 %v1295_v22 }
 0x55e   : > { %1636 = vrot.lane.b32.xlu1 %v4643_v53, %s4249_s3 }
 0x562   : > { %1634 = vrot.lane.b32.xlu1 %v4649_v58, %s4249_s3 }
 0x566   : > { %1714 = vrot.lane.b32.xlu1 %v4654_v62, %s4249_s3 }
 0x58a   : > { %965 = vmax.xlane.f32.xlu1 %v964_v23 }
 0x59b   : > { %1136 = vrot.lane.b32.xlu1 %v4649_v58, %s4248_s30 }
 0x5da   : > { %v1297_v24 = vpop.xlane.xlu1 %1296 }
 0x5db   : > { %v1299_v25 = vsub.f32 %v1288_v20, %v1297_v24 }
 0x5dd   : > { %v1302_v26 = vmul.f32 1.442695, %v1299_v25 }
 0x5de   : > { %v1637_v29 = vpop.permute.xlu1 %1636 }
 0x5df   : > { %3907 = vpow2.f32 %v1302_v26 }
 0x5e2   : > { %v1635_v30 = vpop.permute.xlu1 %1634 }
 0x5e6   : > { %v1715_v31 = vpop.permute.xlu1 %1714 }
 0x5e9   : > { %v3908_v27 = vpop.eup %3907 }
 0x5ea   : > { %v1307_v28 = vsel %vm963_vm2, %v3908_v27, 0.0 }
 0x5eb   : > { %1308 = vadd.xlane.f32.xlu0 %v1307_v28 }
 0x601   : > { %1392 = vrot.lane.b32.xlu0 %v4666_v2, %s4248_s30 }
 0x605   : > { %1712 = vrot.lane.b32.xlu0 %v4661_v63, %s4249_s3 }
 0x617   : > { %v966_v32 = vpop.xlane.xlu1 %965 }
 0x618   : > { %v970_v33 = vsub.f32 %v883_v3, %v966_v32 }
 0x61a   : > { %v972_v34 = vmul.f32 1.442695, %v970_v33 }
 0x61b   : > { %v1137_v50 = vpop.permute.xlu1 %1136 }
 0x61c   : > { %3909 = vpow2.f32 %v972_v34 }
 0x626   : > { %v3910_v35 = vpop.eup %3909 }
 0x627   : > { %v976_v36 = vsel %vm963_vm2, %v3910_v35, 0.0 }
 0x628   : > { %977 = vadd.xlane.f32.xlu0 %v976_v36 }
 0x63e   : > { %1138 = vrot.lane.b32.xlu0 %v4643_v53, %s4248_s30 }
 0x678   : > { %v1309_v37 = vpop.xlane.xlu0 %1308 }
 0x679   : > { %3911 = vrcp.f32 %v1309_v37  ;;  %v1468_v37 = vld [vmem:[#allocation10 + $0x20] sm:$0xff] }
 0x67c   : > { %v1393_v38 = vpop.permute.xlu0 %1392 }
 0x67d   : > { %3461 = vmatpush3.msra.mxu0 %v1393_v38  ;;  %v1469_v38 = vld [vmem:[#allocation10 + $0x28] sm:$0xff] }
 0x67e   : > { %3487 = vmatprep.subr.mxu0 %v4246_v55 }
 0x680   : > { %v1713_v41 = vpop.permute.xlu0 %1712 }
 0x683   : > { %v3912_v39 = vpop.eup %3911 }
 0x684   : > { %v1313_v40 = vmul.f32 %v3912_v39, %v3908_v27  ;;  %v1470_v39 = vld [vmem:[#allocation10 + $0x30] sm:$0xff] }
 0x686   : > { %3463 = vmatmul.mubr.msk.f32.vlgmr.msra.gmra.mrb[10].mxu0 %vm963_vm2, %v1313_v40  ;;  %v3613_v40 = vpack.c.bf16 %v1469_v38, %v1468_v37  ;;  %v2533_v37 = vld [vmem:[#allocation11 + $0x8] sm:$0xff] }
 0x687   : > { %3488 = vmatpush3.xpose.msk.msra.mxu0 %vm810_vm1, %v1637_v29  ;;  %3489 = vmatprep.mubr.msk.f32.mxu0 %vm4247_vm0, %v4246_v55  ;;  %v2537_v38 = vld [vmem:[#allocation11 + $0x28] sm:$0xff] }
 0x688   : > { %3492 = vmatprep.subr.mxu0 %v4246_v55 }
 0x68a   : > { %3490 = vmatmul.mubr.msk.f32.vlgmr.msra.gmra.mrb[12].mxu0 %vm810_vm1, %v1635_v30 }
 0x68b   : > { %3493 = vmatpush3.xpose.msk.msra.mxu0 %vm810_vm1, %v1715_v31  ;;  %3494 = vmatprep.mubr.msk.f32.mxu0 %vm4247_vm0, %v4246_v55 }
 0x68c   : > { %3497 = vmatprep.subr.mxu0 %v4246_v55 }
 0x68e   : > { %3495 = vmatmul.mubr.msk.f32.vlgmr.msra.gmra.mrb[14].mxu0 %vm810_vm1, %v1713_v41  ;;  %v1471_v41 = vld [vmem:[#allocation10 + $0x38] sm:$0xff] }
 0x68f   : > { %3499 = vmatprep.mubr.msk.f32.mxu0 %vm4247_vm0, %v4246_v55 }
 0x6b5   : > { %v978_v44 = vpop.xlane.xlu0 %977 }
 0x6b6   : > { %3913 = vrcp.f32 %v978_v44  ;;  %v3617_v44 = vpack.c.bf16 %v1471_v41, %v1470_v39  ;;  %v2535_v39 = vld [vmem:[#allocation11 + $0x18] sm:$0xff] }
 0x6b7   : > { %v2539_v41 = vld [vmem:[#allocation11 + $0x38] sm:$0xff] }
 0x6b9   : > { %v1139_v49 = vpop.permute.xlu0 %1138 }
 0x6c0   : > { %v3914_v46 = vpop.eup %3913 }
 0x6c1   : > { %v984_v47 = vmul.f32 %v3914_v46, %v3910_v35  ;;  %v1132_v46 = vld [vmem:[#allocation10] sm:$0xff] }
 0x6c3   : > { %3438 = vmatmul.mubr.msk.f32.vlgmr.msra.gmra.mrb[4].mxu1 %vm963_vm2, %v984_v47  ;;  %v1133_v47 = vld [vmem:[#allocation10 + $0x8] sm:$0xff] }
 0x6c4   : > { %3446 = vmatpush3.xpose.msk.msra.mxu1 %vm810_vm1, %v1139_v49  ;;  %3447 = vmatprep.mubr.msk.f32.mxu1 %vm4247_vm0, %v4246_v55  ;;  %v3621_v49 = vpack.c.bf16 %v1133_v47, %v1132_v46  ;;  %v2536_v46 = vld [vmem:[#allocation11 + $0x20] sm:$0xff]  ;;  %v3677_v47 = vpack.c.bf16 %v2539_v41, %v2535_v39  ;;  %v2571_v39 = vld [vmem:[#allocation11 + $0x138] sm:$0xff] }
 0x6c5   : > { %3455 = vmatprep.subr.mxu1 %v4246_v55  ;;  %v2568_v41 = vld [vmem:[#allocation11 + $0x120] sm:$0xff] }
 0x6c7   : > { %3448 = vmatmul.mubr.msk.f32.vlgmr.msra.gmra.mrb[6].mxu1 %vm810_vm1, %v1137_v50 }
 0x6c8   : > { %3457 = vmatprep.mubr.msk.f32.mxu1 %vm4247_vm0, %v4246_v55 }
 0x759   : > { %v4731_v51 = vpop.f32.mrb[10].mxu0 }
 0x75a   : > { %v3464_v52 = vpop.f32.mrb[11].mxu0 }
 0x75d   : > { %v1708_v54 = vpop.f32.mrb[12].mxu0 }
 0x75e   : > { %v3491_v56 = vpop.f32.mrb[13].mxu0  ;;  %v1790_v57 = vsel %vm963_vm2, %v1708_v54, -inf }
 0x75f   : > { %1791 = vmax.xlane.f32.xlu1 %v1790_v57 }
 0x761   : > { %v1786_v59 = vpop.f32.mrb[14].mxu0 }
 0x762   : > { %v3496_v60 = vpop.f32.mrb[15].mxu0  ;;  %v1793_v3 = vsel %vm963_vm2, %v1786_v59, -inf }
 0x763   : > { %1794 = vmax.xlane.f32.xlu0 %v1793_v3 }
 0x770   : > { %1812 = vrot.lane.b32.xlu1 %v4652_v61, %s4249_s3 }
 0x774   : > { %2053 = vrot.lane.b32.xlu1 %v4643_v53, %s4250_s21 }
 0x778   : > { %2051 = vrot.lane.b32.xlu1 %v4649_v58, %s4250_s21 }
 0x77c   : > { %2131 = vrot.lane.b32.xlu1 %v4654_v62, %s4250_s21 }
 0x796   : > { %v4743_v4 = vpop.f32.mrb[4].mxu1 }
 0x797   : > { %v3439_v5 = vpop.f32.mrb[5].mxu1 }
 0x79a   : > { %v1210_v6 = vpop.f32.mrb[6].mxu1 }
 0x79b   : > { %v3449_v7 = vpop.f32.mrb[7].mxu1  ;;  %v1292_v8 = vsel %vm963_vm2, %v1210_v6, -inf }
 0x79c   : > { %v1134_v7 = vld [vmem:[#allocation10 + $0x10] sm:$0xff] }
 0x7a0   : > { %1293 = vmax.xlane.f32.xlu1 %v1292_v8  ;;  %v1135_v8 = vld [vmem:[#allocation10 + $0x18] sm:$0xff] }
 0x7ec   : > { %v1792_v9 = vpop.xlane.xlu1 %1791 }
 0x7ed   : > { %v1796_v10 = vsub.f32 %v1708_v54, %v1792_v9 }
 0x7ef   : > { %v1798_v11 = vmul.f32 1.442695, %v1796_v10  ;;  %v3625_v10 = vpack.c.bf16 %v1135_v8, %v1134_v7  ;;  %v2544_v7 = vld [vmem:[#allocation11 + $0x60] sm:$0xff]  ;;  %v2542_v8 = vld [vmem:[#allocation11 + $0x50] sm:$0xff] }
 0x7f0   : > { %v1795_v12 = vpop.xlane.xlu0 %1794  ;;  %v1813_v13 = vpop.permute.xlu1 %1812 }
 0x7f1   : > { %3915 = vpow2.f32 %v1798_v11  ;;  %v1797_v53 = vsub.f32 %v1786_v59, %v1795_v12  ;;  %3498 = vmatpush3.msra.mxu0 %v1813_v13  ;;  %v1964_v12 = vld [vmem:[#allocation10 + $0x40] sm:$0xff]  ;;  %v1965_v13 = vld [vmem:[#allocation10 + $0x48] sm:$0xff] }
 0x7f2   : > { %3502 = vmatprep.subr.mxu0 %v4246_v55 }
 0x7f3   : > { %v1800_v58 = vmul.f32 1.442695, %v1797_v53  ;;  %v3629_v53 = vpack.c.bf16 %v1965_v13, %v1964_v12  ;;  %v3229_v13 = vld [vmem:[%s4898_s6] ss:$0 sm:$0xff] }
 0x7f4   : > { %v2054_v17 = vpop.permute.xlu1 %2053 }
 0x7f5   : > { %3917 = vpow2.f32 %v1800_v58  ;;  %v1966_v58 = vld [vmem:[#allocation10 + $0x50] sm:$0xff] }
 0x7f8   : > { %v2052_v19 = vpop.permute.xlu1 %2051 }
 0x7fb   : > { %v3916_v62 = vpop.eup %3915 }
 0x7fc   : > { %v1802_v14 = vsel %vm963_vm2, %v3916_v62, 0.0  ;;  %v2132_v20 = vpop.permute.xlu1 %2131 }
 0x7fd   : > { %1803 = vadd.xlane.f32.xlu0 %v1802_v14 }
 0x7ff   : > { %v3918_v15 = vpop.eup %3917 }
 0x800   : > { %v1805_v16 = vsel %vm963_vm2, %v3918_v15, 0.0 }
 0x801   : > { %1806 = vadd.xlane.f32.xlu0 %v1805_v16 }
 0x817   : > { %1888 = vrot.lane.b32.xlu0 %v4666_v2, %s4249_s3 }
 0x81b   : > { %2129 = vrot.lane.b32.xlu0 %v4661_v63, %s4250_s21 }
 0x82d   : > { %v1294_v21 = vpop.xlane.xlu1 %1293 }
 0x82e   : > { %v1298_v22 = vsub.f32 %v1210_v6, %v1294_v21 }
 0x830   : > { %v1300_v23 = vmul.f32 1.442695, %v1298_v22 }
 0x832   : > { %3919 = vpow2.f32 %v1300_v23 }
 0x83c   : > { %v3920_v24 = vpop.eup %3919 }
 0x83d   : > { %v1304_v25 = vsel %vm963_vm2, %v3920_v24, 0.0 }
 0x83e   : > { %1305 = vadd.xlane.f32.xlu0 %v1304_v25  ;;  %v2382_v25 = vld [vmem:[#allocation10 + $0x68] sm:$0xff] }
 0x854   : > { %1315 = vrot.lane.b32.xlu0 %v4652_v61, %s4248_s30  ;;  %s4937_s30 = sld [smem:[#allocation24_spill]] }
 0x858   : > { %2305 = vrot.lane.b32.xlu0 %v4666_v2, %s4250_s21 }
 0x88a   : > { %v1804_v26 = vpop.xlane.xlu0 %1803 }
 0x88b   : > { %3921 = vrcp.f32 %v1804_v26 }
 0x88e   : > { %v1807_v63 = vpop.xlane.xlu0 %1806 }
 0x88f   : > { %3923 = vrcp.f32 %v1807_v63 }
 0x892   : > { %v1889_v29 = vpop.permute.xlu0 %1888 }
 0x895   : > { %v3922_v27 = vpop.eup %3921 }
 0x896   : > { %v1810_v28 = vmul.f32 %v3922_v27, %v3916_v62  ;;  %v2130_v2 = vpop.permute.xlu0 %2129  ;;  %v1967_v62 = vld [vmem:[#allocation10 + $0x58] sm:$0xff] }
 0x897   : > { %v3633_v14 = vpack.c.bf16 %v1967_v62, %v1966_v58 }
 0x898   : > { %3500 = vmatmul.mubr.msk.f32.vlgmr.msra.gmra.mrb[16].mxu0 %vm963_vm2, %v1810_v28 }
 0x899   : > { %v3924_v30 = vpop.eup %3923  ;;  %3503 = vmatpush3.msra.mxu0 %v1889_v29  ;;  %3504 = vmatprep.mubr.msk.f32.mxu0 %vm4247_vm0, %v4246_v55 }
 0x89a   : > { %v1811_v31 = vmul.f32 %v3924_v30, %v3918_v15  ;;  %3518 = vmatprep.subr.mxu0 %v4246_v55 }
 0x89c   : > { %3505 = vmatmul.mubr.msk.f32.vlgmr.msra.gmra.mrb[18].mxu0 %vm963_vm2, %v1811_v31 }
 0x89d   : > { %3520 = vmatprep.mubr.msk.f32.mxu0 %vm4247_vm0, %v4246_v55 }
 0x8a0   : > { %3519 = vmatpush3.xpose.msk.msra.mxu0 %vm810_vm1, %v2054_v17 }
 0x8a1   : > { %3523 = vmatprep.subr.mxu0 %v4246_v55 }
 0x8a3   : > { %3521 = vmatmul.mubr.msk.f32.vlgmr.msra.gmra.mrb[20].mxu0 %vm810_vm1, %v2052_v19 }
 0x8a4   : > { %3524 = vmatpush3.xpose.msk.msra.mxu0 %vm810_vm1, %v2132_v20  ;;  %3525 = vmatprep.mubr.msk.f32.mxu0 %vm4247_vm0, %v4246_v55 }
 0x8a5   : > { %3533 = vmatprep.subr.mxu0 %v4246_v55 }
 0x8a7   : > { %3526 = vmatmul.mubr.msk.f32.vlgmr.msra.gmra.mrb[22].mxu0 %vm810_vm1, %v2130_v2  ;;  %v2384_v2 = vld [vmem:[#allocation10 + $0x78] sm:$0xff] }
 0x8a8   : > { %3535 = vmatprep.mubr.msk.f32.mxu0 %vm4247_vm0, %v4246_v55 }
 0x8cb   : > { %v1306_v32 = vpop.xlane.xlu0 %1305 }
 0x8cc   : > { %3925 = vrcp.f32 %v1306_v32 }
 0x8cf   : > { %v1316_v33 = vpop.permute.xlu0 %1315 }
 0x8d0   : > { %3456 = vmatpush3.msra.mxu1 %v1316_v33 }
 0x8d1   : > { %3614 = vmatprep.subr.bf16.mxu1 %v3613_v40 }
 0x8d3   : > { %v2306_v34 = vpop.permute.xlu0 %2305 }
 0x8d4   : > { %3534 = vmatpush3.msra.mxu0 %v2306_v34 }
 0x8d6   : > { %v3926_v35 = vpop.eup %3925 }
 0x8d7   : > { %v1312_v36 = vmul.f32 %v3926_v35, %v3920_v24  ;;  %v2381_v24 = vld [vmem:[#allocation10 + $0x60] sm:$0xff] }
 0x8d8   : > { %v3637_v63 = vpack.c.bf16 %v2382_v25, %v2381_v24  ;;  %v2554_v24 = vld [vmem:[#allocation11 + $0xb0] sm:$0xff] }
 0x8d9   : > { %3458 = vmatmul.mubr.msk.f32.vlgmr.msra.gmra.mrb[8].mxu1 %vm963_vm2, %v1312_v36 }
 0x8da   : > { %3616 = vmatpush3.bf16.msra.mxu1 %v3613_v40  ;;  %v3645_v40 = vpack.c.bf16 %v2537_v38, %v2533_v37  ;;  %v2567_v37 = vld [vmem:[#allocation11 + $0x118] sm:$0xff] }
 0x8db   : > { %3618 = vmatprep.subr.bf16.mxu1 %v3617_v44 }
 0x8dc   : > { %3646 = vmatprep.subr.bf16.mxu0 %v3645_v40  ;;  %v2564_v40 = vld [vmem:[#allocation11 + $0x100] sm:$0xff] }
 0x8de   : > { %3620 = vmatpush3.bf16.msra.mxu1 %v3617_v44  ;;  %v2532_v44 = vld [vmem:[#allocation11] sm:$0xff] }
 0x8df   : > { %3622 = vmatprep.subr.bf16.mxu1 %v3621_v49 }
 0x96b   : > { %v1884_v50 = vpop.f32.mrb[16].mxu0 }
 0x96c   : > { %v3501_v52 = vpop.f32.mrb[17].mxu0 }
 0x96d   : > { %v2538_v52 = vld [vmem:[#allocation11 + $0x30] sm:$0xff] }
 0x96f   : > { %v1960_v54 = vpop.f32.mrb[18].mxu0 }
 0x970   : > { %v3506_v56 = vpop.f32.mrb[19].mxu0 }
 0x976   : > { %v2125_v57 = vpop.f32.mrb[20].mxu0 }
 0x977   : > { %v3522_v59 = vpop.f32.mrb[21].mxu0  ;;  %v2207_v60 = vsel %vm963_vm2, %v2125_v57, -inf }
 0x978   : > { %2208 = vmax.xlane.f32.xlu1 %v2207_v60  ;;  %v2543_v59 = vld [vmem:[#allocation11 + $0x58] sm:$0xff] }
 0x979   : > { %v2547_v60 = vld [vmem:[#allocation11 + $0x78] sm:$0xff] }
 0x97a   : > { %v2203_v3 = vpop.f32.mrb[22].mxu0 }
 0x97b   : > { %v3527_v5 = vpop.f32.mrb[23].mxu0  ;;  %v2210_v6 = vsel %vm963_vm2, %v2203_v3, -inf }
 0x97c   : > { %2211 = vmax.xlane.f32.xlu1 %v2210_v6  ;;  %v3681_v5 = vpack.c.bf16 %v2547_v60, %v2543_v59  ;;  %v2540_v6 = vld [vmem:[#allocation11 + $0x40] sm:$0xff]  ;;  %v2579_v59 = vld [vmem:[#allocation11 + $0x178] sm:$0xff] }
 0x97d   : > { %v2572_v60 = vld [vmem:[#allocation11 + $0x140] sm:$0xff] }
 0x9ac   : > { %v1387_v9 = vpop.f32.mrb[8].mxu1 }
 0x9ad   : > { %v3459_v11 = vpop.f32.mrb[9].mxu1  ;;  %3473 = vmatprep.mubr.msk.f32.mxu1 %vm810_vm1, %v1387_v9  ;;  %v3651_v9 = vpack.c.bf16 %v2544_v7, %v2540_v6  ;;  %v2574_v7 = vld [vmem:[#allocation11 + $0x150] sm:$0xff] }
 0x9ae   : > { %3474 = vmatmul.mubr.msk.f32.vlgmr.msra.gmra.mrb[10].mxu1 %vm810_vm1, %v4731_v51 }
 0x9af   : > { %3624 = vmatpush3.bf16.msra.mxu1 %v3621_v49  ;;  %3484 = vmatprep.mubr.msk.f32.mxu1 %vm810_vm1, %v4743_v4  ;;  %v3647_v49 = vpack.c.bf16 %v2536_v46, %v2532_v44  ;;  %v3693_v44 = vpack.c.bf16 %v2571_v39, %v2567_v37  ;;  %v3663_v46 = vpack.c.bf16 %v2568_v41, %v2564_v40 }
 0x9b0   : > { %3626 = vmatprep.subr.bf16.mxu1 %v3625_v10 }
 0x9b3   : > { %3628 = vmatpush3.bf16.msra.mxu1 %v3625_v10  ;;  %v2546_v10 = vld [vmem:[#allocation11 + $0x70] sm:$0xff] }
 0x9b4   : > { %3630 = vmatprep.subr.bf16.mxu1 %v3629_v53  ;;  %v3683_v11 = vpack.c.bf16 %v2546_v10, %v2542_v8  ;;  %v2578_v8 = vld [vmem:[#allocation11 + $0x170] sm:$0xff]  ;;  %v2581_v10 = vld [vmem:[#allocation11 + $0x188] sm:$0xff] }
 0x9b6   : > { %3485 = vmatmul.mubr.msk.f32.vlgmr.msra.gmra.mrb[10].mxu1 %vm810_vm1, %v4689_v18 }
 0x9b7   : > { %3632 = vmatpush3.bf16.msra.mxu1 %v3629_v53  ;;  %3515 = vmatprep.mubr.msk.f32.mxu1 %vm810_vm1, %v1884_v50  ;;  %v2534_v50 = vld [vmem:[#allocation11 + $0x10] sm:$0xff] }
 0x9b8   : > { %3634 = vmatprep.subr.bf16.mxu1 %v3633_v14  ;;  %v3679_v56 = vpack.c.bf16 %v2538_v52, %v2534_v50  ;;  %v2573_v52 = vld [vmem:[#allocation11 + $0x148] sm:$0xff] }
 0x9bb   : > { %3636 = vmatpush3.bf16.msra.mxu1 %v3633_v14 }
 0x9bc   : > { %3528 = vmatprep.subr.mxu1 %v4246_v55 }
 0x9be   : > { %3516 = vmatmul.mubr.msk.f32.vlgmr.msra.gmra.mrb[10].mxu1 %vm810_vm1, %v1960_v54  ;;  %v2541_v54 = vld [vmem:[#allocation11 + $0x48] sm:$0xff] }
 0x9bf   : > { %3530 = vmatprep.mubr.msk.f32.mxu1 %vm4247_vm0, %v4246_v55 }
 0xa05   : > { %v2209_v51 = vpop.xlane.xlu1 %2208 }
 0xa06   : > { %v2213_v4 = vsub.f32 %v2125_v57, %v2209_v51  ;;  %v2545_v57 = vld [vmem:[#allocation11 + $0x68] sm:$0xff] }
 0xa08   : > { %v2215_v15 = vmul.f32 1.442695, %v2213_v4 }
 0xa09   : > { %v2212_v16 = vpop.xlane.xlu1 %2211 }
 0xa0a   : > { %3927 = vpow2.f32 %v2215_v15  ;;  %v2214_v17 = vsub.f32 %v2203_v3, %v2212_v16  ;;  %v3649_v3 = vpack.c.bf16 %v2545_v57, %v2541_v54  ;;  %v2549_v16 = vld [vmem:[#allocation11 + $0x88] sm:$0xff] }
 0xa0b   : > { %v2577_v54 = vld [vmem:[#allocation11 + $0x168] sm:$0xff] }
 0xa0c   : > { %v2217_v19 = vmul.f32 1.442695, %v2214_v17  ;;  %v2551_v17 = vld [vmem:[#allocation11 + $0x98] sm:$0xff]  ;;  %v3665_v57 = vpack.c.bf16 %v2577_v54, %v2573_v52 }
 0xa0d   : > { %v3230_v54 = vld [vmem:[%s4935_s23] ss:$0 sm:$0xff] }
 0xa0e   : > { %3929 = vpow2.f32 %v2217_v19  ;;  %v2555_v19 = vld [vmem:[#allocation11 + $0xb8] sm:$0xff] }
 0xa14   : > { %v3928_v18 = vpop.eup %3927 }
 0xa15   : > { %v2219_v20 = vsel %vm963_vm2, %v3928_v18, 0.0 }
 0xa16   : > { %2220 = vadd.xlane.f32.xlu1 %v2219_v20  ;;  %v2552_v20 = vld [vmem:[#allocation11 + $0xa0] sm:$0xff] }
 0xa18   : > { %v3930_v21 = vpop.eup %3929 }
 0xa19   : > { %v2222_v22 = vsel %vm963_vm2, %v3930_v21, 0.0 }
 0xa1a   : > { %2223 = vadd.xlane.f32.xlu1 %v2222_v22 }
 0xa2b   : > { %2229 = vrot.lane.b32.xlu1 %v4652_v61, %s4250_s21  ;;  %v2383_v61 = vld [vmem:[#allocation10 + $0x70] sm:$0xff] }
 0xa2c   : > { %v3641_v32 = vpack.c.bf16 %v2384_v2, %v2383_v61 }
 0xaa3   : > { %v2221_v23 = vpop.xlane.xlu1 %2220 }
 0xaa4   : > { %3931 = vrcp.f32 %v2221_v23  ;;  %v2550_v23 = vld [vmem:[#allocation11 + $0x90] sm:$0xff] }
 0xaa5   : > { %v3687_v25 = vpack.c.bf16 %v2554_v24, %v2550_v23  ;;  %v2588_v23 = vld [vmem:[#allocation11 + $0x1c0] sm:$0xff] }
 0xaa6   : > { %v2592_v24 = vld [vmem:[#allocation11 + $0x1e0] sm:$0xff] }
 0xaa7   : > { %v2224_v26 = vpop.xlane.xlu1 %2223 }
 0xaa8   : > { %3933 = vrcp.f32 %v2224_v26  ;;  %v2557_v26 = vld [vmem:[#allocation11 + $0xc8] sm:$0xff] }
 0xaab   : > { %v2230_v27 = vpop.permute.xlu1 %2229 }
 0xaac   : > { %3529 = vmatpush3.msra.mxu1 %v2230_v27  ;;  %v2559_v27 = vld [vmem:[#allocation11 + $0xd8] sm:$0xff] }
 0xaad   : > { %3638 = vmatprep.subr.bf16.mxu1 %v3637_v63 }
 0xaae   : > { %v3932_v28 = vpop.eup %3931 }
 0xaaf   : > { %v2227_v29 = vmul.f32 %v3932_v28, %v3928_v18  ;;  %v2548_v18 = vld [vmem:[#allocation11 + $0x80] sm:$0xff] }
 0xab0   : > { %v3655_v22 = vpack.c.bf16 %v2552_v20, %v2548_v18  ;;  %v2591_v18 = vld [vmem:[#allocation11 + $0x1d8] sm:$0xff] }
 0xab1   : > { %3531 = vmatmul.mubr.msk.f32.vlgmr.msra.gmra.mrb[12].mxu1 %vm963_vm2, %v2227_v29  ;;  %v2563_v29 = vld [vmem:[#allocation11 + $0xf8] sm:$0xff] }
 0xab2   : > { %v3934_v30 = vpop.eup %3933  ;;  %3640 = vmatpush3.bf16.msra.mxu1 %v3637_v63  ;;  %v2561_v63 = vld [vmem:[#allocation11 + $0xe8] sm:$0xff]  ;;  %v3689_v61 = vpack.c.bf16 %v2563_v29, %v2559_v27  ;;  %v2595_v20 = vld [vmem:[#allocation11 + $0x1f8] sm:$0xff] }
 0xab3   : > { %v2228_v31 = vmul.f32 %v3934_v30, %v3930_v21  ;;  %3642 = vmatprep.subr.bf16.mxu1 %v3641_v32  ;;  %v3685_v21 = vpack.c.bf16 %v2555_v19, %v2551_v17  ;;  %v3657_v28 = vpack.c.bf16 %v2561_v63, %v2557_v26  ;;  %v2556_v30 = vld [vmem:[#allocation11 + $0xc0] sm:$0xff]  ;;  %v2589_v17 = vld [vmem:[#allocation11 + $0x1c8] sm:$0xff]  ;;  %v3675_v26 = vpack.c.bf16 %v2592_v24, %v2588_v23  ;;  %v2594_v63 = vld [vmem:[#allocation11 + $0x1f0] sm:$0xff] }
 0xab4   : > { %v2593_v19 = vld [vmem:[#allocation11 + $0x1e8] sm:$0xff] }
 0xab5   : > { %3536 = vmatmul.mubr.msk.f32.vlgmr.msra.gmra.mrb[24].mxu0 %vm963_vm2, %v2228_v31  ;;  %v2560_v31 = vld [vmem:[#allocation11 + $0xe0] sm:$0xff]  ;;  %v2829_v29 = vld [vmem:[#allocation13 + $0x88] sm:$0xff] }
 0xab6   : > { %2682 = vmatprep.mubr.f32.mxu0 %v4246_v55  ;;  %3644 = vmatpush3.bf16.msra.mxu1 %v3641_v32  ;;  %v3659_v2 = vpack.c.bf16 %v2560_v31, %v2556_v30  ;;  %v2558_v32 = vld [vmem:[#allocation11 + $0xd0] sm:$0xff]  ;;  %v2860_v30 = vld [vmem:[#allocation13 + $0x180] sm:$0xff] }
 0xab7   : > { %3678 = vmatprep.subr.bf16.mxu1 %v3677_v47  ;;  %3648 = vmatpush1.bf16.msra.mxu0 %v3647_v49  ;;  %v2566_v47 = vld [vmem:[#allocation11 + $0x110] sm:$0xff] }
 0xab8   : > { %3650 = vmatprep.subr.bf16.mxu0 %v3649_v3  ;;  %v2570_v49 = vld [vmem:[#allocation11 + $0x130] sm:$0xff]  ;;  %v2576_v3 = vld [vmem:[#allocation11 + $0x160] sm:$0xff] }
 0xab9   : > { %v3695_v50 = vpack.c.bf16 %v2570_v49, %v2566_v47  ;;  %v3667_v6 = vpack.c.bf16 %v2576_v3, %v2572_v60  ;;  %v2813_v60 = vld [vmem:[#allocation13 + $0x8] sm:$0xff]  ;;  %v2844_v3 = vld [vmem:[#allocation13 + $0x100] sm:$0xff] }
 0xabb   : > { %3652 = vmatpush1.bf16.msra.mxu0 %v3651_v9  ;;  %v3699_v9 = vpack.c.bf16 %v2578_v8, %v2574_v7  ;;  %v2831_v8 = vld [vmem:[#allocation13 + $0x98] sm:$0xff] }
 0xb84   : > { %v2301_v33 = vpop.f32.mrb[12].mxu1 }
 0xb85   : > { %v3532_v34 = vpop.f32.mrb[13].mxu1  ;;  %3546 = vmatprep.mubr.msk.f32.mxu1 %vm810_vm1, %v2301_v33  ;;  %v2562_v33 = vld [vmem:[#allocation11 + $0xf0] sm:$0xff] }
 0xb86   : > { %v3691_v34 = vpack.c.bf16 %v2562_v33, %v2558_v32 }
 0xb88   : > { %v2377_v35 = vpop.f32.mrb[24].mxu0 }
 0xb89   : > { %v3537_v36 = vpop.f32.mrb[25].mxu0  ;;  %3547 = vmatmul.mubr.msk.f32.vlgmr.msra.gmra.mrb[10].mxu1 %vm810_vm1, %v2377_v35  ;;  %v2565_v35 = vld [vmem:[#allocation11 + $0x108] sm:$0xff] }
 0xb8a   : > { %2759 = vmatprep.mubr.f32.mxu1 %v4246_v55  ;;  %3680 = vmatpush1.bf16.msra.mxu1 %v3679_v56  ;;  %v2569_v36 = vld [vmem:[#allocation11 + $0x128] sm:$0xff]  ;;  %v2575_v56 = vld [vmem:[#allocation11 + $0x158] sm:$0xff] }
 0xb8b   : > { %3682 = vmatprep.subr.bf16.mxu1 %v3681_v5  ;;  %v3661_v38 = vpack.c.bf16 %v2569_v36, %v2565_v35  ;;  %v3697_v5 = vpack.c.bf16 %v2579_v59, %v2575_v56  ;;  %v2812_v59 = vld [vmem:[#allocation13] sm:$0xff] }
 0xb8e   : > { %3684 = vmatpush1.bf16.msra.mxu1 %v3683_v11  ;;  %v2585_v11 = vld [vmem:[#allocation11 + $0x1a8] sm:$0xff] }
 0xb8f   : > { %3686 = vmatprep.subr.bf16.mxu1 %v3685_v21  ;;  %v3673_v21 = vpack.c.bf16 %v2593_v19, %v2589_v17  ;;  %v2846_v17 = vld [vmem:[#allocation13 + $0x110] sm:$0xff]  ;;  %v2832_v19 = vld [vmem:[#allocation13 + $0xa0] sm:$0xff] }
 0xb92   : > { %3688 = vmatpush1.bf16.msra.mxu1 %v3687_v25  ;;  %v2590_v25 = vld [vmem:[#allocation11 + $0x1d0] sm:$0xff] }
 0xb93   : > { %3690 = vmatprep.subr.bf16.mxu1 %v3689_v61  ;;  %v3707_v27 = vpack.c.bf16 %v2594_v63, %v2590_v25  ;;  %v2861_v61 = vld [vmem:[#allocation13 + $0x188] sm:$0xff]  ;;  %v2816_v25 = vld [vmem:[#allocation13 + $0x20] sm:$0xff] }
 0xb96   : > { %3692 = vmatpush1.bf16.msra.mxu1 %v3691_v34 }
 0xb97   : > { %3694 = vmatprep.subr.bf16.mxu1 %v3693_v44 }
 0xb9a   : > { %3696 = vmatpush1.bf16.msra.mxu1 %v3695_v50 }
 0xb9b   : > { %3698 = vmatprep.subr.bf16.mxu1 %v3697_v5  ;;  %v2845_v5 = vld [vmem:[#allocation13 + $0x108] sm:$0xff] }
 0xb9e   : > { %3700 = vmatpush1.bf16.msra.mxu1 %v3699_v9  ;;  %v2862_v9 = vld [vmem:[#allocation13 + $0x190] sm:$0xff] }
 0xc5c   : > { %v3548_v12 = vpop.f32.mrb[10].mxu1 }
 0xc5d   : > { %v2457_v53 = vpop.f32.mrb[11].mxu1  ;;  %v2469_v62 = vadd.f32 %v3548_v12, %v4611_v0  ;;  %v2583_v12 = vld [vmem:[#allocation11 + $0x198] sm:$0xff] }
 0xc5e   : > { %v2468_v58 = vadd.f32 %v2457_v53, %v4613_v1  ;;  %v2553_v1 = vld [vmem:[#allocation11 + $0xa8] sm:$0xff]  ;;  %v2587_v53 = vld [vmem:[#allocation11 + $0x1b8] sm:$0xff] }
 0xc5f   : > { %v4810_v4 = vadd.f32 %v3229_v13, %v2469_v62  ;;  %v3653_v0 = vpack.c.bf16 %v2553_v1, %v2549_v16  ;;  %v2584_v62 = vld [vmem:[#allocation11 + $0x1a0] sm:$0xff]  ;;  %v2582_v16 = vld [vmem:[#allocation11 + $0x190] sm:$0xff] }
 0xc60   : > { %v4805_v14 = vadd.f32 %v3229_v13, %v2468_v58  ;;  %v3669_v13 = vpack.c.bf16 %v2585_v11, %v2581_v10  ;;  %v2580_v58 = vld [vmem:[#allocation11 + $0x180] sm:$0xff]  ;;  %v2586_v1 = vld [vmem:[#allocation11 + $0x1b0] sm:$0xff]  ;;  %v2863_v10 = vld [vmem:[#allocation13 + $0x198] sm:$0xff] }
 0xc61   : > { %v2486_v15 = vmul.f32 %v4810_v4, %v4810_v4  ;;  %3654 = vmatprep.subr.bf16.mxu0 %v3653_v0  ;;  %v3703_v0 = vpack.c.bf16 %v2586_v1, %v2582_v16  ;;  %v2815_v16 = vld [vmem:[#allocation13 + $0x18] sm:$0xff] }
 0xc62   : > { %2479 = vadd.xlane.f32.xlu0 %v4805_v14  ;;  %v2485_v51 = vmul.f32 %v4805_v14, %v4805_v14  ;;  %3656 = vmatpush1.bf16.msra.mxu0 %v3655_v22  ;;  %v3705_v22 = vpack.c.bf16 %v2595_v20, %v2591_v18  ;;  %v2833_v18 = vld [vmem:[#allocation13 + $0xa8] sm:$0xff]  ;;  %v2864_v20 = vld [vmem:[#allocation13 + $0x1a0] sm:$0xff] }
 0xc63   : > { %3658 = vmatprep.subr.bf16.mxu0 %v3657_v28  ;;  %v2828_v28 = vld [vmem:[#allocation13 + $0x80] sm:$0xff]  ;;  %v3717_v63 = vpack.c.bf16 %v2833_v18, %v2832_v19  ;;  %v2825_v19 = vld [vmem:[#allocation13 + $0x68] sm:$0xff] }
 0xc64   : > { %2487 = vadd.xlane.f32.xlu1 %v2485_v51  ;;  %v3701_v51 = vpack.c.bf16 %v2587_v53, %v2583_v12  ;;  %v3709_v31 = vpack.c.bf16 %v2829_v29, %v2828_v28  ;;  %v3743_v53 = vpack.c.bf16 %v2845_v5, %v2844_v3  ;;  %v2817_v28 = vld [vmem:[#allocation13 + $0x28] sm:$0xff]  ;;  %v2848_v29 = vld [vmem:[#allocation13 + $0x120] sm:$0xff]  ;;  %v2838_v5 = vld [vmem:[#allocation13 + $0xd0] sm:$0xff] }
 0xc66   : > { %2481 = vadd.xlane.f32.xlu0 %v4810_v4  ;;  %3660 = vmatpush1.bf16.msra.mxu0 %v3659_v2  ;;  %v3741_v2 = vpack.c.bf16 %v2861_v61, %v2860_v30  ;;  %v2849_v30 = vld [vmem:[#allocation13 + $0x128] sm:$0xff]  ;;  %v2834_v61 = vld [vmem:[#allocation13 + $0xb0] sm:$0xff] }
 0xc67   : > { %3662 = vmatprep.subr.bf16.mxu0 %v3661_v38  ;;  %3702 = vmatprep.subr.bf16.mxu1 %v3701_v51  ;;  %v3745_v51 = vpack.c.bf16 %v2863_v10, %v2862_v9  ;;  %v2871_v9 = vld [vmem:[#allocation13 + $0x1d8] sm:$0xff]  ;;  %v2822_v10 = vld [vmem:[#allocation13 + $0x50] sm:$0xff] }
 0xc68   : > { %3704 = vmatpush1.bf16.msra.mxu1 %v3703_v0  ;;  %v2847_v0 = vld [vmem:[#allocation13 + $0x118] sm:$0xff] }
 0xc69   : > { %3706 = vmatprep.subr.bf16.mxu1 %v3705_v22  ;;  %v3747_v24 = vpack.c.bf16 %v2847_v0, %v2846_v17  ;;  %v2873_v17 = vld [vmem:[#allocation13 + $0x1e8] sm:$0xff]  ;;  %v2824_v0 = vld [vmem:[#allocation13 + $0x60] sm:$0xff] }
 0xc6a   : > { %2489 = vadd.xlane.f32.xlu0 %v2486_v15  ;;  %3664 = vmatpush1.bf16.msra.mxu0 %v3663_v46  ;;  %v3671_v15 = vpack.c.bf16 %v2584_v62, %v2580_v58 }
 0xc6b   : > { %3666 = vmatprep.subr.bf16.mxu0 %v3665_v57  ;;  %v3231_v57 = vld [vmem:[%s4936_s17] ss:$0 sm:$0xff]  ;;  %s4848_s17 = scalar_lea.hbm %s4939_s22, %s3239_s13 }
 0xc6c   : > { %3708 = vmatpush1.bf16.msra.mxu1 %v3707_v27 }
 0xc6d   : > { %3742 = vmatprep.subr.bf16.mxu1 %v3741_v2  ;;  %v2835_v2 = vld [vmem:[#allocation13 + $0xb8] sm:$0xff] }
 0xc6e   : > { %3668 = vmatpush1.bf16.msra.mxu0 %v3667_v6  ;;  %v2830_v6 = vld [vmem:[#allocation13 + $0x90] sm:$0xff] }
 0xc6f   : > { %3670 = vmatprep.subr.bf16.mxu0 %v3669_v13  ;;  %v3711_v13 = vpack.c.bf16 %v2813_v60, %v2812_v59  ;;  %v3713_v62 = vpack.c.bf16 %v2831_v8, %v2830_v6  ;;  %v2852_v59 = vld [vmem:[#allocation13 + $0x140] sm:$0xff]  ;;  %v2853_v60 = vld [vmem:[#allocation13 + $0x148] sm:$0xff]  ;;  %v2839_v6 = vld [vmem:[#allocation13 + $0xd8] sm:$0xff] }
 0xc70   : > { %v3759_v3 = vpack.c.bf16 %v2853_v60, %v2852_v59  ;;  %v3729_v8 = vpack.c.bf16 %v2839_v6, %v2838_v5 }
 0xc72   : > { %3672 = vmatpush1.bf16.msra.mxu0 %v3671_v15  ;;  %v2814_v15 = vld [vmem:[#allocation13 + $0x10] sm:$0xff] }
 0xc73   : > { %3674 = vmatprep.subr.bf16.mxu0 %v3673_v21  ;;  %v2865_v21 = vld [vmem:[#allocation13 + $0x1a8] sm:$0xff]  ;;  %v3715_v23 = vpack.c.bf16 %v2815_v16, %v2814_v15  ;;  %v2872_v16 = vld [vmem:[#allocation13 + $0x1e0] sm:$0xff] }
 0xc74   : > { %v3749_v27 = vpack.c.bf16 %v2865_v21, %v2864_v20  ;;  %v2841_v15 = vld [vmem:[#allocation13 + $0xe8] sm:$0xff]  ;;  %v3765_v18 = vpack.c.bf16 %v2873_v17, %v2872_v16  ;;  %v3735_v20 = vpack.c.bf16 %v2825_v19, %v2824_v0  ;;  %v2856_v21 = vld [vmem:[#allocation13 + $0x160] sm:$0xff] }
 0xc76   : > { %3676 = vmatpush1.bf16.msra.mxu0 %v3675_v26 }
 0xc77   : > { %3710 = vmatprep.subr.bf16.mxu0 %v3709_v31  ;;  %v3751_v31 = vpack.c.bf16 %v2849_v30, %v2848_v29  ;;  %v2827_v29 = vld [vmem:[#allocation13 + $0x78] sm:$0xff] }
 0xcef   : > { %v2480_v32 = vpop.xlane.xlu0 %2479 }
 0xcf0   : > { %v2483_v33 = vmul.f32 0.0078125, %v2480_v32  ;;  %v2866_v32 = vld [vmem:[#allocation13 + $0x1b0] sm:$0xff] }
 0xcf1   : > { %v2488_v34 = vpop.xlane.xlu1 %2487 }
 0xcf2   : > { %v2493_v35 = vmul.f32 %v2483_v33, %v2483_v33  ;;  %v2491_v36 = vmul.f32 0.0078125, %v2488_v34  ;;  %v2497_v50 = vsub.f32 %v4805_v14, %v2483_v33  ;;  %v3721_v33 = vpack.c.bf16 %v2835_v2, %v2834_v61  ;;  %v2867_v34 = vld [vmem:[#allocation13 + $0x1b8] sm:$0xff] }
 0xcf3   : > { %v2482_v37 = vpop.xlane.xlu0 %2481  ;;  %v2859_v61 = vld [vmem:[#allocation13 + $0x178] sm:$0xff] }
 0xcf4   : > { %v2495_v38 = vsub.f32 %v2491_v36, %v2493_v35  ;;  %v2484_v39 = vmul.f32 0.0078125, %v2482_v37  ;;  %v2818_v35 = vld [vmem:[#allocation13 + $0x30] sm:$0xff]  ;;  %v2819_v36 = vld [vmem:[#allocation13 + $0x38] sm:$0xff]  ;;  %v3753_v37 = vpack.c.bf16 %v2867_v34, %v2866_v32 }
 0xcf5   : > { %v2596_v32 = vld [vmem:[%s4937_s30] sm:$0xf]  ;;  %s4159_s30 = scalar_lea.vmem %s4158_s24, 512 }
 0xcf6   : > { %v2499_v40 = vadd.f32 1e-05, %v2495_v38  ;;  %v2494_v44 = vmul.f32 %v2484_v39, %v2484_v39  ;;  %v2498_v11 = vsub.f32 %v4810_v4, %v2484_v39  ;;  %v3723_v38 = vpack.c.bf16 %v2819_v36, %v2818_v35  ;;  %v2850_v39 = vld [vmem:[#allocation13 + $0x130] sm:$0xff]  ;;  %p4161_p3 = scmp.lt.s32.totalorder %s4159_s30, %s4153_s15 }
 0xcf7   : > { %v2490_v41 = vpop.xlane.xlu0 %2489  ;;  %v2601_v34 = vrot.slane %v2596_v32, %v643_v43  ;;  %v2609_v35 = vrot.slane %v2596_v32, %v651_v48  ;;  %v2605_v36 = vrot.slane %v2596_v32, %v647_v45 }
 0xcf8   : > { %3935 = vrsqrt.f32 %v2499_v40  ;;  %v2492_v46 = vmul.f32 0.0078125, %v2490_v41  ;;  %v2851_v40 = vld [vmem:[#allocation13 + $0x138] sm:$0xff]  ;;  %p4162_p2 = por %p4161_p3, %p4160_p1 }
 0xcf9   : > { %v3755_v41 = vpack.c.bf16 %v2851_v40, %v2850_v39 }
 0xcfa   : > { %v2496_v47 = vsub.f32 %v2492_v46, %v2494_v44  ;;  %v2836_v44 = vld [vmem:[#allocation13 + $0xc0] sm:$0xff]  ;;  %v2837_v46 = vld [vmem:[#allocation13 + $0xc8] sm:$0xff]  ;;  %p4163_p8 = pnand %p4162_p2, %p4156_p13 }
 0xcfc   : > { %v2500_v49 = vadd.f32 1e-05, %v2496_v47  ;;  %v2868_v47 = vld [vmem:[#allocation13 + $0x1c0] sm:$0xff] }
 0xcfe   : > { %3937 = vrsqrt.f32 %v2500_v49  ;;  %v3725_v49 = vpack.c.bf16 %v2837_v46, %v2836_v44 }
 0xd02   : > { %v3936_v52 = vpop.eup %3935 }
 0xd03   : > { %v2503_v56 = vmul.f32 %v3936_v52, %v2497_v50  ;;  %v2869_v50 = vld [vmem:[#allocation13 + $0x1c8] sm:$0xff]  ;;  %v2820_v52 = vld [vmem:[#allocation13 + $0x40] sm:$0xff] }
 0xd05   : > { %v2512_v7 = vmul.f32 %v3230_v54, %v2503_v56  ;;  %v3757_v56 = vpack.c.bf16 %v2869_v50, %v2868_v47 }
 0xd07   : > { %v2521_v12 = vadd.f32 %v3231_v57, %v2512_v7  ;;  %v2870_v7 = vld [vmem:[#allocation13 + $0x1d0] sm:$0xff] }
 0xd08   : > { %v3938_v58 = vpop.eup %3937 }
 0xd09   : > { %2683 = vmatmul.mubr.f32.vlgmr.msra.gmra.mrb[26].mxu0 %v2521_v12  ;;  %2760 = vmatmul.mubr.f32.vlgmr.msra.gmra.mrb[14].mxu1 %v2521_v12  ;;  %v2504_v1 = vmul.f32 %v3938_v58, %v2498_v11  ;;  %v2823_v11 = vld [vmem:[#allocation13 + $0x58] sm:$0xff]  ;;  %v3761_v12 = vpack.c.bf16 %v2871_v9, %v2870_v7 }
 0xd0a   : > { %2688 = vmatprep.mubr.f32.mxu0 %v4246_v55  ;;  %2765 = vmatprep.mubr.f32.mxu1 %v4246_v55  ;;  %v3719_v55 = vpack.c.bf16 %v2817_v28, %v2816_v25  ;;  %v2855_v58 = vld [vmem:[#allocation13 + $0x158] sm:$0xff]  ;;  %v2826_v28 = vld [vmem:[#allocation13 + $0x70] sm:$0xff] }
 0xd0b   : > { %v2513_v22 = vmul.f32 %v3230_v54, %v2504_v1  ;;  %3712 = vmatpush3.bf16.msra.mxu0 %v3711_v13  ;;  %3744 = vmatpush3.bf16.msra.mxu1 %v3743_v53  ;;  %v2821_v54 = vld [vmem:[#allocation13 + $0x48] sm:$0xff]  ;;  %v3731_v13 = vpack.c.bf16 %v2823_v11, %v2822_v10  ;;  %v2854_v53 = vld [vmem:[#allocation13 + $0x150] sm:$0xff]  ;;  %v2843_v25 = vld [vmem:[#allocation13 + $0xf8] sm:$0xff] }
 0xd0c   : > { %3714 = vmatprep.subr.bf16.mxu0 %v3713_v62  ;;  %3746 = vmatprep.subr.bf16.mxu1 %v3745_v51  ;;  %v3763_v62 = vpack.c.bf16 %v2855_v58, %v2854_v53  ;;  %v2840_v51 = vld [vmem:[#allocation13 + $0xe0] sm:$0xff] }
 0xd0d   : > { %v2522_v26 = vadd.f32 %v3231_v57, %v2513_v22  ;;  %v3727_v57 = vpack.c.bf16 %v2821_v54, %v2820_v52  ;;  %v3733_v1 = vpack.c.bf16 %v2841_v15, %v2840_v51  ;;  %v2857_v22 = vld [vmem:[#allocation13 + $0x168] sm:$0xff] }
 0xd0f   : > { %2689 = vmatmul.mubr.f32.gmra.mrb[28].mxu0 %v2522_v26  ;;  %2766 = vmatmul.mubr.f32.gmra.mrb[16].mxu1 %v2522_v26  ;;  %v2874_v26 = vld [vmem:[#allocation13 + $0x1f0] sm:$0xff] }
 0xd10   : > { %3716 = vmatpush3.bf16.msra.mxu0 %v3715_v23  ;;  %3748 = vmatpush3.bf16.msra.mxu1 %v3747_v24  ;;  %v3767_v23 = vpack.c.bf16 %v2857_v22, %v2856_v21  ;;  %v2842_v24 = vld [vmem:[#allocation13 + $0xf0] sm:$0xff] }
 0xd11   : > { %3718 = vmatprep.subr.bf16.mxu0 %v3717_v63  ;;  %3750 = vmatprep.subr.bf16.mxu1 %v3749_v27  ;;  %v3737_v63 = vpack.c.bf16 %v2843_v25, %v2842_v24  ;;  %v2875_v27 = vld [vmem:[#allocation13 + $0x1f8] sm:$0xff] }
 0xd12   : > { %v3769_v30 = vpack.c.bf16 %v2875_v27, %v2874_v26 }
 0xd14   : > { %3720 = vmatpush3.bf16.msra.mxu0 %v3719_v55  ;;  %3752 = vmatpush3.bf16.msra.mxu1 %v3751_v31  ;;  %v3739_v55 = vpack.c.bf16 %v2827_v29, %v2826_v28  ;;  %v2858_v31 = vld [vmem:[#allocation13 + $0x170] sm:$0xff] }
 0xd15   : > { %3722 = vmatprep.subr.bf16.mxu0 %v3721_v33  ;;  %3754 = vmatprep.subr.bf16.mxu1 %v3753_v37  ;;  %v3771_v2 = vpack.c.bf16 %v2859_v61, %v2858_v31  ;;  %v2612_v33 = vsub.s32 3, %v4631_v42 }
 0xd17   : > { %v2613_v37 = vrot.slane %v2596_v32, %v2612_v33 }
 0xd18   : > { %3724 = vmatpush3.bf16.msra.mxu0 %v3723_v38  ;;  %3756 = vmatpush3.bf16.msra.mxu1 %v3755_v41 }
 0xd19   : > { %3726 = vmatprep.subr.bf16.mxu0 %v3725_v49  ;;  %3758 = vmatprep.subr.bf16.mxu1 %v3757_v56 }
 0xd1c   : > { %3728 = vmatpush3.bf16.msra.mxu0 %v3727_v57  ;;  %3760 = vmatpush3.bf16.msra.mxu1 %v3759_v3 }
 0xd1d   : > { %3730 = vmatprep.subr.bf16.mxu0 %v3729_v8  ;;  %3762 = vmatprep.subr.bf16.mxu1 %v3761_v12 }
 0xd20   : > { %3732 = vmatpush3.bf16.msra.mxu0 %v3731_v13  ;;  %3764 = vmatpush3.bf16.msra.mxu1 %v3763_v62 }
 0xd21   : > { %3734 = vmatprep.subr.bf16.mxu0 %v3733_v1  ;;  %3766 = vmatprep.subr.bf16.mxu1 %v3765_v18 }
 0xd24   : > { %3736 = vmatpush3.bf16.msra.mxu0 %v3735_v20  ;;  %3768 = vmatpush3.bf16.msra.mxu1 %v3767_v23 }
 0xd25   : > { %3738 = vmatprep.subr.bf16.mxu0 %v3737_v63  ;;  %3770 = vmatprep.subr.bf16.mxu1 %v3769_v30 }
 0xd28   : > { %3740 = vmatpush3.bf16.msra.mxu0 %v3739_v55  ;;  %3772 = vmatpush3.bf16.msra.mxu1 %v3771_v2 }
 0xddc   : > { %v2684_v38 = vpop.f32.mrb[26].mxu0  ;;  %v2761_v39 = vpop.f32.mrb[14].mxu1 }
 0xddd   : > { %v2685_v40 = vadd.f32 %v2684_v38, %v2601_v34  ;;  %v2762_v41 = vadd.f32 %v2761_v39, %v2609_v35  ;;  %v2686_v44 = vpop.f32.mrb[27].mxu0  ;;  %v2763_v46 = vpop.f32.mrb[15].mxu1 }
 0xdde   : > { %v2687_v47 = vadd.f32 %v2686_v44, %v2605_v36  ;;  %v2764_v49 = vadd.f32 %v2763_v46, %v2613_v37 }
 0xddf   : > { %v2780_v50 = vmul.f32 0.70710677, %v2685_v40  ;;  %v2782_v52 = vmul.f32 0.70710677, %v2762_v41  ;;  %v2772_v51 = vmul.f32 0.5, %v2685_v40  ;;  %v2774_v1 = vmul.f32 0.5, %v2762_v41 }
 0xde0   : > { %v2781_v54 = vmul.f32 0.70710677, %v2687_v47  ;;  %v2783_v56 = vmul.f32 0.70710677, %v2764_v49  ;;  %v2773_v58 = vmul.f32 0.5, %v2687_v47  ;;  %v2775_v15 = vmul.f32 0.5, %v2764_v49 }
 0xde1   : > { %3939 = verf.f32 %v2780_v50 }
 0xde2   : > { %3941 = verf.f32 %v2782_v52  ;;  %v2690_v43 = vpop.f32.mrb[28].mxu0  ;;  %v2767_v48 = vpop.f32.mrb[16].mxu1 }
 0xde3   : > { %3943 = verf.f32 %v2781_v54  ;;  %v2691_v42 = vadd.f32 %v2690_v43, %v2601_v34  ;;  %v2768_v45 = vadd.f32 %v2767_v48, %v2609_v35  ;;  %v2692_v57 = vpop.f32.mrb[29].mxu0  ;;  %v2769_v59 = vpop.f32.mrb[17].mxu1 }
 0xde4   : > { %3945 = verf.f32 %v2783_v56  ;;  %v2693_v60 = vadd.f32 %v2692_v57, %v2605_v36  ;;  %v2770_v3 = vadd.f32 %v2769_v59, %v2613_v37  ;;  %v3232_v36 = vld [vmem:[%s4938_s18] ss:$0 sm:$0xff] }
 0xde5   : > { %v2784_v5 = vmul.f32 0.70710677, %v2691_v42  ;;  %v2786_v6 = vmul.f32 0.70710677, %v2768_v45  ;;  %v2776_v27 = vmul.f32 0.5, %v2691_v42  ;;  %v2778_v30 = vmul.f32 0.5, %v2768_v45 }
 0xde6   : > { %v2785_v7 = vmul.f32 0.70710677, %v2693_v60  ;;  %v2787_v8 = vmul.f32 0.70710677, %v2770_v3  ;;  %v2777_v26 = vmul.f32 0.5, %v2693_v60  ;;  %v2779_v28 = vmul.f32 0.5, %v2770_v3 }
 0xde7   : > { %3947 = verf.f32 %v2784_v5  ;;  %v2530_v39 = vadd.f32 %v3232_v36, %v4805_v14  ;;  %v2531_v14 = vadd.f32 %v3232_v36, %v4810_v4 }
 0xde8   : > { %3949 = verf.f32 %v2786_v6 }
 0xde9   : > { %3951 = verf.f32 %v2785_v7 }
 0xdea   : > { %3953 = verf.f32 %v2787_v8 }
 0xdeb   : > { %v3940_v9 = vpop.eup %3939 }
 0xdec   : > { %v3942_v10 = vpop.eup %3941  ;;  %v2796_v12 = vadd.f32 1.0, %v3940_v9 }
 0xded   : > { %v3944_v11 = vpop.eup %3943  ;;  %v2798_v53 = vadd.f32 1.0, %v3942_v10 }
 0xdee   : > { %v3946_v13 = vpop.eup %3945  ;;  %v2797_v62 = vadd.f32 1.0, %v3944_v11  ;;  %v2804_v19 = vmul.f32 %v2796_v12, %v2772_v51 }
 0xdef   : > { %v2799_v16 = vadd.f32 1.0, %v3946_v13  ;;  %v2806_v21 = vmul.f32 %v2798_v53, %v2774_v1 }
 0xdf0   : > { %v2805_v17 = vmul.f32 %v2797_v62, %v2773_v58 }
 0xdf1   : > { %v3948_v0 = vpop.eup %3947  ;;  %v2807_v18 = vmul.f32 %v2799_v16, %v2775_v15 }
 0xdf2   : > { %v3950_v20 = vpop.eup %3949  ;;  %2940 = vmatprep.mubr.f32.mxu0 %v2805_v17  ;;  %v2800_v23 = vadd.f32 1.0, %v3948_v0 }
 0xdf3   : > { %v3952_v22 = vpop.eup %3951  ;;  %3015 = vmatprep.mubr.f32.mxu1 %v2807_v18  ;;  %2941 = vmatmul.mubr.f32.vlgmr.msra.gmra.mrb[30].mxu0 %v2804_v19  ;;  %v2802_v25 = vadd.f32 1.0, %v3950_v20 }
 0xdf4   : > { %v3954_v24 = vpop.eup %3953  ;;  %v2801_v63 = vadd.f32 1.0, %v3952_v22  ;;  %3016 = vmatmul.mubr.f32.vlgmr.msra.gmra.mrb[18].mxu1 %v2806_v21  ;;  %v2808_v61 = vmul.f32 %v2800_v23, %v2776_v27 }
 0xdf5   : > { %v2803_v29 = vadd.f32 1.0, %v3954_v24  ;;  %v2810_v2 = vmul.f32 %v2802_v25, %v2778_v30 }
 0xdf6   : > { %v2809_v55 = vmul.f32 %v2801_v63, %v2777_v26 }
 0xdf7   : > { %v2811_v31 = vmul.f32 %v2803_v29, %v2779_v28 }
 0xdf8   : > { %2945 = vmatprep.mubr.f32.mxu0 %v2809_v55 }
 0xdf9   : > { %3020 = vmatprep.mubr.f32.mxu1 %v2811_v31  ;;  %2946 = vmatmul.mubr.f32.gmra.mrb[32].mxu0 %v2808_v61 }
 0xdfa   : > { %3021 = vmatmul.mubr.f32.gmra.mrb[20].mxu1 %v2810_v2 }
 0xec6   : > { %v3346_v32 = vpop.f32.mrb[30].mxu0 }
 0xec7   : > { %v3384_v33 = vpop.f32.mrb[18].mxu1  ;;  %v3347_v34 = vpop.f32.mrb[31].mxu0 }
 0xec8   : > { %v3348_v35 = vadd.f32 %v3347_v34, %v3346_v32  ;;  %v3385_v37 = vpop.f32.mrb[19].mxu1 }
 0xec9   : > { %v3386_v38 = vadd.f32 %v3385_v37, %v3384_v33 }
 0xecb   : > { %v3018_v40 = vadd.f32 %v3386_v38, %v3348_v35 }
 0xecc   : > { %v3349_v41 = vpop.f32.mrb[32].mxu0 }
 0xecd   : > { %v3026_v44 = vadd.f32 %v3018_v40, %v2530_v39  ;;  %v3387_v46 = vpop.f32.mrb[20].mxu1  ;;  %v3350_v47 = vpop.f32.mrb[33].mxu0 }
 0xece   : > { %v3351_v49 = vadd.f32 %v3350_v47, %v3349_v41  ;;  %v3388_v50 = vpop.f32.mrb[21].mxu1 }
 0xecf   : > { %3028 = vst [vmem:[%s541_s20] sm:$0xff] %v3026_v44  ;;  %v3389_v52 = vadd.f32 %v3388_v50, %v3387_v46 }
 0xed1   : > { %v3023_v54 = vadd.f32 %v3389_v52, %v3351_v49 }
 0xed3   : > { %v3027_v56 = vadd.f32 %v3023_v54, %v2531_v14 }
 0xed5   : > { %3029 = vst [vmem:[%s541_s20 + $0x8] sm:$0xff] %v3027_v56 }
 0xed6   : > { %4166 = shalt.err (!%p4163_p8)
}
 0xed7   : > { %s4167_s3 = scalar_lea.hbm %s4848_s17, 256  ;;  %s4171_s20 = scalar_lea.hbm %s4939_s22, 512 }
 0xed8   : > { %p4168_p10 = scmp.ne.s32.totalorder %s4848_s17, %s4167_s3  ;;  %p4172_p0 = scmp.lt.u32.totalorder %s4848_s17, %s4939_s22 }
 0xed9   : > { %p4173_p5 = scmp.lt.u32.totalorder %s4171_s20, %s4167_s3  ;;  %p4175_p6 = scmp.lt.u32.totalorder %s4167_s3, %s4848_s17 }
 0xeda   : > { %p4169_p11 = pnand %p4168_p10, %p4940_p9 }
 0xedb   : > { %p4174_p7 = por %p4173_p5, %p4172_p0 }
 0xedc   : > { %p4170_p12 = pneg %p4169_p11 }
 0xedd   : > { %p4176_p4 = por %p4175_p6, %p4174_p7 }
 0xedf   : > { %p4177_p13 = pnand %p4176_p4, %p4170_p12 }
 0xee1   : > { %4180 = shalt.err (!%p4177_p13)
}
 0xee2   : > { %s4252_s19 = smov 128   ;;  %s4253_s15 = smov 8  }
 0xee3   : > { %3805 = dma.vmem_to_hbm [thread:$0]  (%p4940_p9), %s4842_s7, 256, %s4848_s17, %s3031_s1, %s4252_s19, %s4252_s19, %s4253_s15  }
 0xee4 PF: > { %s3059_s14 = sand.u32 1, %s4219_s25   ;;  %p4941_p1 = scmp.ne.s32.totalorder %s4926_s12, 0 }
 0xee5   : > { %p4942_p3 = scmp.ge.s32.totalorder %s4231_s28, 2  ;;  %s3060_s24 = scalar_lea.sflag [#allocation4], %s3059_s14 }
 0xee7   : > { %p3831_p2 = pnand %p4942_p3, %p4941_p1 }
 0xee9   : > { %4214 = dma.done.wait (!%p3831_p2), %s3060_s24, 256  }
 0xeea   : > { %4216 = vsyncadd (!%p3831_p2), %s3060_s24, 4294967040  ;;  %p29_p8 = scmp.ge.s32.totalorder %s4507_s16, 4   ;;  %s4943_s25 = smov %s4223_s26 }
 0xeeb   : > { %s4944_s26 = smov %s4227_s27  ;;  %s4945_s27 = smov %s4518_s10 }
 0xeec   : > { %s4946_s28 = smov %s4507_s16  ;;  %31 = sbr.rel (!%p29_p8) target bundleno = 16 (0x10), region = 141 }
 0xef3   :  { %3065 = vsyncpa [#allocation3], 1 }
 0xef4   :  { %3067 = vsyncpa [#allocation3 + $0x1], 1 }
 0xef5   :  { %3068 = vsyncpa [#allocation6], 1 }
 0xef6   :  { %3069 = vsyncpa [#allocation9], 1 }
 0xef7   :  { %3070 = vsyncpa [#allocation12], 1 }
 0xef8   :  { %3071 = vsyncpa [#allocation4], 1 }
 0xef9   :  { %3073 = vsyncpa [#allocation4 + $0x1], 1 }

</bundles_post_ra>
